<compile_context>
chip_gen: v6e
topology: v6e:2x2x1
jax: 0.10.0
libtpu: 0.0.40
codegen_flags: <defaults>
</compile_context>

<pallas_src>
import functools

import jax
import jax.numpy as jnp
import numpy as np
from jax.experimental import pallas as pl
from jax.experimental.pallas import tpu as pltpu

_MASK = -1e30          # additive mask for non-neighbor positions
_LN_EPS = 1e-5         # torch LayerNorm default eps
_VMEM_LIMIT = 32 * 1024 * 1024


# --------------------- NATTEN index / bias precomputation ------------------- #

def _natten_gather_indices(H, W, K):
    """NATTEN neighbor & rpb indices as numpy (trace-time constants)."""
    nh = K // 2
    ii, jj, kk = np.arange(H), np.arange(W), np.arange(K)
    ws_i = np.clip(ii - nh, 0, H - K)                 # window start per row
    ws_j = np.clip(jj - nh, 0, W - K)                 # window start per col
    rows = ws_i[:, None] + kk[None, :]                # (H, K)
    cols = ws_j[:, None] + kk[None, :]                # (W, K)
    nbr = (rows[:, None, :, None] * W +
           cols[None, :, None, :]).reshape(H * W, K * K)
    pb_i = ws_i - ii + (K - 1)                        # NATTEN get_pb_start
    pb_j = ws_j - jj + (K - 1)
    rih = np.broadcast_to((pb_i[:, None] + kk[None, :])[:, None, :, None],
                          (H, W, K, K)).reshape(H * W, K * K)
    riw = np.broadcast_to((pb_j[:, None] + kk[None, :])[None, :, None, :],
                          (H, W, K, K)).reshape(H * W, K * K)
    return nbr, rih, riw


def _dense_neighborhood_bias(rpb, H, W, K):
    """(NH, HW, HW) additive bias: rpb at NATTEN neighbors, -1e30 elsewhere.

    Uses the identity rpb_index = (p - q) + (K - 1) for neighbor pairs (valid
    for NATTEN's clipped windows), so only a single gather + where is needed
    (no scatter). Called once, outside jit, in prepare_params.
    """
    nh = K // 2
    qi = np.repeat(np.arange(H), W)                   # (HW,) query / key rows
    qj = np.tile(np.arange(W), H)                     # (HW,) query / key cols
    ws_i = np.clip(qi - nh, 0, H - K)
    ws_j = np.clip(qj - nh, 0, W - K)
    pi, pj = qi, qj                                   # keys share the flattening
    mask = ((pi[None, :] >= ws_i[:, None]) & (pi[None, :] < ws_i[:, None] + K) &
            (pj[None, :] >= ws_j[:, None]) & (pj[None, :] < ws_j[:, None] + K))
    rih = np.clip(pi[None, :] - qi[:, None] + (K - 1), 0, 2 * K - 2)
    riw = np.clip(pj[None, :] - qj[:, None] + (K - 1), 0, 2 * K - 2)
    vals = rpb[:, rih, riw]                           # (NH, HW, HW) gather
    return jnp.where(jnp.asarray(mask)[None], vals, _MASK)


# ----------------------------- fused block kernel --------------------------- #

def _nsa_block_kernel(x_ref, ln1g_ref, ln1b_ref, wqkv_ref, bqkv_ref, bias_ref,
                      wproj_ref, bproj_ref, ln2g_ref, ln2b_ref,
                      wfc1_ref, bfc1_ref, wfc2_ref, bfc2_ref, o_ref,
                      *, num_heads, scale):
    x = x_ref[...]                                            # (HW, C) f32

    # ---- norm1 (f32) ----
    mu = jnp.mean(x, axis=-1, keepdims=True)
    var = jnp.mean(jnp.square(x - mu), axis=-1, keepdims=True)
    xn = (x - mu) * jax.lax.rsqrt(var + _LN_EPS) * ln1g_ref[...] + ln1b_ref[...]
    xn_bf = xn.astype(jnp.bfloat16)

    # ---- neighborhood attention; heads accumulated straight into the proj ----
    attn = jnp.zeros(x.shape, jnp.float32)                    # (HW, C) accumulator
    for h in range(num_heads):                                # static unroll
        q = jnp.dot(xn_bf, wqkv_ref[0, h],
                    preferred_element_type=jnp.float32) + bqkv_ref[0, h]
        k = jnp.dot(xn_bf, wqkv_ref[1, h],
                    preferred_element_type=jnp.float32) + bqkv_ref[1, h]
        v = jnp.dot(xn_bf, wqkv_ref[2, h],
                    preferred_element_type=jnp.float32) + bqkv_ref[2, h]
        # QK^T on the MXU (contraction over head_dim), scale + RPB/neighbor mask.
        logits = jax.lax.dot_general(
            q.astype(jnp.bfloat16), k.astype(jnp.bfloat16),
            (((1,), (1,)), ((), ())),
            preferred_element_type=jnp.float32) * scale
        logits = logits + bias_ref[h].astype(jnp.float32)
        m = jnp.max(logits, axis=-1, keepdims=True)
        e = jnp.exp(logits - m)
        p = e * pl.reciprocal(jnp.sum(e, axis=-1, keepdims=True), approx=True)
        o_h = jnp.dot(p.astype(jnp.bfloat16), v.astype(jnp.bfloat16),
                      preferred_element_type=jnp.float32)     # (HW, D) AV on MXU
        # per-head accumulating proj: no concat, no lane-offset slicing.
        attn = attn + jnp.dot(o_h.astype(jnp.bfloat16), wproj_ref[h],
                              preferred_element_type=jnp.float32)

    # ---- proj bias + residual 1 ----
    x1 = x + attn + bproj_ref[...]                            # (HW, C) f32

    # ---- norm2 + MLP + residual 2 ----
    mu2 = jnp.mean(x1, axis=-1, keepdims=True)
    var2 = jnp.mean(jnp.square(x1 - mu2), axis=-1, keepdims=True)
    xn2 = (x1 - mu2) * jax.lax.rsqrt(var2 + _LN_EPS) * ln2g_ref[...] + ln2b_ref[...]
    h1 = jnp.dot(xn2.astype(jnp.bfloat16), wfc1_ref[...],
                 preferred_element_type=jnp.float32) + bfc1_ref[...]
    # TODO(synk): torch nn.GELU default is erf-exact; tanh approximation used here.
    h1 = jax.nn.gelu(h1, approximate=True)
    out = x1 + jnp.dot(h1.astype(jnp.bfloat16), wfc2_ref[...],
                       preferred_element_type=jnp.float32) + bfc2_ref[...]
    o_ref[...] = out.astype(o_ref.dtype)


# ------------------------------ host-side wrappers --------------------------- #

def prepare_params(params, *, H, W, kernel_size, num_heads):
    """One-time (outside jit) repack: head-major splits, bf16 casts, 2-D biases
    and the dense bf16 neighborhood bias. torch Linear stores (out, in)."""
    C = params["w_proj"].shape[0]
    D = C // num_heads
    hidden = params["w_fc1"].shape[0]

    w_qkv_h = jnp.transpose(params["w_qkv"].reshape(3, num_heads, D, C),
                            (0, 1, 3, 2)).astype(jnp.bfloat16)   # (3, NH, C, D)
    b_qkv_h = params["b_qkv"].reshape(3, num_heads, 1, D).astype(jnp.float32)
    w_proj_h = jnp.transpose(params["w_proj"].reshape(C, num_heads, D),
                             (1, 2, 0)).astype(jnp.bfloat16)     # (NH, D, C)

    return {
        "ln1_g": params["ln1_g"].reshape(1, C).astype(jnp.float32),
        "ln1_b": params["ln1_b"].reshape(1, C).astype(jnp.float32),
        "w_qkv_h": w_qkv_h,
        "b_qkv_h": b_qkv_h,
        "bias": _dense_neighborhood_bias(params["rpb"], H, W,
                                         kernel_size).astype(jnp.bfloat16),
        "w_proj_h": w_proj_h,
        "b_proj": params["b_proj"].reshape(1, C).astype(jnp.float32),
        "ln2_g": params["ln2_g"].reshape(1, C).astype(jnp.float32),
        "ln2_b": params["ln2_b"].reshape(1, C).astype(jnp.float32),
        "w_fc1": jnp.transpose(params["w_fc1"]).astype(jnp.bfloat16),   # (C, hid)
        "b_fc1": params["b_fc1"].reshape(1, hidden).astype(jnp.float32),
        "w_fc2": jnp.transpose(params["w_fc2"]).astype(jnp.bfloat16),   # (hid, C)
        "b_fc2": params["b_fc2"].reshape(1, C).astype(jnp.float32),
    }


def nsa_block_forward(x, prep, *, num_heads):
    """Pallas forward for NSABlock (drop / attn_drop / drop_path = 0)."""
    B, H, W, C = x.shape
    HW = H * W
    D = C // num_heads
    hidden = prep["w_fc1"].shape[1]
    scale = D ** (-0.5)
    # TODO(synk): the reference pad branch for H/W < kernel_size references an
    # undefined self.window_size (bug in the source module); not reproduced.

    kern = functools.partial(_nsa_block_kernel, num_heads=num_heads, scale=scale)
    out = pl.pallas_call(
        kern,
        out_shape=jax.ShapeDtypeStruct((B, HW, C), jnp.float32),
        grid_spec=pltpu.PrefetchScalarGridSpec(
            num_scalar_prefetch=0,
            grid=(B,),
            in_specs=[
                pl.BlockSpec((None, HW, C), lambda b: (b, 0, 0)),            # x
                pl.BlockSpec((1, C), lambda b: (0, 0)),                      # ln1_g
                pl.BlockSpec((1, C), lambda b: (0, 0)),                      # ln1_b
                pl.BlockSpec((3, num_heads, C, D), lambda b: (0, 0, 0, 0)),  # w_qkv
                pl.BlockSpec((3, num_heads, 1, D), lambda b: (0, 0, 0, 0)),  # b_qkv
                pl.BlockSpec((num_heads, HW, HW), lambda b: (0, 0, 0)),      # bias
                pl.BlockSpec((num_heads, D, C), lambda b: (0, 0, 0)),        # w_proj
                pl.BlockSpec((1, C), lambda b: (0, 0)),                      # b_proj
                pl.BlockSpec((1, C), lambda b: (0, 0)),                      # ln2_g
                pl.BlockSpec((1, C), lambda b: (0, 0)),                      # ln2_b
                pl.BlockSpec((C, hidden), lambda b: (0, 0)),                 # w_fc1
                pl.BlockSpec((1, hidden), lambda b: (0, 0)),                 # b_fc1
                pl.BlockSpec((hidden, C), lambda b: (0, 0)),                 # w_fc2
                pl.BlockSpec((1, C), lambda b: (0, 0)),                      # b_fc2
            ],
            out_specs=pl.BlockSpec((None, HW, C), lambda b: (b, 0, 0)),
        ),
        compiler_params=pltpu.CompilerParams(
            dimension_semantics=("parallel",),
            vmem_limit_bytes=_VMEM_LIMIT),
    )(x.reshape(B, HW, C), prep["ln1_g"], prep["ln1_b"], prep["w_qkv_h"],
      prep["b_qkv_h"], prep["bias"], prep["w_proj_h"], prep["b_proj"],
      prep["ln2_g"], prep["ln2_b"], prep["w_fc1"], prep["b_fc1"],
      prep["w_fc2"], prep["b_fc2"])
    return out.reshape(B, H, W, C)


# ------------------------------ pure-JAX reference --------------------------- #

def reference_forward(x, params, kernel_size, num_heads):
    """Pure-JAX f32 reference with the module's semantics (for the check)."""
    B, H, W, C = x.shape
    K = kernel_size
    D = C // num_heads
    HW = H * W
    scale = D ** (-0.5)

    def ln(y, g, b):
        mu = jnp.mean(y, axis=-1, keepdims=True)
        var = jnp.mean(jnp.square(y - mu), axis=-1, keepdims=True)
        return (y - mu) * jax.lax.rsqrt(var + _LN_EPS) * g + b

    shortcut = x
    xn = ln(x, params["ln1_g"], params["ln1_b"])
    qkv = xn.reshape(B * HW, C) @ params["w_qkv"].T + params["b_qkv"]
    qkv = qkv.reshape(B, H, W, 3, num_heads, D).transpose(3, 0, 4, 1, 2, 5)
    q = qkv[0].reshape(B, num_heads, HW, D) * scale
    k = qkv[1].reshape(B, num_heads, HW, D)
    v = qkv[2].reshape(B, num_heads, HW, D)

    nbr, rih, riw = _natten_gather_indices(H, W, K)
    k_nb = jnp.take(k, jnp.asarray(nbr), axis=2)                   # (B, NH, HW, KK, D)
    v_nb = jnp.take(v, jnp.asarray(nbr), axis=2)
    bias = params["rpb"][:, rih, riw]                              # (NH, HW, KK)
    logits = jnp.einsum("bnxd,bnxkd->bnxk", q, k_nb) + bias[None]
    p = jax.nn.softmax(logits, axis=-1)
    attn = jnp.einsum("bnxk,bnxkd->bnxd", p, v_nb)                 # (B, NH, HW, D)
    attn = attn.transpose(0, 2, 1, 3).reshape(B * HW, C)
    attn = attn @ params["w_proj"].T + params["b_proj"]

    x1 = shortcut + attn.reshape(B, H, W, C)
    xn2 = ln(x1, params["ln2_g"], params["ln2_b"])
    h = jax.nn.gelu(xn2.reshape(B * HW, C) @ params["w_fc1"].T + params["b_fc1"],
                    approximate=True)
    mlp = h @ params["w_fc2"].T + params["b_fc2"]
    return x1 + mlp.reshape(B, H, W, C)


# ----------------------------------- main ------------------------------------ #

if __name__ == "__main__":
    B, H, W = 2, 8, 8
    dim = 32
    num_heads = 4
    kernel_size = 3
    mlp_ratio = 4
    hidden = dim * mlp_ratio

    key = jax.random.PRNGKey(0)
    ks = jax.random.split(key, 14)
    # Parameter layout follows the module's __init__ (torch Linear stores (out, in)).
    # rpb is zero-initialized in torch; small random values here exercise the path.
    params = {
        "ln1_g": 1.0 + 0.05 * jax.random.normal(ks[0], (dim,), jnp.float32),
        "ln1_b": 0.05 * jax.random.normal(ks[1], (dim,), jnp.float32),
        "w_qkv": 0.05 * jax.random.normal(ks[2], (3 * dim, dim), jnp.float32),
        "b_qkv": 0.05 * jax.random.normal(ks[3], (3 * dim,), jnp.float32),
        "rpb": 0.10 * jax.random.normal(
            ks[4], (num_heads, 2 * kernel_size - 1, 2 * kernel_size - 1), jnp.float32),
        "w_proj": 0.05 * jax.random.normal(ks[5], (dim, dim), jnp.float32),
        "b_proj": 0.05 * jax.random.normal(ks[6], (dim,), jnp.float32),
        "ln2_g": 1.0 + 0.05 * jax.random.normal(ks[7], (dim,), jnp.float32),
        "ln2_b": 0.05 * jax.random.normal(ks[8], (dim,), jnp.float32),
        "w_fc1": 0.05 * jax.random.normal(ks[9], (hidden, dim), jnp.float32),
        "b_fc1": 0.05 * jax.random.normal(ks[10], (hidden,), jnp.float32),
        "w_fc2": 0.05 * jax.random.normal(ks[11], (dim, hidden), jnp.float32),
        "b_fc2": 0.05 * jax.random.normal(ks[12], (dim,), jnp.float32),
    }
    x = jax.random.normal(ks[13], (B, H, W, dim), jnp.float32)

    # One-time repack (transpose / bf16 cast / head split / dense bias) outside jit.
    prep = prepare_params(params, H=H, W=W, kernel_size=kernel_size,
                          num_heads=num_heads)

    fwd = jax.jit(functools.partial(nsa_block_forward, num_heads=num_heads))
    out = jax.block_until_ready(fwd(x, prep))

    ref = jax.block_until_ready(
        reference_forward(x, params, kernel_size, num_heads))
    # bf16 matmul inputs (matching the CUDA path's fp16 custom_fwd cast) -> loose tol.
    np.testing.assert_allclose(np.asarray(out), np.asarray(ref), rtol=2e-2, atol=2e-2)

    print("KERNEL_OK")
</pallas_src>

<mosaic_0001>
module attributes {stable_mosaic.version = 11 : i64} {
  func.func @_nsa_block_kernel(%arg0: i32, %arg1: memref<1x64x32xf32, #tpu.memory_space<vmem>>, %arg2: memref<1x32xf32, #tpu.memory_space<vmem>>, %arg3: memref<1x32xf32, #tpu.memory_space<vmem>>, %arg4: memref<3x4x32x8xbf16, #tpu.memory_space<vmem>>, %arg5: memref<3x4x1x8xf32, #tpu.memory_space<vmem>>, %arg6: memref<4x64x64xbf16, #tpu.memory_space<vmem>>, %arg7: memref<4x8x32xbf16, #tpu.memory_space<vmem>>, %arg8: memref<1x32xf32, #tpu.memory_space<vmem>>, %arg9: memref<1x32xf32, #tpu.memory_space<vmem>>, %arg10: memref<1x32xf32, #tpu.memory_space<vmem>>, %arg11: memref<32x128xbf16, #tpu.memory_space<vmem>>, %arg12: memref<1x128xf32, #tpu.memory_space<vmem>>, %arg13: memref<128x32xbf16, #tpu.memory_space<vmem>>, %arg14: memref<1x32xf32, #tpu.memory_space<vmem>>, %arg15: memref<1x64x32xf32, #tpu.memory_space<vmem>>) attributes {dimension_semantics = [#tpu.dimension_semantics<parallel>], iteration_bounds = array<i64: 2>, scalar_prefetch = 0 : i64, scratch_operands = 0 : i64, tpu.core_type = #tpu.core_type<tc>, window_params = [{transform_indices = @transform_0, window_bounds = array<i64: 1, 64, 32>}, {pipeline_mode = #tpu.pipeline_mode<synchronous>, transform_indices = @transform_1, window_bounds = array<i64: 1, 32>}, {pipeline_mode = #tpu.pipeline_mode<synchronous>, transform_indices = @transform_2, window_bounds = array<i64: 1, 32>}, {pipeline_mode = #tpu.pipeline_mode<synchronous>, transform_indices = @transform_3, window_bounds = array<i64: 3, 4, 32, 8>}, {pipeline_mode = #tpu.pipeline_mode<synchronous>, transform_indices = @transform_4, window_bounds = array<i64: 3, 4, 1, 8>}, {pipeline_mode = #tpu.pipeline_mode<synchronous>, transform_indices = @transform_5, window_bounds = array<i64: 4, 64, 64>}, {pipeline_mode = #tpu.pipeline_mode<synchronous>, transform_indices = @transform_6, window_bounds = array<i64: 4, 8, 32>}, {pipeline_mode = #tpu.pipeline_mode<synchronous>, transform_indices = @transform_7, window_bounds = array<i64: 1, 32>}, {pipeline_mode = #tpu.pipeline_mode<synchronous>, transform_indices = @transform_8, window_bounds = array<i64: 1, 32>}, {pipeline_mode = #tpu.pipeline_mode<synchronous>, transform_indices = @transform_9, window_bounds = array<i64: 1, 32>}, {pipeline_mode = #tpu.pipeline_mode<synchronous>, transform_indices = @transform_10, window_bounds = array<i64: 32, 128>}, {pipeline_mode = #tpu.pipeline_mode<synchronous>, transform_indices = @transform_11, window_bounds = array<i64: 1, 128>}, {pipeline_mode = #tpu.pipeline_mode<synchronous>, transform_indices = @transform_12, window_bounds = array<i64: 128, 32>}, {pipeline_mode = #tpu.pipeline_mode<synchronous>, transform_indices = @transform_13, window_bounds = array<i64: 1, 32>}, {transform_indices = @transform_14, window_bounds = array<i64: 1, 64, 32>}]} {
    %c0 = arith.constant 0 : index
    %c0_0 = arith.constant 0 : index
    %c0_1 = arith.constant 0 : index
    %0 = vector.load %arg1[%c0, %c0_0, %c0_1] : memref<1x64x32xf32, #tpu.memory_space<vmem>>, vector<1x64x32xf32>
    %1 = vector.shape_cast %0 : vector<1x64x32xf32> to vector<64x32xf32>
    %cst = arith.constant dense<0.000000e+00> : vector<64xf32>
    %2 = vector.multi_reduction <add>, %1, %cst [1] : vector<64x32xf32> to vector<64xf32>
    %3 = vector.shape_cast %2 : vector<64xf32> to vector<64x1xf32>
    %cst_2 = arith.constant 3.200000e+01 : f32
    %4 = vector.broadcast %cst_2 : f32 to vector<64x1xf32>
    %5 = arith.divf %3, %4 : vector<64x1xf32>
    %6 = vector.broadcast %5 : vector<64x1xf32> to vector<64x32xf32>
    %7 = arith.subf %1, %6 : vector<64x32xf32>
    %8 = arith.mulf %7, %7 : vector<64x32xf32>
    %cst_3 = arith.constant dense<0.000000e+00> : vector<64xf32>
    %9 = vector.multi_reduction <add>, %8, %cst_3 [1] : vector<64x32xf32> to vector<64xf32>
    %10 = vector.shape_cast %9 : vector<64xf32> to vector<64x1xf32>
    %cst_4 = arith.constant 3.200000e+01 : f32
    %11 = vector.broadcast %cst_4 : f32 to vector<64x1xf32>
    %12 = arith.divf %10, %11 : vector<64x1xf32>
    %13 = vector.broadcast %5 : vector<64x1xf32> to vector<64x32xf32>
    %14 = arith.subf %1, %13 : vector<64x32xf32>
    %cst_5 = arith.constant 9.99999974E-6 : f32
    %15 = vector.broadcast %cst_5 : f32 to vector<64x1xf32>
    %16 = arith.addf %12, %15 : vector<64x1xf32>
    %17 = math.rsqrt %16 : vector<64x1xf32>
    %18 = vector.broadcast %17 : vector<64x1xf32> to vector<64x32xf32>
    %19 = arith.mulf %14, %18 : vector<64x32xf32>
    %c0_6 = arith.constant 0 : index
    %c0_7 = arith.constant 0 : index
    %20 = vector.load %arg2[%c0_6, %c0_7] : memref<1x32xf32, #tpu.memory_space<vmem>>, vector<1x32xf32>
    %21 = vector.broadcast %20 : vector<1x32xf32> to vector<64x32xf32>
    %22 = arith.mulf %19, %21 : vector<64x32xf32>
    %c0_8 = arith.constant 0 : index
    %c0_9 = arith.constant 0 : index
    %23 = vector.load %arg3[%c0_8, %c0_9] : memref<1x32xf32, #tpu.memory_space<vmem>>, vector<1x32xf32>
    %24 = vector.broadcast %23 : vector<1x32xf32> to vector<64x32xf32>
    %25 = arith.addf %22, %24 : vector<64x32xf32>
    %26 = arith.truncf %25 : vector<64x32xf32> to vector<64x32xbf16>
    %cst_10 = arith.constant 0.000000e+00 : f32
    %27 = vector.broadcast %cst_10 : f32 to vector<64x32xf32>
    %c0_11 = arith.constant 0 : index
    %c0_12 = arith.constant 0 : index
    %c0_13 = arith.constant 0 : index
    %c0_14 = arith.constant 0 : index
    %28 = vector.load %arg4[%c0_11, %c0_12, %c0_13, %c0_14] : memref<3x4x32x8xbf16, #tpu.memory_space<vmem>>, vector<1x1x32x8xbf16>
    %29 = vector.shape_cast %28 : vector<1x1x32x8xbf16> to vector<32x8xbf16>
    %cst_15 = arith.constant dense<0.000000e+00> : vector<64x8xf32>
    %30 = tpu.matmul %26, %29, %cst_15 {dimension_numbers = #tpu.dot_dimension_numbers<[1], [0], [0], [1], [0, 0, 1, 1], [], []>} : vector<64x32xbf16>, vector<32x8xbf16>, vector<64x8xf32> -> vector<64x8xf32>
    %c0_16 = arith.constant 0 : index
    %c0_17 = arith.constant 0 : index
    %c0_18 = arith.constant 0 : index
    %c0_19 = arith.constant 0 : index
    %31 = vector.load %arg5[%c0_16, %c0_17, %c0_18, %c0_19] : memref<3x4x1x8xf32, #tpu.memory_space<vmem>>, vector<1x1x1x8xf32>
    %32 = vector.shape_cast %31 : vector<1x1x1x8xf32> to vector<1x8xf32>
    %33 = vector.broadcast %32 : vector<1x8xf32> to vector<64x8xf32>
    %34 = arith.addf %30, %33 : vector<64x8xf32>
    %c1 = arith.constant 1 : index
    %c0_20 = arith.constant 0 : index
    %c0_21 = arith.constant 0 : index
    %c0_22 = arith.constant 0 : index
    %35 = vector.load %arg4[%c1, %c0_20, %c0_21, %c0_22] : memref<3x4x32x8xbf16, #tpu.memory_space<vmem>>, vector<1x1x32x8xbf16>
    %36 = vector.shape_cast %35 : vector<1x1x32x8xbf16> to vector<32x8xbf16>
    %cst_23 = arith.constant dense<0.000000e+00> : vector<64x8xf32>
    %37 = tpu.matmul %26, %36, %cst_23 {dimension_numbers = #tpu.dot_dimension_numbers<[1], [0], [0], [1], [0, 0, 1, 1], [], []>} : vector<64x32xbf16>, vector<32x8xbf16>, vector<64x8xf32> -> vector<64x8xf32>
    %c1_24 = arith.constant 1 : index
    %c0_25 = arith.constant 0 : index
    %c0_26 = arith.constant 0 : index
    %c0_27 = arith.constant 0 : index
    %38 = vector.load %arg5[%c1_24, %c0_25, %c0_26, %c0_27] : memref<3x4x1x8xf32, #tpu.memory_space<vmem>>, vector<1x1x1x8xf32>
    %39 = vector.shape_cast %38 : vector<1x1x1x8xf32> to vector<1x8xf32>
    %40 = vector.broadcast %39 : vector<1x8xf32> to vector<64x8xf32>
    %41 = arith.addf %37, %40 : vector<64x8xf32>
    %c2 = arith.constant 2 : index
    %c0_28 = arith.constant 0 : index
    %c0_29 = arith.constant 0 : index
    %c0_30 = arith.constant 0 : index
    %42 = vector.load %arg4[%c2, %c0_28, %c0_29, %c0_30] : memref<3x4x32x8xbf16, #tpu.memory_space<vmem>>, vector<1x1x32x8xbf16>
    %43 = vector.shape_cast %42 : vector<1x1x32x8xbf16> to vector<32x8xbf16>
    %cst_31 = arith.constant dense<0.000000e+00> : vector<64x8xf32>
    %44 = tpu.matmul %26, %43, %cst_31 {dimension_numbers = #tpu.dot_dimension_numbers<[1], [0], [0], [1], [0, 0, 1, 1], [], []>} : vector<64x32xbf16>, vector<32x8xbf16>, vector<64x8xf32> -> vector<64x8xf32>
    %c2_32 = arith.constant 2 : index
    %c0_33 = arith.constant 0 : index
    %c0_34 = arith.constant 0 : index
    %c0_35 = arith.constant 0 : index
    %45 = vector.load %arg5[%c2_32, %c0_33, %c0_34, %c0_35] : memref<3x4x1x8xf32, #tpu.memory_space<vmem>>, vector<1x1x1x8xf32>
    %46 = vector.shape_cast %45 : vector<1x1x1x8xf32> to vector<1x8xf32>
    %47 = vector.broadcast %46 : vector<1x8xf32> to vector<64x8xf32>
    %48 = arith.addf %44, %47 : vector<64x8xf32>
    %49 = arith.truncf %34 : vector<64x8xf32> to vector<64x8xbf16>
    %50 = arith.truncf %41 : vector<64x8xf32> to vector<64x8xbf16>
    %cst_36 = arith.constant dense<0.000000e+00> : vector<64x64xf32>
    %51 = tpu.matmul %49, %50, %cst_36 {dimension_numbers = #tpu.dot_dimension_numbers<[1], [1], [0], [0], [0, 0, 1, 0], [], []>} : vector<64x8xbf16>, vector<64x8xbf16>, vector<64x64xf32> -> vector<64x64xf32>
    %cst_37 = arith.constant 0.353553385 : f32
    %52 = vector.broadcast %cst_37 : f32 to vector<64x64xf32>
    %53 = arith.mulf %51, %52 : vector<64x64xf32>
    %c0_38 = arith.constant 0 : index
    %c0_39 = arith.constant 0 : index
    %c0_40 = arith.constant 0 : index
    %54 = vector.load %arg6[%c0_38, %c0_39, %c0_40] : memref<4x64x64xbf16, #tpu.memory_space<vmem>>, vector<1x64x64xbf16>
    %55 = vector.shape_cast %54 : vector<1x64x64xbf16> to vector<64x64xbf16>
    %56 = arith.extf %55 : vector<64x64xbf16> to vector<64x64xf32>
    %57 = arith.addf %53, %56 : vector<64x64xf32>
    %cst_41 = arith.constant dense<0xFF800000> : vector<64xf32>
    %58 = vector.multi_reduction <maximumf>, %57, %cst_41 [1] : vector<64x64xf32> to vector<64xf32>
    %59 = vector.shape_cast %58 : vector<64xf32> to vector<64x1xf32>
    %60 = vector.broadcast %59 : vector<64x1xf32> to vector<64x64xf32>
    %61 = arith.subf %57, %60 : vector<64x64xf32>
    %62 = math.exp %61 : vector<64x64xf32>
    %cst_42 = arith.constant dense<0.000000e+00> : vector<64xf32>
    %63 = vector.multi_reduction <add>, %62, %cst_42 [1] : vector<64x64xf32> to vector<64xf32>
    %64 = vector.shape_cast %63 : vector<64xf32> to vector<64x1xf32>
    %65 = tpu.reciprocal %64 {approx = true} : vector<64x1xf32> -> vector<64x1xf32>
    %66 = vector.broadcast %65 : vector<64x1xf32> to vector<64x64xf32>
    %67 = arith.mulf %62, %66 : vector<64x64xf32>
    %68 = arith.truncf %67 : vector<64x64xf32> to vector<64x64xbf16>
    %69 = arith.truncf %48 : vector<64x8xf32> to vector<64x8xbf16>
    %cst_43 = arith.constant dense<0.000000e+00> : vector<64x8xf32>
    %70 = tpu.matmul %68, %69, %cst_43 {dimension_numbers = #tpu.dot_dimension_numbers<[1], [0], [0], [1], [0, 0, 1, 1], [], []>} : vector<64x64xbf16>, vector<64x8xbf16>, vector<64x8xf32> -> vector<64x8xf32>
    %71 = arith.truncf %70 : vector<64x8xf32> to vector<64x8xbf16>
    %c0_44 = arith.constant 0 : index
    %c0_45 = arith.constant 0 : index
    %c0_46 = arith.constant 0 : index
    %72 = vector.load %arg7[%c0_44, %c0_45, %c0_46] : memref<4x8x32xbf16, #tpu.memory_space<vmem>>, vector<1x8x32xbf16>
    %73 = vector.shape_cast %72 : vector<1x8x32xbf16> to vector<8x32xbf16>
    %cst_47 = arith.constant dense<0.000000e+00> : vector<64x32xf32>
    %74 = tpu.matmul %71, %73, %cst_47 {dimension_numbers = #tpu.dot_dimension_numbers<[1], [0], [0], [1], [0, 0, 1, 1], [], []>} : vector<64x8xbf16>, vector<8x32xbf16>, vector<64x32xf32> -> vector<64x32xf32>
    %75 = arith.addf %27, %74 : vector<64x32xf32>
    %c0_48 = arith.constant 0 : index
    %c1_49 = arith.constant 1 : index
    %c0_50 = arith.constant 0 : index
    %c0_51 = arith.constant 0 : index
    %76 = vector.load %arg4[%c0_48, %c1_49, %c0_50, %c0_51] : memref<3x4x32x8xbf16, #tpu.memory_space<vmem>>, vector<1x1x32x8xbf16>
    %77 = vector.shape_cast %76 : vector<1x1x32x8xbf16> to vector<32x8xbf16>
    %cst_52 = arith.constant dense<0.000000e+00> : vector<64x8xf32>
    %78 = tpu.matmul %26, %77, %cst_52 {dimension_numbers = #tpu.dot_dimension_numbers<[1], [0], [0], [1], [0, 0, 1, 1], [], []>} : vector<64x32xbf16>, vector<32x8xbf16>, vector<64x8xf32> -> vector<64x8xf32>
    %c0_53 = arith.constant 0 : index
    %c1_54 = arith.constant 1 : index
    %c0_55 = arith.constant 0 : index
    %c0_56 = arith.constant 0 : index
    %79 = vector.load %arg5[%c0_53, %c1_54, %c0_55, %c0_56] : memref<3x4x1x8xf32, #tpu.memory_space<vmem>>, vector<1x1x1x8xf32>
    %80 = vector.shape_cast %79 : vector<1x1x1x8xf32> to vector<1x8xf32>
    %81 = vector.broadcast %80 : vector<1x8xf32> to vector<64x8xf32>
    %82 = arith.addf %78, %81 : vector<64x8xf32>
    %c1_57 = arith.constant 1 : index
    %c1_58 = arith.constant 1 : index
    %c0_59 = arith.constant 0 : index
    %c0_60 = arith.constant 0 : index
    %83 = vector.load %arg4[%c1_57, %c1_58, %c0_59, %c0_60] : memref<3x4x32x8xbf16, #tpu.memory_space<vmem>>, vector<1x1x32x8xbf16>
    %84 = vector.shape_cast %83 : vector<1x1x32x8xbf16> to vector<32x8xbf16>
    %cst_61 = arith.constant dense<0.000000e+00> : vector<64x8xf32>
    %85 = tpu.matmul %26, %84, %cst_61 {dimension_numbers = #tpu.dot_dimension_numbers<[1], [0], [0], [1], [0, 0, 1, 1], [], []>} : vector<64x32xbf16>, vector<32x8xbf16>, vector<64x8xf32> -> vector<64x8xf32>
    %c1_62 = arith.constant 1 : index
    %c1_63 = arith.constant 1 : index
    %c0_64 = arith.constant 0 : index
    %c0_65 = arith.constant 0 : index
    %86 = vector.load %arg5[%c1_62, %c1_63, %c0_64, %c0_65] : memref<3x4x1x8xf32, #tpu.memory_space<vmem>>, vector<1x1x1x8xf32>
    %87 = vector.shape_cast %86 : vector<1x1x1x8xf32> to vector<1x8xf32>
    %88 = vector.broadcast %87 : vector<1x8xf32> to vector<64x8xf32>
    %89 = arith.addf %85, %88 : vector<64x8xf32>
    %c2_66 = arith.constant 2 : index
    %c1_67 = arith.constant 1 : index
    %c0_68 = arith.constant 0 : index
    %c0_69 = arith.constant 0 : index
    %90 = vector.load %arg4[%c2_66, %c1_67, %c0_68, %c0_69] : memref<3x4x32x8xbf16, #tpu.memory_space<vmem>>, vector<1x1x32x8xbf16>
    %91 = vector.shape_cast %90 : vector<1x1x32x8xbf16> to vector<32x8xbf16>
    %cst_70 = arith.constant dense<0.000000e+00> : vector<64x8xf32>
    %92 = tpu.matmul %26, %91, %cst_70 {dimension_numbers = #tpu.dot_dimension_numbers<[1], [0], [0], [1], [0, 0, 1, 1], [], []>} : vector<64x32xbf16>, vector<32x8xbf16>, vector<64x8xf32> -> vector<64x8xf32>
    %c2_71 = arith.constant 2 : index
    %c1_72 = arith.constant 1 : index
    %c0_73 = arith.constant 0 : index
    %c0_74 = arith.constant 0 : index
    %93 = vector.load %arg5[%c2_71, %c1_72, %c0_73, %c0_74] : memref<3x4x1x8xf32, #tpu.memory_space<vmem>>, vector<1x1x1x8xf32>
    %94 = vector.shape_cast %93 : vector<1x1x1x8xf32> to vector<1x8xf32>
    %95 = vector.broadcast %94 : vector<1x8xf32> to vector<64x8xf32>
    %96 = arith.addf %92, %95 : vector<64x8xf32>
    %97 = arith.truncf %82 : vector<64x8xf32> to vector<64x8xbf16>
    %98 = arith.truncf %89 : vector<64x8xf32> to vector<64x8xbf16>
    %cst_75 = arith.constant dense<0.000000e+00> : vector<64x64xf32>
    %99 = tpu.matmul %97, %98, %cst_75 {dimension_numbers = #tpu.dot_dimension_numbers<[1], [1], [0], [0], [0, 0, 1, 0], [], []>} : vector<64x8xbf16>, vector<64x8xbf16>, vector<64x64xf32> -> vector<64x64xf32>
    %cst_76 = arith.constant 0.353553385 : f32
    %100 = vector.broadcast %cst_76 : f32 to vector<64x64xf32>
    %101 = arith.mulf %99, %100 : vector<64x64xf32>
    %c1_77 = arith.constant 1 : index
    %c0_78 = arith.constant 0 : index
    %c0_79 = arith.constant 0 : index
    %102 = vector.load %arg6[%c1_77, %c0_78, %c0_79] : memref<4x64x64xbf16, #tpu.memory_space<vmem>>, vector<1x64x64xbf16>
    %103 = vector.shape_cast %102 : vector<1x64x64xbf16> to vector<64x64xbf16>
    %104 = arith.extf %103 : vector<64x64xbf16> to vector<64x64xf32>
    %105 = arith.addf %101, %104 : vector<64x64xf32>
    %cst_80 = arith.constant dense<0xFF800000> : vector<64xf32>
    %106 = vector.multi_reduction <maximumf>, %105, %cst_80 [1] : vector<64x64xf32> to vector<64xf32>
    %107 = vector.shape_cast %106 : vector<64xf32> to vector<64x1xf32>
    %108 = vector.broadcast %107 : vector<64x1xf32> to vector<64x64xf32>
    %109 = arith.subf %105, %108 : vector<64x64xf32>
    %110 = math.exp %109 : vector<64x64xf32>
    %cst_81 = arith.constant dense<0.000000e+00> : vector<64xf32>
    %111 = vector.multi_reduction <add>, %110, %cst_81 [1] : vector<64x64xf32> to vector<64xf32>
    %112 = vector.shape_cast %111 : vector<64xf32> to vector<64x1xf32>
    %113 = tpu.reciprocal %112 {approx = true} : vector<64x1xf32> -> vector<64x1xf32>
    %114 = vector.broadcast %113 : vector<64x1xf32> to vector<64x64xf32>
    %115 = arith.mulf %110, %114 : vector<64x64xf32>
    %116 = arith.truncf %115 : vector<64x64xf32> to vector<64x64xbf16>
    %117 = arith.truncf %96 : vector<64x8xf32> to vector<64x8xbf16>
    %cst_82 = arith.constant dense<0.000000e+00> : vector<64x8xf32>
    %118 = tpu.matmul %116, %117, %cst_82 {dimension_numbers = #tpu.dot_dimension_numbers<[1], [0], [0], [1], [0, 0, 1, 1], [], []>} : vector<64x64xbf16>, vector<64x8xbf16>, vector<64x8xf32> -> vector<64x8xf32>
    %119 = arith.truncf %118 : vector<64x8xf32> to vector<64x8xbf16>
    %c1_83 = arith.constant 1 : index
    %c0_84 = arith.constant 0 : index
    %c0_85 = arith.constant 0 : index
    %120 = vector.load %arg7[%c1_83, %c0_84, %c0_85] : memref<4x8x32xbf16, #tpu.memory_space<vmem>>, vector<1x8x32xbf16>
    %121 = vector.shape_cast %120 : vector<1x8x32xbf16> to vector<8x32xbf16>
    %cst_86 = arith.constant dense<0.000000e+00> : vector<64x32xf32>
    %122 = tpu.matmul %119, %121, %cst_86 {dimension_numbers = #tpu.dot_dimension_numbers<[1], [0], [0], [1], [0, 0, 1, 1], [], []>} : vector<64x8xbf16>, vector<8x32xbf16>, vector<64x32xf32> -> vector<64x32xf32>
    %123 = arith.addf %75, %122 : vector<64x32xf32>
    %c0_87 = arith.constant 0 : index
    %c2_88 = arith.constant 2 : index
    %c0_89 = arith.constant 0 : index
    %c0_90 = arith.constant 0 : index
    %124 = vector.load %arg4[%c0_87, %c2_88, %c0_89, %c0_90] : memref<3x4x32x8xbf16, #tpu.memory_space<vmem>>, vector<1x1x32x8xbf16>
    %125 = vector.shape_cast %124 : vector<1x1x32x8xbf16> to vector<32x8xbf16>
    %cst_91 = arith.constant dense<0.000000e+00> : vector<64x8xf32>
    %126 = tpu.matmul %26, %125, %cst_91 {dimension_numbers = #tpu.dot_dimension_numbers<[1], [0], [0], [1], [0, 0, 1, 1], [], []>} : vector<64x32xbf16>, vector<32x8xbf16>, vector<64x8xf32> -> vector<64x8xf32>
    %c0_92 = arith.constant 0 : index
    %c2_93 = arith.constant 2 : index
    %c0_94 = arith.constant 0 : index
    %c0_95 = arith.constant 0 : index
    %127 = vector.load %arg5[%c0_92, %c2_93, %c0_94, %c0_95] : memref<3x4x1x8xf32, #tpu.memory_space<vmem>>, vector<1x1x1x8xf32>
    %128 = vector.shape_cast %127 : vector<1x1x1x8xf32> to vector<1x8xf32>
    %129 = vector.broadcast %128 : vector<1x8xf32> to vector<64x8xf32>
    %130 = arith.addf %126, %129 : vector<64x8xf32>
    %c1_96 = arith.constant 1 : index
    %c2_97 = arith.constant 2 : index
    %c0_98 = arith.constant 0 : index
    %c0_99 = arith.constant 0 : index
    %131 = vector.load %arg4[%c1_96, %c2_97, %c0_98, %c0_99] : memref<3x4x32x8xbf16, #tpu.memory_space<vmem>>, vector<1x1x32x8xbf16>
    %132 = vector.shape_cast %131 : vector<1x1x32x8xbf16> to vector<32x8xbf16>
    %cst_100 = arith.constant dense<0.000000e+00> : vector<64x8xf32>
    %133 = tpu.matmul %26, %132, %cst_100 {dimension_numbers = #tpu.dot_dimension_numbers<[1], [0], [0], [1], [0, 0, 1, 1], [], []>} : vector<64x32xbf16>, vector<32x8xbf16>, vector<64x8xf32> -> vector<64x8xf32>
    %c1_101 = arith.constant 1 : index
    %c2_102 = arith.constant 2 : index
    %c0_103 = arith.constant 0 : index
    %c0_104 = arith.constant 0 : index
    %134 = vector.load %arg5[%c1_101, %c2_102, %c0_103, %c0_104] : memref<3x4x1x8xf32, #tpu.memory_space<vmem>>, vector<1x1x1x8xf32>
    %135 = vector.shape_cast %134 : vector<1x1x1x8xf32> to vector<1x8xf32>
    %136 = vector.broadcast %135 : vector<1x8xf32> to vector<64x8xf32>
    %137 = arith.addf %133, %136 : vector<64x8xf32>
    %c2_105 = arith.constant 2 : index
    %c2_106 = arith.constant 2 : index
    %c0_107 = arith.constant 0 : index
    %c0_108 = arith.constant 0 : index
    %138 = vector.load %arg4[%c2_105, %c2_106, %c0_107, %c0_108] : memref<3x4x32x8xbf16, #tpu.memory_space<vmem>>, vector<1x1x32x8xbf16>
    %139 = vector.shape_cast %138 : vector<1x1x32x8xbf16> to vector<32x8xbf16>
    %cst_109 = arith.constant dense<0.000000e+00> : vector<64x8xf32>
    %140 = tpu.matmul %26, %139, %cst_109 {dimension_numbers = #tpu.dot_dimension_numbers<[1], [0], [0], [1], [0, 0, 1, 1], [], []>} : vector<64x32xbf16>, vector<32x8xbf16>, vector<64x8xf32> -> vector<64x8xf32>
    %c2_110 = arith.constant 2 : index
    %c2_111 = arith.constant 2 : index
    %c0_112 = arith.constant 0 : index
    %c0_113 = arith.constant 0 : index
    %141 = vector.load %arg5[%c2_110, %c2_111, %c0_112, %c0_113] : memref<3x4x1x8xf32, #tpu.memory_space<vmem>>, vector<1x1x1x8xf32>
    %142 = vector.shape_cast %141 : vector<1x1x1x8xf32> to vector<1x8xf32>
    %143 = vector.broadcast %142 : vector<1x8xf32> to vector<64x8xf32>
    %144 = arith.addf %140, %143 : vector<64x8xf32>
    %145 = arith.truncf %130 : vector<64x8xf32> to vector<64x8xbf16>
    %146 = arith.truncf %137 : vector<64x8xf32> to vector<64x8xbf16>
    %cst_114 = arith.constant dense<0.000000e+00> : vector<64x64xf32>
    %147 = tpu.matmul %145, %146, %cst_114 {dimension_numbers = #tpu.dot_dimension_numbers<[1], [1], [0], [0], [0, 0, 1, 0], [], []>} : vector<64x8xbf16>, vector<64x8xbf16>, vector<64x64xf32> -> vector<64x64xf32>
    %cst_115 = arith.constant 0.353553385 : f32
    %148 = vector.broadcast %cst_115 : f32 to vector<64x64xf32>
    %149 = arith.mulf %147, %148 : vector<64x64xf32>
    %c2_116 = arith.constant 2 : index
    %c0_117 = arith.constant 0 : index
    %c0_118 = arith.constant 0 : index
    %150 = vector.load %arg6[%c2_116, %c0_117, %c0_118] : memref<4x64x64xbf16, #tpu.memory_space<vmem>>, vector<1x64x64xbf16>
    %151 = vector.shape_cast %150 : vector<1x64x64xbf16> to vector<64x64xbf16>
    %152 = arith.extf %151 : vector<64x64xbf16> to vector<64x64xf32>
    %153 = arith.addf %149, %152 : vector<64x64xf32>
    %cst_119 = arith.constant dense<0xFF800000> : vector<64xf32>
    %154 = vector.multi_reduction <maximumf>, %153, %cst_119 [1] : vector<64x64xf32> to vector<64xf32>
    %155 = vector.shape_cast %154 : vector<64xf32> to vector<64x1xf32>
    %156 = vector.broadcast %155 : vector<64x1xf32> to vector<64x64xf32>
    %157 = arith.subf %153, %156 : vector<64x64xf32>
    %158 = math.exp %157 : vector<64x64xf32>
    %cst_120 = arith.constant dense<0.000000e+00> : vector<64xf32>
    %159 = vector.multi_reduction <add>, %158, %cst_120 [1] : vector<64x64xf32> to vector<64xf32>
    %160 = vector.shape_cast %159 : vector<64xf32> to vector<64x1xf32>
    %161 = tpu.reciprocal %160 {approx = true} : vector<64x1xf32> -> vector<64x1xf32>
    %162 = vector.broadcast %161 : vector<64x1xf32> to vector<64x64xf32>
    %163 = arith.mulf %158, %162 : vector<64x64xf32>
    %164 = arith.truncf %163 : vector<64x64xf32> to vector<64x64xbf16>
    %165 = arith.truncf %144 : vector<64x8xf32> to vector<64x8xbf16>
    %cst_121 = arith.constant dense<0.000000e+00> : vector<64x8xf32>
    %166 = tpu.matmul %164, %165, %cst_121 {dimension_numbers = #tpu.dot_dimension_numbers<[1], [0], [0], [1], [0, 0, 1, 1], [], []>} : vector<64x64xbf16>, vector<64x8xbf16>, vector<64x8xf32> -> vector<64x8xf32>
    %167 = arith.truncf %166 : vector<64x8xf32> to vector<64x8xbf16>
    %c2_122 = arith.constant 2 : index
    %c0_123 = arith.constant 0 : index
    %c0_124 = arith.constant 0 : index
    %168 = vector.load %arg7[%c2_122, %c0_123, %c0_124] : memref<4x8x32xbf16, #tpu.memory_space<vmem>>, vector<1x8x32xbf16>
    %169 = vector.shape_cast %168 : vector<1x8x32xbf16> to vector<8x32xbf16>
    %cst_125 = arith.constant dense<0.000000e+00> : vector<64x32xf32>
    %170 = tpu.matmul %167, %169, %cst_125 {dimension_numbers = #tpu.dot_dimension_numbers<[1], [0], [0], [1], [0, 0, 1, 1], [], []>} : vector<64x8xbf16>, vector<8x32xbf16>, vector<64x32xf32> -> vector<64x32xf32>
    %171 = arith.addf %123, %170 : vector<64x32xf32>
    %c0_126 = arith.constant 0 : index
    %c3 = arith.constant 3 : index
    %c0_127 = arith.constant 0 : index
    %c0_128 = arith.constant 0 : index
    %172 = vector.load %arg4[%c0_126, %c3, %c0_127, %c0_128] : memref<3x4x32x8xbf16, #tpu.memory_space<vmem>>, vector<1x1x32x8xbf16>
    %173 = vector.shape_cast %172 : vector<1x1x32x8xbf16> to vector<32x8xbf16>
    %cst_129 = arith.constant dense<0.000000e+00> : vector<64x8xf32>
    %174 = tpu.matmul %26, %173, %cst_129 {dimension_numbers = #tpu.dot_dimension_numbers<[1], [0], [0], [1], [0, 0, 1, 1], [], []>} : vector<64x32xbf16>, vector<32x8xbf16>, vector<64x8xf32> -> vector<64x8xf32>
    %c0_130 = arith.constant 0 : index
    %c3_131 = arith.constant 3 : index
    %c0_132 = arith.constant 0 : index
    %c0_133 = arith.constant 0 : index
    %175 = vector.load %arg5[%c0_130, %c3_131, %c0_132, %c0_133] : memref<3x4x1x8xf32, #tpu.memory_space<vmem>>, vector<1x1x1x8xf32>
    %176 = vector.shape_cast %175 : vector<1x1x1x8xf32> to vector<1x8xf32>
    %177 = vector.broadcast %176 : vector<1x8xf32> to vector<64x8xf32>
    %178 = arith.addf %174, %177 : vector<64x8xf32>
    %c1_134 = arith.constant 1 : index
    %c3_135 = arith.constant 3 : index
    %c0_136 = arith.constant 0 : index
    %c0_137 = arith.constant 0 : index
    %179 = vector.load %arg4[%c1_134, %c3_135, %c0_136, %c0_137] : memref<3x4x32x8xbf16, #tpu.memory_space<vmem>>, vector<1x1x32x8xbf16>
    %180 = vector.shape_cast %179 : vector<1x1x32x8xbf16> to vector<32x8xbf16>
    %cst_138 = arith.constant dense<0.000000e+00> : vector<64x8xf32>
    %181 = tpu.matmul %26, %180, %cst_138 {dimension_numbers = #tpu.dot_dimension_numbers<[1], [0], [0], [1], [0, 0, 1, 1], [], []>} : vector<64x32xbf16>, vector<32x8xbf16>, vector<64x8xf32> -> vector<64x8xf32>
    %c1_139 = arith.constant 1 : index
    %c3_140 = arith.constant 3 : index
    %c0_141 = arith.constant 0 : index
    %c0_142 = arith.constant 0 : index
    %182 = vector.load %arg5[%c1_139, %c3_140, %c0_141, %c0_142] : memref<3x4x1x8xf32, #tpu.memory_space<vmem>>, vector<1x1x1x8xf32>
    %183 = vector.shape_cast %182 : vector<1x1x1x8xf32> to vector<1x8xf32>
    %184 = vector.broadcast %183 : vector<1x8xf32> to vector<64x8xf32>
    %185 = arith.addf %181, %184 : vector<64x8xf32>
    %c2_143 = arith.constant 2 : index
    %c3_144 = arith.constant 3 : index
    %c0_145 = arith.constant 0 : index
    %c0_146 = arith.constant 0 : index
    %186 = vector.load %arg4[%c2_143, %c3_144, %c0_145, %c0_146] : memref<3x4x32x8xbf16, #tpu.memory_space<vmem>>, vector<1x1x32x8xbf16>
    %187 = vector.shape_cast %186 : vector<1x1x32x8xbf16> to vector<32x8xbf16>
    %cst_147 = arith.constant dense<0.000000e+00> : vector<64x8xf32>
    %188 = tpu.matmul %26, %187, %cst_147 {dimension_numbers = #tpu.dot_dimension_numbers<[1], [0], [0], [1], [0, 0, 1, 1], [], []>} : vector<64x32xbf16>, vector<32x8xbf16>, vector<64x8xf32> -> vector<64x8xf32>
    %c2_148 = arith.constant 2 : index
    %c3_149 = arith.constant 3 : index
    %c0_150 = arith.constant 0 : index
    %c0_151 = arith.constant 0 : index
    %189 = vector.load %arg5[%c2_148, %c3_149, %c0_150, %c0_151] : memref<3x4x1x8xf32, #tpu.memory_space<vmem>>, vector<1x1x1x8xf32>
    %190 = vector.shape_cast %189 : vector<1x1x1x8xf32> to vector<1x8xf32>
    %191 = vector.broadcast %190 : vector<1x8xf32> to vector<64x8xf32>
    %192 = arith.addf %188, %191 : vector<64x8xf32>
    %193 = arith.truncf %178 : vector<64x8xf32> to vector<64x8xbf16>
    %194 = arith.truncf %185 : vector<64x8xf32> to vector<64x8xbf16>
    %cst_152 = arith.constant dense<0.000000e+00> : vector<64x64xf32>
    %195 = tpu.matmul %193, %194, %cst_152 {dimension_numbers = #tpu.dot_dimension_numbers<[1], [1], [0], [0], [0, 0, 1, 0], [], []>} : vector<64x8xbf16>, vector<64x8xbf16>, vector<64x64xf32> -> vector<64x64xf32>
    %cst_153 = arith.constant 0.353553385 : f32
    %196 = vector.broadcast %cst_153 : f32 to vector<64x64xf32>
    %197 = arith.mulf %195, %196 : vector<64x64xf32>
    %c3_154 = arith.constant 3 : index
    %c0_155 = arith.constant 0 : index
    %c0_156 = arith.constant 0 : index
    %198 = vector.load %arg6[%c3_154, %c0_155, %c0_156] : memref<4x64x64xbf16, #tpu.memory_space<vmem>>, vector<1x64x64xbf16>
    %199 = vector.shape_cast %198 : vector<1x64x64xbf16> to vector<64x64xbf16>
    %200 = arith.extf %199 : vector<64x64xbf16> to vector<64x64xf32>
    %201 = arith.addf %197, %200 : vector<64x64xf32>
    %cst_157 = arith.constant dense<0xFF800000> : vector<64xf32>
    %202 = vector.multi_reduction <maximumf>, %201, %cst_157 [1] : vector<64x64xf32> to vector<64xf32>
    %203 = vector.shape_cast %202 : vector<64xf32> to vector<64x1xf32>
    %204 = vector.broadcast %203 : vector<64x1xf32> to vector<64x64xf32>
    %205 = arith.subf %201, %204 : vector<64x64xf32>
    %206 = math.exp %205 : vector<64x64xf32>
    %cst_158 = arith.constant dense<0.000000e+00> : vector<64xf32>
    %207 = vector.multi_reduction <add>, %206, %cst_158 [1] : vector<64x64xf32> to vector<64xf32>
    %208 = vector.shape_cast %207 : vector<64xf32> to vector<64x1xf32>
    %209 = tpu.reciprocal %208 {approx = true} : vector<64x1xf32> -> vector<64x1xf32>
    %210 = vector.broadcast %209 : vector<64x1xf32> to vector<64x64xf32>
    %211 = arith.mulf %206, %210 : vector<64x64xf32>
    %212 = arith.truncf %211 : vector<64x64xf32> to vector<64x64xbf16>
    %213 = arith.truncf %192 : vector<64x8xf32> to vector<64x8xbf16>
    %cst_159 = arith.constant dense<0.000000e+00> : vector<64x8xf32>
    %214 = tpu.matmul %212, %213, %cst_159 {dimension_numbers = #tpu.dot_dimension_numbers<[1], [0], [0], [1], [0, 0, 1, 1], [], []>} : vector<64x64xbf16>, vector<64x8xbf16>, vector<64x8xf32> -> vector<64x8xf32>
    %215 = arith.truncf %214 : vector<64x8xf32> to vector<64x8xbf16>
    %c3_160 = arith.constant 3 : index
    %c0_161 = arith.constant 0 : index
    %c0_162 = arith.constant 0 : index
    %216 = vector.load %arg7[%c3_160, %c0_161, %c0_162] : memref<4x8x32xbf16, #tpu.memory_space<vmem>>, vector<1x8x32xbf16>
    %217 = vector.shape_cast %216 : vector<1x8x32xbf16> to vector<8x32xbf16>
    %cst_163 = arith.constant dense<0.000000e+00> : vector<64x32xf32>
    %218 = tpu.matmul %215, %217, %cst_163 {dimension_numbers = #tpu.dot_dimension_numbers<[1], [0], [0], [1], [0, 0, 1, 1], [], []>} : vector<64x8xbf16>, vector<8x32xbf16>, vector<64x32xf32> -> vector<64x32xf32>
    %219 = arith.addf %171, %218 : vector<64x32xf32>
    %220 = arith.addf %1, %219 : vector<64x32xf32>
    %c0_164 = arith.constant 0 : index
    %c0_165 = arith.constant 0 : index
    %221 = vector.load %arg8[%c0_164, %c0_165] : memref<1x32xf32, #tpu.memory_space<vmem>>, vector<1x32xf32>
    %222 = vector.broadcast %221 : vector<1x32xf32> to vector<64x32xf32>
    %223 = arith.addf %220, %222 : vector<64x32xf32>
    %cst_166 = arith.constant dense<0.000000e+00> : vector<64xf32>
    %224 = vector.multi_reduction <add>, %223, %cst_166 [1] : vector<64x32xf32> to vector<64xf32>
    %225 = vector.shape_cast %224 : vector<64xf32> to vector<64x1xf32>
    %cst_167 = arith.constant 3.200000e+01 : f32
    %226 = vector.broadcast %cst_167 : f32 to vector<64x1xf32>
    %227 = arith.divf %225, %226 : vector<64x1xf32>
    %228 = vector.broadcast %227 : vector<64x1xf32> to vector<64x32xf32>
    %229 = arith.subf %223, %228 : vector<64x32xf32>
    %230 = arith.mulf %229, %229 : vector<64x32xf32>
    %cst_168 = arith.constant dense<0.000000e+00> : vector<64xf32>
    %231 = vector.multi_reduction <add>, %230, %cst_168 [1] : vector<64x32xf32> to vector<64xf32>
    %232 = vector.shape_cast %231 : vector<64xf32> to vector<64x1xf32>
    %cst_169 = arith.constant 3.200000e+01 : f32
    %233 = vector.broadcast %cst_169 : f32 to vector<64x1xf32>
    %234 = arith.divf %232, %233 : vector<64x1xf32>
    %235 = vector.broadcast %227 : vector<64x1xf32> to vector<64x32xf32>
    %236 = arith.subf %223, %235 : vector<64x32xf32>
    %cst_170 = arith.constant 9.99999974E-6 : f32
    %237 = vector.broadcast %cst_170 : f32 to vector<64x1xf32>
    %238 = arith.addf %234, %237 : vector<64x1xf32>
    %239 = math.rsqrt %238 : vector<64x1xf32>
    %240 = vector.broadcast %239 : vector<64x1xf32> to vector<64x32xf32>
    %241 = arith.mulf %236, %240 : vector<64x32xf32>
    %c0_171 = arith.constant 0 : index
    %c0_172 = arith.constant 0 : index
    %242 = vector.load %arg9[%c0_171, %c0_172] : memref<1x32xf32, #tpu.memory_space<vmem>>, vector<1x32xf32>
    %243 = vector.broadcast %242 : vector<1x32xf32> to vector<64x32xf32>
    %244 = arith.mulf %241, %243 : vector<64x32xf32>
    %c0_173 = arith.constant 0 : index
    %c0_174 = arith.constant 0 : index
    %245 = vector.load %arg10[%c0_173, %c0_174] : memref<1x32xf32, #tpu.memory_space<vmem>>, vector<1x32xf32>
    %246 = vector.broadcast %245 : vector<1x32xf32> to vector<64x32xf32>
    %247 = arith.addf %244, %246 : vector<64x32xf32>
    %248 = arith.truncf %247 : vector<64x32xf32> to vector<64x32xbf16>
    %c0_175 = arith.constant 0 : index
    %c0_176 = arith.constant 0 : index
    %249 = vector.load %arg11[%c0_175, %c0_176] : memref<32x128xbf16, #tpu.memory_space<vmem>>, vector<32x128xbf16>
    %cst_177 = arith.constant dense<0.000000e+00> : vector<64x128xf32>
    %250 = tpu.matmul %248, %249, %cst_177 {dimension_numbers = #tpu.dot_dimension_numbers<[1], [0], [0], [1], [0, 0, 1, 1], [], []>} : vector<64x32xbf16>, vector<32x128xbf16>, vector<64x128xf32> -> vector<64x128xf32>
    %c0_178 = arith.constant 0 : index
    %c0_179 = arith.constant 0 : index
    %251 = vector.load %arg12[%c0_178, %c0_179] : memref<1x128xf32, #tpu.memory_space<vmem>>, vector<1x128xf32>
    %252 = vector.broadcast %251 : vector<1x128xf32> to vector<64x128xf32>
    %253 = arith.addf %250, %252 : vector<64x128xf32>
    %254 = arith.mulf %253, %253 : vector<64x128xf32>
    %255 = arith.mulf %253, %254 : vector<64x128xf32>
    %cst_180 = arith.constant 4.471500e-02 : f32
    %256 = vector.broadcast %cst_180 : f32 to vector<64x128xf32>
    %257 = arith.mulf %256, %255 : vector<64x128xf32>
    %258 = arith.addf %253, %257 : vector<64x128xf32>
    %cst_181 = arith.constant 0.797884583 : f32
    %259 = vector.broadcast %cst_181 : f32 to vector<64x128xf32>
    %260 = arith.mulf %259, %258 : vector<64x128xf32>
    %261 = math.tanh %260 : vector<64x128xf32>
    %cst_182 = arith.constant 1.000000e+00 : f32
    %262 = vector.broadcast %cst_182 : f32 to vector<64x128xf32>
    %263 = arith.addf %262, %261 : vector<64x128xf32>
    %cst_183 = arith.constant 5.000000e-01 : f32
    %264 = vector.broadcast %cst_183 : f32 to vector<64x128xf32>
    %265 = arith.mulf %264, %263 : vector<64x128xf32>
    %266 = arith.mulf %253, %265 : vector<64x128xf32>
    %267 = arith.truncf %266 : vector<64x128xf32> to vector<64x128xbf16>
    %c0_184 = arith.constant 0 : index
    %c0_185 = arith.constant 0 : index
    %268 = vector.load %arg13[%c0_184, %c0_185] : memref<128x32xbf16, #tpu.memory_space<vmem>>, vector<128x32xbf16>
    %cst_186 = arith.constant dense<0.000000e+00> : vector<64x32xf32>
    %269 = tpu.matmul %267, %268, %cst_186 {dimension_numbers = #tpu.dot_dimension_numbers<[1], [0], [0], [1], [0, 0, 1, 1], [], []>} : vector<64x128xbf16>, vector<128x32xbf16>, vector<64x32xf32> -> vector<64x32xf32>
    %270 = arith.addf %223, %269 : vector<64x32xf32>
    %c0_187 = arith.constant 0 : index
    %c0_188 = arith.constant 0 : index
    %271 = vector.load %arg14[%c0_187, %c0_188] : memref<1x32xf32, #tpu.memory_space<vmem>>, vector<1x32xf32>
    %272 = vector.broadcast %271 : vector<1x32xf32> to vector<64x32xf32>
    %273 = arith.addf %270, %272 : vector<64x32xf32>
    %c0_189 = arith.constant 0 : index
    %c0_190 = arith.constant 0 : index
    %c0_191 = arith.constant 0 : index
    %274 = vector.load %arg15[%c0_189, %c0_190, %c0_191] : memref<1x64x32xf32, #tpu.memory_space<vmem>>, vector<1x64x32xf32>
    %275 = vector.shape_cast %274 : vector<1x64x32xf32> to vector<64x32xf32>
    %276 = vector.shape_cast %273 : vector<64x32xf32> to vector<1x64x32xf32>
    tpu.vector_store %arg15[%c0_189, %c0_190, %c0_191], %276 {strides = array<i32>} : memref<1x64x32xf32, #tpu.memory_space<vmem>>, vector<1x64x32xf32>,
    return
  }
  func.func @transform_0(%arg0: i32) -> (i32, i32, i32) {
    %c0_i32 = arith.constant 0 : i32
    %c0_i32_0 = arith.constant 0 : i32
    %c0_i32_1 = arith.constant 0 : i32
    return %arg0, %c0_i32, %c0_i32_0 : i32, i32, i32
  }
  func.func @transform_1(%arg0: i32) -> (i32, i32) {
    %c0_i32 = arith.constant 0 : i32
    %c0_i32_0 = arith.constant 0 : i32
    %c0_i32_1 = arith.constant 0 : i32
    return %c0_i32, %c0_i32_0 : i32, i32
  }
  func.func @transform_2(%arg0: i32) -> (i32, i32) {
    %c0_i32 = arith.constant 0 : i32
    %c0_i32_0 = arith.constant 0 : i32
    %c0_i32_1 = arith.constant 0 : i32
    return %c0_i32, %c0_i32_0 : i32, i32
  }
  func.func @transform_3(%arg0: i32) -> (i32, i32, i32, i32) {
    %c0_i32 = arith.constant 0 : i32
    %c0_i32_0 = arith.constant 0 : i32
    %c0_i32_1 = arith.constant 0 : i32
    %c0_i32_2 = arith.constant 0 : i32
    %c0_i32_3 = arith.constant 0 : i32
    return %c0_i32, %c0_i32_0, %c0_i32_1, %c0_i32_2 : i32, i32, i32, i32
  }
  func.func @transform_4(%arg0: i32) -> (i32, i32, i32, i32) {
    %c0_i32 = arith.constant 0 : i32
    %c0_i32_0 = arith.constant 0 : i32
    %c0_i32_1 = arith.constant 0 : i32
    %c0_i32_2 = arith.constant 0 : i32
    %c0_i32_3 = arith.constant 0 : i32
    return %c0_i32, %c0_i32_0, %c0_i32_1, %c0_i32_2 : i32, i32, i32, i32
  }
  func.func @transform_5(%arg0: i32) -> (i32, i32, i32) {
    %c0_i32 = arith.constant 0 : i32
    %c0_i32_0 = arith.constant 0 : i32
    %c0_i32_1 = arith.constant 0 : i32
    %c0_i32_2 = arith.constant 0 : i32
    return %c0_i32, %c0_i32_0, %c0_i32_1 : i32, i32, i32
  }
  func.func @transform_6(%arg0: i32) -> (i32, i32, i32) {
    %c0_i32 = arith.constant 0 : i32
    %c0_i32_0 = arith.constant 0 : i32
    %c0_i32_1 = arith.constant 0 : i32
    %c0_i32_2 = arith.constant 0 : i32
    return %c0_i32, %c0_i32_0, %c0_i32_1 : i32, i32, i32
  }
  func.func @transform_7(%arg0: i32) -> (i32, i32) {
    %c0_i32 = arith.constant 0 : i32
    %c0_i32_0 = arith.constant 0 : i32
    %c0_i32_1 = arith.constant 0 : i32
    return %c0_i32, %c0_i32_0 : i32, i32
  }
  func.func @transform_8(%arg0: i32) -> (i32, i32) {
    %c0_i32 = arith.constant 0 : i32
    %c0_i32_0 = arith.constant 0 : i32
    %c0_i32_1 = arith.constant 0 : i32
    return %c0_i32, %c0_i32_0 : i32, i32
  }
  func.func @transform_9(%arg0: i32) -> (i32, i32) {
    %c0_i32 = arith.constant 0 : i32
    %c0_i32_0 = arith.constant 0 : i32
    %c0_i32_1 = arith.constant 0 : i32
    return %c0_i32, %c0_i32_0 : i32, i32
  }
  func.func @transform_10(%arg0: i32) -> (i32, i32) {
    %c0_i32 = arith.constant 0 : i32
    %c0_i32_0 = arith.constant 0 : i32
    %c0_i32_1 = arith.constant 0 : i32
    return %c0_i32, %c0_i32_0 : i32, i32
  }
  func.func @transform_11(%arg0: i32) -> (i32, i32) {
    %c0_i32 = arith.constant 0 : i32
    %c0_i32_0 = arith.constant 0 : i32
    %c0_i32_1 = arith.constant 0 : i32
    return %c0_i32, %c0_i32_0 : i32, i32
  }
  func.func @transform_12(%arg0: i32) -> (i32, i32) {
    %c0_i32 = arith.constant 0 : i32
    %c0_i32_0 = arith.constant 0 : i32
    %c0_i32_1 = arith.constant 0 : i32
    return %c0_i32, %c0_i32_0 : i32, i32
  }
  func.func @transform_13(%arg0: i32) -> (i32, i32) {
    %c0_i32 = arith.constant 0 : i32
    %c0_i32_0 = arith.constant 0 : i32
    %c0_i32_1 = arith.constant 0 : i32
    return %c0_i32, %c0_i32_0 : i32, i32
  }
  func.func @transform_14(%arg0: i32) -> (i32, i32, i32) {
    %c0_i32 = arith.constant 0 : i32
    %c0_i32_0 = arith.constant 0 : i32
    %c0_i32_1 = arith.constant 0 : i32
    return %arg0, %c0_i32, %c0_i32_0 : i32, i32, i32
  }
}

</mosaic_0001>

<bundles_post_ra>
// kernel: nsa_block_forward.1
= control target key start
LH: loop header
LB: loop body
LE: loop exit
PB: predicated region body
PF: predicated region fallthrough
CT: control target
= control target key end

     0   :  { %19 = vsyncpa [#allocation3], 0  ;;  %s6452_s0 = inlined_call_operand.vmem [shape: f32[2,64,32], index: 0, kind: input, shape index: {}]   ;;  %s6453_s1 = inlined_call_operand.vmem [shape: f32[1,32], index: 1, kind: input, shape index: {}]   ;;  %s6454_s2 = inlined_call_operand.vmem [shape: f32[1,32], index: 2, kind: input, shape index: {}]   ;;  %s6455_s3 = inlined_call_operand.vmem [shape: bf16[3,4,32,8], index: 3, kind: input, shape index: {}]   ;;  %s6456_s4 = inlined_call_operand.hbm [shape: f32[3,4,1,8], index: 4, kind: input, shape index: {}]   ;;  %s6457_s5 = inlined_call_operand.vmem [shape: bf16[4,64,64], index: 5, kind: input, shape index: {}]   ;;  %s6458_s6 = inlined_call_operand.vmem [shape: bf16[4,8,32], index: 6, kind: input, shape index: {}]   ;;  %s6459_s7 = inlined_call_operand.vmem [shape: f32[1,32], index: 7, kind: input, shape index: {}]   ;;  %s6460_s8 = inlined_call_operand.vmem [shape: f32[1,32], index: 8, kind: input, shape index: {}]   ;;  %s6461_s9 = inlined_call_operand.vmem [shape: f32[1,32], index: 9, kind: input, shape index: {}]   ;;  %s6462_s10 = inlined_call_operand.hbm [shape: bf16[32,128], index: 10, kind: input, shape index: {}]   ;;  %s6463_s11 = inlined_call_operand.hbm [shape: f32[1,128], index: 11, kind: input, shape index: {}]   ;;  %s6464_s12 = inlined_call_operand.vmem [shape: bf16[128,32], index: 12, kind: input, shape index: {}]   ;;  %s6465_s13 = inlined_call_operand.hbm [shape: f32[1,32], index: 13, kind: input, shape index: {}]   ;;  %s6466_s14 = inlined_call_operand.hbm [shape: f32[2,64,32], index: 14, kind: output, shape index: {}]  }
   0x1   :  { %20 = vsyncpa [#allocation6], 0 }
   0x2   :  { %21 = vsyncpa [#allocation9], 0 }
   0x3   :  { %22 = vsyncpa [#allocation4], 0 }
   0x4   :  { %24 = vsyncpa [#allocation4 + $0x1], 0  ;;  %s5385_s29 = smov 0   ;;  %s5387_s30 = smov 0  }
   0x5   :  { %s5389_s15 = smov 0   ;;  %s5391_s16 = smov 0  }
   0x6 LB: > { %6475 = sst [smem:[#allocation15_spill]] %s5285_s29  ;;  %s5406_s17 = sadd.s32 4294967295, %s5297_s16   ;;  %s5297_s16 = sphi %s5391_s16, %s6496_s16   ;;  %s5293_s15 = sphi %s5389_s15, %s6498_s15   ;;  %s5289_s30 = sphi %s5387_s30, %s6500_s30   ;;  %s5285_s29 = sphi %s5385_s29, %s6499_s29  }
   0x7   : > { %6476 = sst [smem:[#allocation16_spill]] %s5293_s15  ;;  %s3947_s18 = sadd.s32 4294967294, %s5297_s16  }
   0x8   : > { %6477 = sst [smem:[#allocation17_spill]] %s5297_s16  ;;  %s5410_s19 = sadd.s32 1, %s5297_s16  }
   0x9   : > { %6478 = sst [smem:[#allocation18_spill]] %s5410_s19  ;;  %s336_s20 = sadd.s32 1, %s5293_s15 }
   0xa   : > { %s333_s21 = ssub.s32 %s5297_s16, %s5410_s19  ;;  %p346_p0 = scmp.ne.s32.totalorder %s5293_s15, %s5289_s30 }
   0xb   : > { %p334_p1 = scmp.eq.s32.totalorder %s333_s21, 0  ;;  %p347_p2 = scmp.eq.s32.totalorder %s5406_s17, 1 }
   0xc   : > { %p352_p3 = scmp.ne.s32.totalorder %s5289_s30, %s5285_s29  ;;  %p353_p4 = scmp.eq.s32.totalorder %s3947_s18, 1 }
   0xd   : > { %s5421_s22 = scalar_select %p334_p1, %s5293_s15, %s336_s20  }
   0xe   : > { %p5423_p5 = por %p347_p2, %p346_p0  ;;  %p5427_p6 = por %p353_p4, %p352_p3 }
   0xf   : > { %6479 = sst [smem:[#allocation19_spill]] %s5421_s22  ;;  %p3948_p7 = scmp.ge.s32.totalorder %s5297_s16, 1 }
  0x10   : > { %s6480_s23 = scalar_select %p5423_p5, 1, 0 }
  0x11   : > { %s6481_s24 = scalar_select %p5427_p6, 1, 0 }
  0x12   : > { %p360_p8 = scmp.lt.s32.totalorder %s5297_s16, 3  ;;  %p6470_p9 = scmp.eq.s32.totalorder %s5406_s17, 0 }
  0x13   : > { %6482 = sst [smem:[#allocation20_spill]] %s6481_s24  ;;  %s5299_s26 = smov [#allocation5]  }
  0x14   : > { %p5434_p10 = pnand %p3948_p7, %p360_p8  ;;  %s409_s27 = sshll.u32 %s5299_s26, 4  ;;  %s410_s27 = int_to_ptr.vmem [resolvable:$true] %s409_s27 }
  0x15   : > { %s5300_s18 = smov [#allocation2]   ;;  %s5132_s21 = scalar_lea.vmem %s410_s27, 256 }
  0x16   : > { %p4835_p11 = pneg %p5434_p10  ;;  %s381_s20 = sshll.u32 %s5300_s18, 4  ;;  %s382_s20 = int_to_ptr.vmem [resolvable:$true] %s381_s20 }
  0x17   : > { %p5133_p0 = scmp.ne.s32.totalorder %s410_s27, %s5132_s21  ;;  %p5140_p3 = scmp.lt.s32.totalorder %s410_s27, %s410_s27 }
  0x18   : > { %p5442_p12 = pnand %p6470_p9, %p4835_p11  ;;  %p5141_p4 = scmp.lt.s32.totalorder %s5132_s21, %s5132_s21 }
  0x1a   : > { %p5123_p13 = pneg %p5442_p12  ;;  %p5142_p7 = por %p5141_p4, %p5140_p3 }
  0x1c   : > { %p5135_p1 = pnand %p5133_p0, %p5123_p13 }
  0x1e   : > { %p5136_p2 = pneg %p5135_p1 }
  0x20   : > { %p5143_p8 = pnand %p5142_p7, %p5136_p2 }
  0x22   : > { %5146 = shalt.err (!%p5143_p8)
}
  0x23   : > { %s5301_s26 = smov 64   ;;  %s5302_s22 = smov 4  }
  0x24   : > { %4841 = dma.hbm_to_vmem [thread:$0]  (!%p5442_p12), %s6462_s10, 256, %s410_s27, [#allocation6], %s5301_s26, %s5301_s26, %s5302_s22  }
  0x25   : > { %s5158_s19 = scalar_lea.vmem %s382_s20, 192  ;;  %p5166_p9 = scmp.lt.s32.totalorder %s382_s20, %s382_s20 }
  0x26   : > { %p5159_p11 = scmp.ne.s32.totalorder %s382_s20, %s5158_s19  ;;  %p5167_p6 = scmp.lt.s32.totalorder %s5158_s19, %s5158_s19 }
  0x28   : > { %p5161_p0 = pnand %p5159_p11, %p5123_p13  ;;  %p5168_p3 = por %p5167_p6, %p5166_p9 }
  0x2a   : > { %p5162_p1 = pneg %p5161_p0 }
  0x2c   : > { %p5169_p2 = pnand %p5168_p3, %p5162_p1 }
  0x2e   : > { %5172 = shalt.err (!%p5169_p2)
}
  0x2f   : > { %s5303_s21 = smov 16   ;;  %s5304_s24 = smov 1  }
  0x30   : > { %4838 = dma.hbm_to_vmem [thread:$0]  (!%p5442_p12), %s6456_s4, 192, %s382_s20, [#allocation3], %s5303_s21, %s5303_s21, %s5304_s24  }
  0x31   : > { %s5305_s15 = smov [#allocation7]   ;;  %s5306_s27 = smov [#allocation8]  }
  0x32   : > { %s423_s22 = sshll.u32 %s5305_s15, 4  ;;  %s437_s26 = sshll.u32 %s5306_s27, 4  ;;  %s424_s22 = int_to_ptr.vmem [resolvable:$true] %s423_s22  ;;  %s438_s26 = int_to_ptr.vmem [resolvable:$true] %s437_s26 }
  0x33   : > { %s5184_s18 = scalar_lea.vmem %s424_s22, 16  ;;  %s5191_s19 = scalar_lea.vmem %s424_s22, 32 }
  0x34   : > { %p5185_p4 = scmp.ne.s32.totalorder %s424_s22, %s5184_s18  ;;  %p5192_p7 = scmp.lt.s32.totalorder %s424_s22, %s424_s22 }
  0x35   : > { %p5193_p8 = scmp.lt.s32.totalorder %s5191_s19, %s5184_s18 }
  0x36   : > { %p5187_p6 = pnand %p5185_p4, %p5123_p13 }
  0x37   : > { %p5194_p11 = por %p5193_p8, %p5192_p7 }
  0x38   : > { %p5188_p9 = pneg %p5187_p6 }
  0x3a   : > { %p5195_p0 = pnand %p5194_p11, %p5188_p9 }
  0x3c   : > { %5198 = shalt.err (!%p5195_p0)
}
  0x3d   : > { %4844 = dma.hbm_to_vmem [thread:$0]  (!%p5442_p12), %s6463_s11, 16, %s424_s22, [#allocation6]  }
  0x3e   : > { %s5210_s24 = scalar_lea.vmem %s438_s26, 16  ;;  %s5217_s20 = scalar_lea.vmem %s438_s26, 32 }
  0x3f   : > { %p5211_p1 = scmp.ne.s32.totalorder %s438_s26, %s5210_s24  ;;  %p5218_p4 = scmp.lt.s32.totalorder %s438_s26, %s438_s26 }
  0x40   : > { %p5219_p6 = scmp.lt.s32.totalorder %s5217_s20, %s5210_s24 }
  0x41   : > { %p5213_p3 = pnand %p5211_p1, %p5123_p13 }
  0x42   : > { %p5220_p5 = por %p5219_p6, %p5218_p4 }
  0x43   : > { %p5214_p2 = pneg %p5213_p3 }
  0x45   : > { %p5221_p7 = pnand %p5220_p5, %p5214_p2 }
  0x47   : > { %5224 = shalt.err (!%p5221_p7)
}
  0x48   : > { %4847 = dma.hbm_to_vmem [thread:$0]  (!%p5442_p12), %s6465_s13, 16, %s438_s26, [#allocation9]  }
  0x49   : > { %458 = sbr.rel (%p5434_p10) target bundleno = 5029 (0x13a5), region = 76  ;;  %p6485_p9 = scmp.eq.s32.totalorder (!%p5434_p10), %s5406_s17, 0 }
  0x4e   : > { %5268 = dma.done.wait (%p6485_p9), [#allocation3], 192   ;;  %p6486_p13 = pmov %p6485_p9 }
  0x4f   : > { %p6487_p8 = pmov %p6485_p9 }
  0x50   : > { %5270 = vsyncadd (%p6486_p13), [#allocation3], 4294967104 }
  0x51   : > { %5272 = dma.done.wait (%p6487_p8), [#allocation6], 272   ;;  %p6488_p5 = pmov %p6487_p8 }
  0x53   : > { %5274 = vsyncadd (%p6488_p5), [#allocation6], 4294967024  ;;  %p6489_p11 = pmov %p6488_p5 }
  0x54   : > { %p6490_p12 = pmov %p6488_p5 }
  0x55   : > { %5276 = dma.done.wait (%p6489_p11), [#allocation9], 16  }
  0x56   : > { %5278 = vsyncadd (%p6490_p12), [#allocation9], 4294967280  ;;  %p516_p10 = scmp.lt.s32.totalorder %s5406_s17, 1  ;;  %vm530_vm0 = vcmask 261120   ;;  %v4903_v56 = vld [vmem:[%s6455_s3 + $0x8] sm:$0xff]   ;;  %v4905_v58 = vld [vmem:[%s6455_s3] sm:$0xff]  }
  0x57   : > { %v4904_v57 = vld [vmem:[%s6455_s3 + $0x48] sm:$0xff]   ;;  %4446 = vmatprep.subr.bf16.mxu0 %v4903_v56  ;;  %v4906_v59 = vld [vmem:[%s6455_s3 + $0x40] sm:$0xff]   ;;  %vm958_vm1 = vcmask 64512   ;;  %vm1080_vm2 = vcmask 523264   ;;  %vm1850_vm3 = vcmask 1043456   ;;  %s513_s24 = sand.u32 1, %s5289_s30  }
  0x58   : > { %s517_s25 = scalar_select %p516_p10, %s5406_s17, 1  ;;  %4458 = vmatprep.subr.bf16.mxu1 %v4904_v57  ;;  %4447 = vmatpush3.bf16.msra.mxu0 %v4903_v56  ;;  %v5572_v60 = vld [vmem:[%s6455_s3 + $0x88] sm:$0xff]  }
  0x59   : > { %4459 = vmatpush3.bf16.msra.mxu1 %v4904_v57  ;;  %4448 = vmatprep.subr.bf16.mxu0 %v4905_v58  ;;  %s3959_s20 = sshll.u32 %s513_s24, 6  ;;  %s4192_s15 = sshll.u32 %s5406_s17, 10 }
  0x5a   : > { %s4191_s28 = sshll.u32 %s517_s25, 6  ;;  %4460 = vmatprep.subr.bf16.mxu1 %v4906_v59  ;;  %s515_s21 = scalar_lea.vmem [#allocation10], %s3959_s20 }
  0x5b   : > { %s5499_s26 = scalar_lea.vmem %s6452_s0, %s4191_s28  ;;  %s3844_s25 = sshll.u32 %s515_s21, 4  ;;  %s6406_s25 = int_to_ptr.vmem [resolvable:$true] %s3844_s25 }
  0x5c   : > { %v522_v0 = vld [vmem:[%s5499_s26] sm:$0xff]  ;;  %v524_v1 = vld [vmem:[%s5499_s26 + $0x10] sm:$0xff]  ;;  %v523_v2 = vld [vmem:[%s5499_s26 + $0x8] sm:$0xff]  ;;  %4449 = vmatpush3.bf16.msra.mxu0 %v4905_v58  ;;  %s6404_s22 = scalar_lea.hbm %s6466_s14, %s4192_s15  ;;  %s6412_s17 = scalar_lea.sflag [#allocation4], %s513_s24 }
  0x5d   : > { %v531_v3 = vsel %vm530_vm0, %v522_v0, 0.0  ;;  %v537_v4 = vsel %vm530_vm0, %v524_v1, 0.0  ;;  %v525_v5 = vld [vmem:[%s5499_s26 + $0x18] sm:$0xff]  ;;  %v526_v6 = vld [vmem:[%s5499_s26 + $0x20] sm:$0xff]  ;;  %v527_v7 = vld [vmem:[%s5499_s26 + $0x28] sm:$0xff]  ;;  %v534_v8 = vsel %vm530_vm0, %v523_v2, 0.0  ;;  %4461 = vmatpush3.bf16.msra.mxu1 %v4906_v59  ;;  %4470 = vmatprep.subr.bf16.mxu0 %v5572_v60 }
  0x5e   : > { %532 = vadd.xlane.f32.xlu0 %v531_v3  ;;  %538 = vadd.xlane.f32.xlu1 %v537_v4  ;;  %v540_v9 = vsel %vm530_vm0, %v525_v5, 0.0  ;;  %v543_v10 = vsel %vm530_vm0, %v526_v6, 0.0  ;;  %v546_v11 = vsel %vm530_vm0, %v527_v7, 0.0  ;;  %v528_v12 = vld [vmem:[%s5499_s26 + $0x30] sm:$0xff]  ;;  %v529_v13 = vld [vmem:[%s5499_s26 + $0x38] sm:$0xff]  ;;  %s5225_s27 = scalar_lea.vmem %s6406_s25, 1024 }
  0x5f   : > { %v549_v14 = vsel %vm530_vm0, %v528_v12, 0.0  ;;  %v552_v15 = vsel %vm530_vm0, %v529_v13, 0.0  ;;  %p5226_p0 = scmp.ne.s32.totalorder %s6406_s25, %s5225_s27  ;;  %p6491_p1 = scmp.ne.s32.totalorder %s6480_s23, 0 }
  0x60   : > { %s5307_s18 = smov [#allocation10]  }
  0x61   : > { %p5227_p3 = pnand %p5226_p0, %p6491_p1  ;;  %s5229_s19 = sshll.u32 %s5307_s18, 4  ;;  %s5230_s19 = int_to_ptr.vmem [resolvable:$false] %s5229_s19 }
  0x62   : > { %535 = vadd.xlane.f32.xlu0 %v534_v8  ;;  %541 = vadd.xlane.f32.xlu1 %v540_v9  ;;  %s5231_s29 = scalar_lea.vmem %s5230_s19, 2048  ;;  %p5232_p4 = scmp.lt.s32.totalorder %s6406_s25, %s5230_s19 }
  0x63   : > { %p5228_p2 = pneg %p5227_p3  ;;  %p5233_p6 = scmp.lt.s32.totalorder %s5231_s29, %s5225_s27 }
  0x65   : > { %p5234_p7 = por %p5233_p6, %p5232_p4 }
  0x66   : > { %544 = vadd.xlane.f32.xlu0 %v543_v10  ;;  %547 = vadd.xlane.f32.xlu1 %v546_v11 }
  0x67   : > { %p5235_p9 = pnand %p5234_p7, %p5228_p2 }
  0x6a   : > { %550 = vadd.xlane.f32.xlu0 %v549_v14  ;;  %553 = vadd.xlane.f32.xlu1 %v552_v15 }
  0xe7   : > { %v533_v16 = vpop.xlane.xlu0 %532  ;;  %v539_v17 = vpop.xlane.xlu1 %538 }
  0xe8   : > { %v556_v18 = vmul.f32 0.03125, %v533_v16  ;;  %v558_v19 = vmul.f32 0.03125, %v539_v17 }
  0xea   : > { %v5517_v20 = vsub.f32 %v522_v0, %v556_v18  ;;  %v5519_v21 = vsub.f32 %v524_v1, %v558_v19 }
  0xeb   : > { %v536_v22 = vpop.xlane.xlu0 %535  ;;  %v542_v23 = vpop.xlane.xlu1 %541 }
  0xec   : > { %v557_v24 = vmul.f32 0.03125, %v536_v22  ;;  %v559_v25 = vmul.f32 0.03125, %v542_v23  ;;  %v572_v26 = vmul.f32 %v5517_v20, %v5517_v20  ;;  %v574_v27 = vmul.f32 %v5519_v21, %v5519_v21 }
  0xee   : > { %v5525_v28 = vsub.f32 %v523_v2, %v557_v24  ;;  %v5527_v29 = vsub.f32 %v525_v5, %v559_v25  ;;  %v580_v30 = vsel %vm530_vm0, %v572_v26, 0.0  ;;  %v586_v33 = vsel %vm530_vm0, %v574_v27, 0.0  ;;  %v3962_v25 = vld [vmem:[%s6453_s1] ss:$0 sm:$0xff] }
  0xef   : > { %581 = vadd.xlane.f32.xlu0 %v580_v30  ;;  %v545_v31 = vpop.xlane.xlu0 %544  ;;  %v548_v32 = vpop.xlane.xlu1 %547 }
  0xf0   : > { %v560_v34 = vmul.f32 0.03125, %v545_v31  ;;  %v561_v35 = vmul.f32 0.03125, %v548_v32  ;;  %v573_v36 = vmul.f32 %v5525_v28, %v5525_v28  ;;  %v575_v37 = vmul.f32 %v5527_v29, %v5527_v29  ;;  %v3963_v32 = vld [vmem:[%s6454_s2] ss:$0 sm:$0xff] }
  0xf2   : > { %v5535_v38 = vsub.f32 %v526_v6, %v560_v34  ;;  %v5537_v39 = vsub.f32 %v527_v7, %v561_v35  ;;  %v583_v40 = vsel %vm530_vm0, %v573_v36, 0.0  ;;  %v589_v43 = vsel %vm530_vm0, %v575_v37, 0.0 }
  0xf3   : > { %587 = vadd.xlane.f32.xlu0 %v586_v33  ;;  %584 = vadd.xlane.f32.xlu1 %v583_v40  ;;  %v551_v41 = vpop.xlane.xlu0 %550  ;;  %v554_v42 = vpop.xlane.xlu1 %553 }
  0xf4   : > { %v562_v44 = vmul.f32 0.03125, %v551_v41  ;;  %v563_v45 = vmul.f32 0.03125, %v554_v42  ;;  %v576_v46 = vmul.f32 %v5535_v38, %v5535_v38  ;;  %v577_v47 = vmul.f32 %v5537_v39, %v5537_v39 }
  0xf6   : > { %v5545_v48 = vsub.f32 %v528_v12, %v562_v44  ;;  %v5547_v49 = vsub.f32 %v529_v13, %v563_v45  ;;  %v592_v50 = vsel %vm530_vm0, %v576_v46, 0.0  ;;  %v595_v51 = vsel %vm530_vm0, %v577_v47, 0.0 }
  0xf7   : > { %590 = vadd.xlane.f32.xlu1 %v589_v43  ;;  %593 = vadd.xlane.f32.xlu0 %v592_v50 }
  0xf8   : > { %v578_v52 = vmul.f32 %v5545_v48, %v5545_v48  ;;  %v579_v53 = vmul.f32 %v5547_v49, %v5547_v49 }
  0xfa   : > { %v598_v54 = vsel %vm530_vm0, %v578_v52, 0.0  ;;  %v601_v55 = vsel %vm530_vm0, %v579_v53, 0.0  ;;  %v4908_v52 = vld [vmem:[%s6455_s3 + $0x80] sm:$0xff]  }
  0xfb   : > { %596 = vadd.xlane.f32.xlu1 %v595_v51  ;;  %599 = vadd.xlane.f32.xlu0 %v598_v54 }
  0xff   : > { %602 = vadd.xlane.f32.xlu1 %v601_v55 }
 0x178   : > { %v582_v61 = vpop.xlane.xlu0 %581 }
 0x179   : > { %v604_v62 = vmul.f32 0.03125, %v582_v61 }
 0x17b   : > { %v612_v63 = vadd.f32 1e-05, %v604_v62 }
 0x17c   : > { %v585_v0 = vpop.xlane.xlu1 %584  ;;  %v588_v1 = vpop.xlane.xlu0 %587 }
 0x17d   : > { %4937 = vrsqrt.f32 %v612_v63  ;;  %v605_v2 = vmul.f32 0.03125, %v585_v0  ;;  %v606_v3 = vmul.f32 0.03125, %v588_v1 }
 0x17f   : > { %v613_v4 = vadd.f32 1e-05, %v605_v2  ;;  %v614_v5 = vadd.f32 1e-05, %v606_v3  ;;  %v5629_v2 = vld [vmem:[#allocation2] ss:$0 sm:$0xff] }
 0x180   : > { %v591_v6 = vpop.xlane.xlu1 %590  ;;  %v594_v7 = vpop.xlane.xlu0 %593 }
 0x181   : > { %4939 = vrsqrt.f32 %v613_v4  ;;  %v607_v8 = vmul.f32 0.03125, %v591_v6  ;;  %v608_v9 = vmul.f32 0.03125, %v594_v7 }
 0x182   : > { %4941 = vrsqrt.f32 %v614_v5 }
 0x183   : > { %v615_v10 = vadd.f32 1e-05, %v607_v8  ;;  %v616_v11 = vadd.f32 1e-05, %v608_v9 }
 0x184   : > { %v597_v12 = vpop.xlane.xlu1 %596  ;;  %v600_v13 = vpop.xlane.xlu0 %599 }
 0x185   : > { %4943 = vrsqrt.f32 %v615_v10  ;;  %v609_v14 = vmul.f32 0.03125, %v597_v12  ;;  %v610_v15 = vmul.f32 0.03125, %v600_v13  ;;  %v3975_v12 = vld [vmem:[#allocation2 + $0x4] ss:$0 sm:$0xff] }
 0x186   : > { %4945 = vrsqrt.f32 %v616_v11 }
 0x187   : > { %v617_v16 = vadd.f32 1e-05, %v609_v14  ;;  %v618_v17 = vadd.f32 1e-05, %v610_v15 }
 0x188   : > { %v603_v18 = vpop.xlane.xlu1 %602 }
 0x189   : > { %4947 = vrsqrt.f32 %v617_v16  ;;  %v611_v19 = vmul.f32 0.03125, %v603_v18 }
 0x18a   : > { %v4938_v22 = vpop.eup %4937  ;;  %4949 = vrsqrt.f32 %v618_v17 }
 0x18b   : > { %v628_v23 = vmul.f32 %v4938_v22, %v5517_v20  ;;  %v619_v24 = vadd.f32 1e-05, %v611_v19 }
 0x18d   : > { %4951 = vrsqrt.f32 %v619_v24  ;;  %v643_v30 = vmul.f32 %v3962_v25, %v628_v23 }
 0x18e   : > { %v4940_v26 = vpop.eup %4939 }
 0x18f   : > { %v4942_v27 = vpop.eup %4941  ;;  %v629_v31 = vmul.f32 %v4940_v26, %v5525_v28  ;;  %v658_v36 = vadd.f32 %v3963_v32, %v643_v30 }
 0x190   : > { %v630_v33 = vmul.f32 %v4942_v27, %v5519_v21 }
 0x191   : > { %v644_v34 = vmul.f32 %v3962_v25, %v629_v31 }
 0x192   : > { %v4944_v35 = vpop.eup %4943  ;;  %v645_v40 = vmul.f32 %v3962_v25, %v630_v33 }
 0x193   : > { %v4946_v20 = vpop.eup %4945  ;;  %v659_v37 = vadd.f32 %v3963_v32, %v644_v34  ;;  %v631_v41 = vmul.f32 %v4944_v35, %v5527_v29 }
 0x194   : > { %v632_v42 = vmul.f32 %v4946_v20, %v5535_v38  ;;  %v660_v47 = vadd.f32 %v3963_v32, %v645_v40 }
 0x195   : > { %v5586_v43 = vpack.c.bf16 %v659_v37, %v658_v36  ;;  %v646_v44 = vmul.f32 %v3962_v25, %v631_v41  ;;  %v3986_v37 = vld [vmem:[#allocation2 + $0x8] ss:$0 sm:$0xff] }
 0x196   : > { %v4948_v28 = vpop.eup %4947  ;;  %v647_v45 = vmul.f32 %v3962_v25, %v632_v42 }
 0x197   : > { %v4950_v46 = vpop.eup %4949  ;;  %v661_v50 = vadd.f32 %v3963_v32, %v646_v44  ;;  %v633_v21 = vmul.f32 %v4948_v28, %v5537_v39  ;;  %4450 = vmatprep.mubr.msk.bf16.mxu0 %vm530_vm0, %v5586_v43  ;;  %4462 = vmatprep.mubr.msk.bf16.mxu1 %vm530_vm0, %v5586_v43 }
 0x198   : > { %v634_v29 = vmul.f32 %v4950_v46, %v5545_v48  ;;  %v662_v54 = vadd.f32 %v3963_v32, %v647_v45 }
 0x199   : > { %v5594_v51 = vpack.c.bf16 %v661_v50, %v660_v47  ;;  %v648_v38 = vmul.f32 %v3962_v25, %v633_v21 }
 0x19a   : > { %v4952_v53 = vpop.eup %4951  ;;  %v649_v56 = vmul.f32 %v3962_v25, %v634_v29 }
 0x19b   : > { %v663_v55 = vadd.f32 %v3963_v32, %v648_v38  ;;  %v635_v39 = vmul.f32 %v4952_v53, %v5547_v49  ;;  %4451 = vmatmul.mubr.msk.bf16.vlgmr.msra.gmra.mxu0 %vm530_vm0, %v5594_v51  ;;  %4463 = vmatmul.mubr.msk.bf16.vlgmr.msra.gmra.mxu1 %vm530_vm0, %v5594_v51 }
 0x19c   : > { %4471 = vmatpush3.bf16.msra.mxu0 %v5572_v60  ;;  %v664_v58 = vadd.f32 %v3963_v32, %v649_v56 }
 0x19d   : > { %v5605_v48 = vpack.c.bf16 %v663_v55, %v662_v54  ;;  %v650_v57 = vmul.f32 %v3962_v25, %v635_v39  ;;  %4472 = vmatprep.subr.bf16.mxu0 %v4908_v52  ;;  %v4909_v39 = vld [vmem:[%s6455_s3 + $0x58] sm:$0xff]  }
 0x19f   : > { %v665_v59 = vadd.f32 %v3963_v32, %v650_v57  ;;  %4454 = vmatprep.mubr.msk.bf16.mxu0 %vm530_vm0, %v5605_v48  ;;  %4466 = vmatprep.mubr.msk.bf16.mxu1 %vm530_vm0, %v5605_v48 }
 0x1a0   : > { %4473 = vmatpush3.bf16.msra.mxu0 %v4908_v52 }
 0x1a1   : > { %v5611_v49 = vpack.c.bf16 %v665_v59, %v664_v58 }
 0x1a3   : > { %4455 = vmatmul.mubr.msk.bf16.gmra.mxu0 %vm530_vm0, %v5611_v49  ;;  %4467 = vmatmul.mubr.msk.bf16.gmra.mxu1 %vm530_vm0, %v5611_v49 }
 0x1a4   : > { %4474 = vmatprep.mubr.msk.bf16.mxu0 %vm530_vm0, %v5586_v43 }
 0x1ab   : > { %4475 = vmatmul.mubr.msk.bf16.vlgmr.msra.gmra.mxu0 %vm530_vm0, %v5594_v51 }
 0x1ac   : > { %4478 = vmatprep.mubr.msk.bf16.mxu0 %vm530_vm0, %v5605_v48 }
 0x1b3   : > { %4479 = vmatmul.mubr.msk.bf16.gmra.mxu0 %vm530_vm0, %v5611_v49 }
 0x25b   : > { %v5625_v60 = vpop.f32.mrf.mxu0  ;;  %v4464_v61 = vpop.f32.mrf.mxu1 }
 0x25c   : > { %v838_v33 = vadd.f32 %v4464_v61, %v3975_v12 }
 0x25d   : > { %v739_v62 = vpop.f32.mrf.mxu0  ;;  %v829_v63 = vpop.f32.mrf.mxu1 }
 0x25e   : > { %v740_v5 = vadd.f32 %v5629_v2, %v739_v62  ;;  %v830_v45 = vadd.f32 %v3975_v12, %v829_v63  ;;  %v748_v62 = vadd.f32 %v5625_v60, %v5629_v2 }
 0x25f   : > { %v5627_v0 = vpop.f32.mrf.mxu0  ;;  %v4465_v1 = vpop.f32.mrf.mxu1 }
 0x260   : > { %v841_v31 = vadd.f32 %v4465_v1, %v3975_v12  ;;  %v751_v59 = vadd.f32 %v5627_v0, %v5629_v2 }
 0x261   : > { %v742_v3 = vpop.f32.mrf.mxu0  ;;  %v832_v4 = vpop.f32.mrf.mxu1 }
 0x262   : > { %v743_v6 = vadd.f32 %v5629_v2, %v742_v3  ;;  %v955_v35 = vpack.c.bf16 %v841_v31, %v838_v33  ;;  %v833_v41 = vadd.f32 %v3975_v12, %v832_v4  ;;  %v951_v1 = vpack.c.bf16 %v751_v59, %v748_v62  ;;  %v4910_v3 = vld [vmem:[%s6455_s3 + $0x50] sm:$0xff]   ;;  %v4016_v59 = vld [vmem:[#allocation2 + $0x5] ss:$0 sm:$0xff] }
 0x263   : > { %v5633_v7 = vpop.f32.mrf.mxu0  ;;  %v4468_v8 = vpop.f32.mrf.mxu1 }
 0x264   : > { %v950_v9 = vpack.c.bf16 %v743_v6, %v740_v5  ;;  %v854_v15 = vadd.f32 %v4468_v8, %v3975_v12  ;;  %v954_v21 = vpack.c.bf16 %v833_v41, %v830_v45  ;;  %v975_v52 = vsel %vm958_vm1, %v955_v35, 0 }
 0x265   : > { %v5635_v10 = vpop.f32.mrf.mxu0  ;;  %v845_v11 = vpop.f32.mrf.mxu1  ;;  %v764_v60 = vadd.f32 %v5633_v7, %v5629_v2  ;;  %v4257_v7 = vld [vmem:[%s6457_s5 + $0x8] sm:$0xff]  }
 0x266   : > { %4490 = vmatprep.mubr.msk.bf16.mxu1 %vm958_vm1, %v950_v9  ;;  %v846_v19 = vadd.f32 %v3975_v12, %v845_v11  ;;  %v972_v58 = vsel %vm958_vm1, %v954_v21, 0  ;;  %v756_v63 = vadd.f32 %v5629_v2, %v5635_v10 }
 0x267   : > { %v5638_v13 = vpop.f32.mrf.mxu0  ;;  %v4469_v14 = vpop.f32.mrf.mxu1 }
 0x268   : > { %v857_v16 = vadd.f32 %v4469_v14, %v3975_v12  ;;  %v767_v0 = vadd.f32 %v5638_v13, %v5629_v2 }
 0x269   : > { %v758_v17 = vpop.f32.mrf.mxu0  ;;  %v848_v18 = vpop.f32.mrf.mxu1 }
 0x26a   : > { %v957_v22 = vpack.c.bf16 %v857_v16, %v854_v15  ;;  %v849_v23 = vadd.f32 %v3975_v12, %v848_v18  ;;  %v759_v61 = vadd.f32 %v5629_v2, %v758_v17  ;;  %v953_v5 = vpack.c.bf16 %v767_v0, %v764_v60  ;;  %v4194_v2 = vld [vmem:[%s6457_s5] sm:$0xff]  }
 0x26b   : > { %v4476_v24 = vpop.f32.mrf.mxu0  ;;  %v4195_v8 = vunpack.c.l.bf16 %v4194_v2  ;;  %v4199_v12 = vunpack.c.l.bf16 %v4257_v7  ;;  %v4196_v15 = vunpack.c.h.bf16 %v4194_v2  ;;  %v4200_v18 = vunpack.c.h.bf16 %v4257_v7 }
 0x26c   : > { %v956_v25 = vpack.c.bf16 %v849_v23, %v846_v19  ;;  %4796 = vmatprep.subr.msk.bf16.mxu1 %vm958_vm1, %v957_v22  ;;  %v981_v26 = vsel %vm958_vm1, %v957_v22, 0  ;;  %v928_v53 = vadd.f32 %v4476_v24, %v3986_v37  ;;  %v952_v4 = vpack.c.bf16 %v759_v61, %v756_v63  ;;  %v4258_v19 = vld [vmem:[%s6457_s5 + $0x10] sm:$0xff]  }
 0x26d   : > { %v919_v27 = vpop.f32.mrf.mxu0  ;;  %4483 = vmatpush3.bf16.xpose.msra.mxu1 %v981_v26  ;;  %v4204_v41 = vunpack.c.h.bf16 %v4258_v19 }
 0x26e   : > { %4797 = vmatprep.subr.msk.bf16.mxu1 %vm958_vm1, %v956_v25  ;;  %v978_v20 = vsel %vm958_vm1, %v956_v25, 0  ;;  %v920_v56 = vadd.f32 %v3986_v37, %v919_v27  ;;  %v4259_v25 = vld [vmem:[%s6457_s5 + $0x18] sm:$0xff]  }
 0x26f   : > { %v4477_v30 = vpop.f32.mrf.mxu0  ;;  %v4207_v33 = vunpack.c.l.bf16 %v4259_v25 }
 0x270   : > { %v931_v29 = vadd.f32 %v4477_v30, %v3986_v37  ;;  %v4203_v30 = vunpack.c.l.bf16 %v4258_v19 }
 0x271   : > { %v922_v32 = vpop.f32.mrf.mxu0 }
 0x272   : > { %v1174_v54 = vpack.c.bf16 %v931_v29, %v928_v53  ;;  %v923_v55 = vadd.f32 %v3986_v37, %v922_v32 }
 0x273   : > { %v4480_v34 = vpop.f32.mrf.mxu0 }
 0x274   : > { %v944_v42 = vadd.f32 %v4480_v34, %v3986_v37  ;;  %v1173_v57 = vpack.c.bf16 %v923_v55, %v920_v56 }
 0x275   : > { %v935_v36 = vpop.f32.mrf.mxu0  ;;  %4485 = vmatpush3.bf16.xpose.msra.mxu1 %v978_v20 }
 0x276   : > { %4798 = vmatprep.subr.msk.bf16.mxu1 %vm958_vm1, %v955_v35  ;;  %v936_v46 = vadd.f32 %v3986_v37, %v935_v36 }
 0x277   : > { %v4481_v40 = vpop.f32.mrf.mxu0 }
 0x278   : > { %v947_v44 = vadd.f32 %v4481_v40, %v3986_v37 }
 0x279   : > { %v938_v28 = vpop.f32.mrf.mxu0 }
 0x27a   : > { %v1176_v47 = vpack.c.bf16 %v947_v44, %v944_v42  ;;  %v939_v50 = vadd.f32 %v3986_v37, %v938_v28  ;;  %v4208_v28 = vunpack.c.h.bf16 %v4259_v25 }
 0x27c   : > { %v1175_v38 = vpack.c.bf16 %v939_v50, %v936_v46  ;;  %4498 = vmatprep.subr.bf16.mxu0 %v1176_v47 }
 0x27d   : > { %4487 = vmatpush3.bf16.xpose.msra.mxu1 %v975_v52  ;;  %4499 = vmatpush3.bf16.msra.mxu0 %v1176_v47 }
 0x27e   : > { %4799 = vmatprep.subr.msk.bf16.mxu1 %vm958_vm1, %v954_v21  ;;  %4500 = vmatprep.subr.bf16.mxu0 %v1175_v38 }
 0x281   : > { %4501 = vmatpush3.bf16.msra.mxu0 %v1175_v38 }
 0x282   : > { %4502 = vmatprep.subr.bf16.mxu0 %v1174_v54 }
 0x285   : > { %4489 = vmatpush3.bf16.xpose.msra.mxu1 %v972_v58  ;;  %4503 = vmatpush3.bf16.msra.mxu0 %v1174_v54 }
 0x286   : > { %4504 = vmatprep.subr.bf16.mxu0 %v1173_v57  ;;  %4526 = vmatprep.subr.bf16.mxu1 %v4909_v39 }
 0x289   : > { %4505 = vmatpush3.bf16.msra.mxu0 %v1173_v57 }
 0x28c   : > { %4491 = vmatmul.mubr.msk.bf16.vlgmr.msra.gmra.mxu1 %vm958_vm1, %v951_v1 }
 0x28d   : > { %4494 = vmatprep.mubr.msk.bf16.mxu1 %vm958_vm1, %v952_v4  ;;  %4527 = vmatpush3.bf16.msra.mxu1 %v4909_v39 }
 0x28e   : > { %4528 = vmatprep.subr.bf16.mxu1 %v4910_v3 }
 0x291   : > { %4529 = vmatpush3.bf16.msra.mxu1 %v4910_v3 }
 0x294   : > { %4495 = vmatmul.mubr.msk.bf16.gmra.mxu1 %vm958_vm1, %v953_v5 }
 0x295   : > { %4530 = vmatprep.mubr.msk.bf16.mxu1 %vm530_vm0, %v5586_v43 }
 0x29c   : > { %4531 = vmatmul.mubr.msk.bf16.vlgmr.msra.gmra.mxu1 %vm530_vm0, %v5594_v51 }
 0x29d   : > { %4534 = vmatprep.mubr.msk.bf16.mxu1 %vm530_vm0, %v5605_v48 }
 0x2a4   : > { %4535 = vmatmul.mubr.msk.bf16.gmra.mxu1 %vm530_vm0, %v5611_v49 }
 0x34c   : > { %v4492_v6 = vpop.f32.mrf.mxu1 }
 0x34d   : > { %v1050_v10 = vmul.f32 0.35355338, %v4492_v6 }
 0x34e   : > { %v1017_v9 = vpop.f32.mrf.mxu1 }
 0x34f   : > { %v1048_v11 = vmul.f32 0.35355338, %v1017_v9  ;;  %v5689_v24 = vadd.f32 %v4199_v12, %v1050_v10 }
 0x350   : > { %v4493_v13 = vpop.f32.mrf.mxu1 }
 0x351   : > { %v5682_v14 = vadd.f32 %v4195_v8, %v1048_v11  ;;  %v1051_v16 = vmul.f32 0.35355338, %v4493_v13  ;;  %v1087_v20 = vsel %vm1080_vm2, %v5689_v24, -inf }
 0x352   : > { %v1020_v17 = vpop.f32.mrf.mxu1 }
 0x353   : > { %v1049_v22 = vmul.f32 0.35355338, %v1020_v17  ;;  %v1081_v23 = vsel %vm1080_vm2, %v5682_v14, -inf  ;;  %v5696_v32 = vadd.f32 %v4200_v18, %v1051_v16 }
 0x354   : > { %1082 = vmax.xlane.f32.xlu0 %v1081_v23  ;;  %v4496_v26 = vpop.f32.mrf.mxu1 }
 0x355   : > { %v5694_v27 = vadd.f32 %v4196_v15, %v1049_v22  ;;  %v1054_v34 = vmul.f32 0.35355338, %v4496_v26  ;;  %v1090_v44 = vsel %vm1080_vm2, %v5696_v32, -inf }
 0x356   : > { %v1033_v31 = vpop.f32.mrf.mxu1 }
 0x357   : > { %v1052_v35 = vmul.f32 0.35355338, %v1033_v31  ;;  %v1084_v36 = vsel %vm1080_vm2, %v5694_v27, -inf  ;;  %v5708_v50 = vadd.f32 %v4207_v33, %v1054_v34 }
 0x358   : > { %1088 = vmax.xlane.f32.xlu0 %v1087_v20  ;;  %1085 = vmax.xlane.f32.xlu1 %v1084_v36  ;;  %v4497_v37 = vpop.f32.mrf.mxu1 }
 0x359   : > { %v5702_v40 = vadd.f32 %v4203_v30, %v1052_v35  ;;  %v1055_v45 = vmul.f32 0.35355338, %v4497_v37  ;;  %v1099_v52 = vsel %vm1080_vm2, %v5708_v50, -inf }
 0x35a   : > { %v1036_v42 = vpop.f32.mrf.mxu1 }
 0x35b   : > { %v1053_v46 = vmul.f32 0.35355338, %v1036_v42  ;;  %v1093_v47 = vsel %vm1080_vm2, %v5702_v40, -inf  ;;  %v5716_v54 = vadd.f32 %v4208_v28, %v1055_v45 }
 0x35c   : > { %1091 = vmax.xlane.f32.xlu1 %v1090_v44  ;;  %1094 = vmax.xlane.f32.xlu0 %v1093_v47  ;;  %v4532_v21 = vpop.f32.mrf.mxu1 }
 0x35d   : > { %v5710_v29 = vadd.f32 %v4204_v41, %v1053_v46  ;;  %v1102_v39 = vsel %vm1080_vm2, %v5716_v54, -inf  ;;  %v1417_v6 = vadd.f32 %v4532_v21, %v4016_v59 }
 0x35e   : > { %v1408_v38 = vpop.f32.mrf.mxu1 }
 0x35f   : > { %v1096_v53 = vsel %vm1080_vm2, %v5710_v29, -inf  ;;  %v1409_v10 = vadd.f32 %v4016_v59, %v1408_v38 }
 0x360   : > { %1100 = vmax.xlane.f32.xlu0 %v1099_v52  ;;  %v4533_v55 = vpop.f32.mrf.mxu1  ;;  %1097 = vmax.xlane.f32.xlu1 %v1096_v53 }
 0x361   : > { %v1420_v2 = vadd.f32 %v4533_v55, %v4016_v59 }
 0x362   : > { %v1411_v56 = vpop.f32.mrf.mxu1 }
 0x363   : > { %v1534_v7 = vpack.c.bf16 %v1420_v2, %v1417_v6  ;;  %v1412_v9 = vadd.f32 %v4016_v59, %v1411_v56 }
 0x364   : > { %v4536_v57 = vpop.f32.mrf.mxu1  ;;  %1103 = vmax.xlane.f32.xlu1 %v1102_v39 }
 0x365   : > { %v1433_v62 = vadd.f32 %v4536_v57, %v4016_v59  ;;  %v1533_v11 = vpack.c.bf16 %v1412_v9, %v1409_v10  ;;  %v1553_v12 = vsel %vm958_vm1, %v1534_v7, 0 }
 0x366   : > { %v1424_v58 = vpop.f32.mrf.mxu1 }
 0x367   : > { %v1425_v3 = vadd.f32 %v4016_v59, %v1424_v58  ;;  %v1550_v13 = vsel %vm958_vm1, %v1533_v11, 0  ;;  %v4911_v58 = vld [vmem:[%s6455_s3 + $0x18] sm:$0xff]  }
 0x368   : > { %v4537_v61 = vpop.f32.mrf.mxu1  ;;  %4514 = vmatprep.subr.bf16.mxu0 %v4911_v58 }
 0x369   : > { %v1436_v63 = vadd.f32 %v4537_v61, %v4016_v59 }
 0x36a   : > { %v1427_v1 = vpop.f32.mrf.mxu1 }
 0x36b   : > { %v1536_v4 = vpack.c.bf16 %v1436_v63, %v1433_v62  ;;  %v1428_v0 = vadd.f32 %v4016_v59, %v1427_v1 }
 0x36d   : > { %v1535_v60 = vpack.c.bf16 %v1428_v0, %v1425_v3  ;;  %4800 = vmatprep.subr.msk.bf16.mxu1 %vm958_vm1, %v1536_v4  ;;  %v1559_v5 = vsel %vm958_vm1, %v1536_v4, 0 }
 0x36e   : > { %4551 = vmatpush3.bf16.xpose.msra.mxu1 %v1559_v5 }
 0x36f   : > { %4801 = vmatprep.subr.msk.bf16.mxu1 %vm958_vm1, %v1535_v60  ;;  %v1556_v8 = vsel %vm958_vm1, %v1535_v60, 0 }
 0x376   : > { %4553 = vmatpush3.bf16.xpose.msra.mxu1 %v1556_v8 }
 0x377   : > { %4802 = vmatprep.subr.msk.bf16.mxu1 %vm958_vm1, %v1534_v7 }
 0x37e   : > { %4555 = vmatpush3.bf16.xpose.msra.mxu1 %v1553_v12 }
 0x37f   : > { %4803 = vmatprep.subr.msk.bf16.mxu1 %vm958_vm1, %v1533_v11 }
 0x386   : > { %4557 = vmatpush3.bf16.xpose.msra.mxu1 %v1550_v13 }
 0x3dd   : > { %v1083_v15 = vpop.xlane.xlu0 %1082 }
 0x3de   : > { %v1105_v16 = vsub.f32 %v5682_v14, %v1083_v15  ;;  %v4912_v15 = vld [vmem:[%s6455_s3 + $0x10] sm:$0xff]  }
 0x3e0   : > { %v1113_v17 = vmul.f32 1.442695, %v1105_v16 }
 0x3e1   : > { %v1089_v18 = vpop.xlane.xlu0 %1088  ;;  %v1086_v19 = vpop.xlane.xlu1 %1085 }
 0x3e2   : > { %4953 = vpow2.f32 %v1113_v17  ;;  %v1107_v22 = vsub.f32 %v5689_v24, %v1089_v18  ;;  %v1106_v23 = vsub.f32 %v5694_v27, %v1086_v19 }
 0x3e4   : > { %v1117_v25 = vmul.f32 1.442695, %v1107_v22  ;;  %v1115_v26 = vmul.f32 1.442695, %v1106_v23 }
 0x3e5   : > { %v1092_v30 = vpop.xlane.xlu1 %1091  ;;  %v1095_v31 = vpop.xlane.xlu0 %1094 }
 0x3e6   : > { %4955 = vpow2.f32 %v1117_v25  ;;  %v1108_v33 = vsub.f32 %v5696_v32, %v1092_v30  ;;  %v1109_v34 = vsub.f32 %v5702_v40, %v1095_v31  ;;  %v4913_v25 = vld [vmem:[%s6455_s3 + $0x98] sm:$0xff]  }
 0x3e7   : > { %4957 = vpow2.f32 %v1115_v26 }
 0x3e8   : > { %v1119_v35 = vmul.f32 1.442695, %v1108_v33  ;;  %v1121_v14 = vmul.f32 1.442695, %v1109_v34  ;;  %v4914_v33 = vld [vmem:[%s6455_s3 + $0x90] sm:$0xff]  }
 0x3e9   : > { %v1101_v20 = vpop.xlane.xlu0 %1100  ;;  %v1098_v36 = vpop.xlane.xlu1 %1097  ;;  %v5779_v34 = vld [vmem:[%s6458_s6] sm:$0xf] }
 0x3ea   : > { %4959 = vpow2.f32 %v1119_v35  ;;  %v1111_v37 = vsub.f32 %v5708_v50, %v1101_v20  ;;  %v1110_v24 = vsub.f32 %v5710_v29, %v1098_v36  ;;  %4806 = vmatprep.subr.msk.bf16.mxu1 %vm1850_vm3, %v5779_v34 }
 0x3eb   : > { %4961 = vpow2.f32 %v1121_v14 }
 0x3ec   : > { %v1125_v27 = vmul.f32 1.442695, %v1111_v37  ;;  %v1123_v41 = vmul.f32 1.442695, %v1110_v24 }
 0x3ed   : > { %v1104_v42 = vpop.xlane.xlu1 %1103 }
 0x3ee   : > { %4963 = vpow2.f32 %v1125_v27  ;;  %v1112_v44 = vsub.f32 %v5716_v54, %v1104_v42 }
 0x3ef   : > { %v4954_v32 = vpop.eup %4953  ;;  %4965 = vpow2.f32 %v1123_v41 }
 0x3f0   : > { %v1127_v40 = vmul.f32 1.442695, %v1112_v44  ;;  %v1129_v28 = vsel %vm1080_vm2, %v4954_v32, 0.0 }
 0x3f1   : > { %1130 = vadd.xlane.f32.xlu0 %v1129_v28 }
 0x3f2   : > { %4967 = vpow2.f32 %v1127_v40 }
 0x3f3   : > { %v4956_v45 = vpop.eup %4955 }
 0x3f4   : > { %v4958_v46 = vpop.eup %4957  ;;  %v1135_v47 = vsel %vm1080_vm2, %v4956_v45, 0.0 }
 0x3f5   : > { %1136 = vadd.xlane.f32.xlu0 %v1135_v47  ;;  %v1132_v50 = vsel %vm1080_vm2, %v4958_v46, 0.0 }
 0x3f6   : > { %1133 = vadd.xlane.f32.xlu1 %v1132_v50 }
 0x3f7   : > { %v4960_v21 = vpop.eup %4959 }
 0x3f8   : > { %v4962_v29 = vpop.eup %4961  ;;  %v1138_v38 = vsel %vm1080_vm2, %v4960_v21, 0.0 }
 0x3f9   : > { %v1141_v52 = vsel %vm1080_vm2, %v4962_v29, 0.0 }
 0x3fa   : > { %1142 = vadd.xlane.f32.xlu0 %v1141_v52  ;;  %1139 = vadd.xlane.f32.xlu1 %v1138_v38 }
 0x3fb   : > { %v4964_v53 = vpop.eup %4963 }
 0x3fc   : > { %v4966_v54 = vpop.eup %4965  ;;  %v1147_v55 = vsel %vm1080_vm2, %v4964_v53, 0.0 }
 0x3fd   : > { %v1144_v56 = vsel %vm1080_vm2, %v4966_v54, 0.0 }
 0x3fe   : > { %1148 = vadd.xlane.f32.xlu0 %v1147_v55  ;;  %1145 = vadd.xlane.f32.xlu1 %v1144_v56  ;;  %v5797_v55 = vsel %vm1850_vm3, %v5779_v34, 0  ;;  %v4915_v56 = vld [vmem:[%s6455_s3 + $0x68] sm:$0xff]  }
 0x3ff   : > { %v4968_v39 = vpop.eup %4967 }
 0x400   : > { %v1150_v57 = vsel %vm1080_vm2, %v4968_v39, 0.0 }
 0x402   : > { %1151 = vadd.xlane.f32.xlu1 %v1150_v57 }
 0x47a   : > { %v1131_v59 = vpop.xlane.xlu0 %1130 }
 0x47b   : > { %4969 = vrcp.f32 %v1131_v59 }
 0x47e   : > { %v1137_v61 = vpop.xlane.xlu0 %1136 }
 0x47f   : > { %v1134_v62 = vpop.xlane.xlu1 %1133 }
 0x480   : > { %4971 = vrcp.f32 %v1134_v62 }
 0x481   : > { %4973 = vrcp.f32 %v1137_v61 }
 0x483   : > { %v1143_v63 = vpop.xlane.xlu0 %1142  ;;  %v1140_v1 = vpop.xlane.xlu1 %1139 }
 0x484   : > { %4975 = vrcp.f32 %v1140_v1 }
 0x485   : > { %4977 = vrcp.f32 %v1143_v63 }
 0x487   : > { %v1149_v3 = vpop.xlane.xlu0 %1148  ;;  %v1146_v4 = vpop.xlane.xlu1 %1145 }
 0x488   : > { %4979 = vrcp.f32 %v1146_v4  ;;  %v4970_v0 = vpop.eup %4969 }
 0x489   : > { %4981 = vrcp.f32 %v1149_v3  ;;  %v1161_v2 = vmul.f32 %v4970_v0, %v4954_v32 }
 0x48b   : > { %v1152_v60 = vpop.xlane.xlu1 %1151 }
 0x48c   : > { %4983 = vrcp.f32 %v1152_v60 }
 0x48d   : > { %v4972_v5 = vpop.eup %4971 }
 0x48e   : > { %v1162_v6 = vmul.f32 %v4972_v5, %v4958_v46  ;;  %v4974_v7 = vpop.eup %4973 }
 0x48f   : > { %v1163_v10 = vmul.f32 %v4974_v7, %v4956_v45  ;;  %v4005_v45 = vld [vmem:[#allocation2 + $0x1] ss:$0 sm:$0xff] }
 0x490   : > { %v1169_v8 = vpack.c.bf16 %v1162_v6, %v1161_v2 }
 0x491   : > { %v4976_v9 = vpop.eup %4975 }
 0x492   : > { %4506 = vmatprep.mubr.msk.bf16.mxu0 %vm1080_vm2, %v1169_v8  ;;  %v1164_v11 = vmul.f32 %v4976_v9, %v4960_v21  ;;  %v4978_v12 = vpop.eup %4977  ;;  %v4916_v8 = vld [vmem:[%s6455_s3 + $0x60] sm:$0xff]   ;;  %v4027_v9 = vld [vmem:[#allocation2 + $0x9] ss:$0 sm:$0xff] }
 0x493   : > { %v1165_v18 = vmul.f32 %v4978_v12, %v4962_v29 }
 0x494   : > { %v1170_v13 = vpack.c.bf16 %v1164_v11, %v1163_v10 }
 0x495   : > { %v4980_v16 = vpop.eup %4979 }
 0x496   : > { %v4982_v17 = vpop.eup %4981  ;;  %4507 = vmatmul.mubr.msk.bf16.vlgmr.msra.gmra.mxu0 %vm1080_vm2, %v1170_v13  ;;  %v1166_v19 = vmul.f32 %v4980_v16, %v4966_v54 }
 0x497   : > { %4515 = vmatpush3.bf16.msra.mxu0 %v4911_v58  ;;  %v1167_v26 = vmul.f32 %v4982_v17, %v4964_v53 }
 0x498   : > { %v1171_v23 = vpack.c.bf16 %v1166_v19, %v1165_v18  ;;  %4516 = vmatprep.subr.bf16.mxu0 %v4912_v15 }
 0x499   : > { %v4984_v22 = vpop.eup %4983 }
 0x49a   : > { %v1168_v30 = vmul.f32 %v4984_v22, %v4968_v39  ;;  %4510 = vmatprep.mubr.msk.bf16.mxu0 %vm1080_vm2, %v1171_v23 }
 0x49b   : > { %4517 = vmatpush3.bf16.msra.mxu0 %v4912_v15 }
 0x49c   : > { %v1172_v31 = vpack.c.bf16 %v1168_v30, %v1167_v26  ;;  %4538 = vmatprep.subr.bf16.mxu0 %v4913_v25 }
 0x49e   : > { %4511 = vmatmul.mubr.msk.bf16.gmra.mxu0 %vm1080_vm2, %v1172_v31  ;;  %v4260_v31 = vld [vmem:[%s6457_s5 + $0x20] sm:$0xff]  }
 0x49f   : > { %4518 = vmatprep.mubr.msk.bf16.mxu0 %vm530_vm0, %v5586_v43 }
 0x4a6   : > { %4519 = vmatmul.mubr.msk.bf16.vlgmr.msra.gmra.mxu0 %vm530_vm0, %v5594_v51 }
 0x4a7   : > { %4522 = vmatprep.mubr.msk.bf16.mxu0 %vm530_vm0, %v5605_v48  ;;  %4539 = vmatpush3.bf16.msra.mxu0 %v4913_v25 }
 0x4a8   : > { %4540 = vmatprep.subr.bf16.mxu0 %v4914_v33 }
 0x4ab   : > { %4541 = vmatpush3.bf16.msra.mxu0 %v4914_v33 }
 0x4ae   : > { %4523 = vmatmul.mubr.msk.bf16.gmra.mxu0 %vm530_vm0, %v5611_v49 }
 0x4af   : > { %4542 = vmatprep.mubr.msk.bf16.mxu0 %vm530_vm0, %v5586_v43 }
 0x4b6   : > { %4543 = vmatmul.mubr.msk.bf16.vlgmr.msra.gmra.mxu0 %vm530_vm0, %v5594_v51 }
 0x4b7   : > { %4546 = vmatprep.mubr.msk.bf16.mxu0 %vm530_vm0, %v5605_v48 }
 0x4be   : > { %4547 = vmatmul.mubr.msk.bf16.gmra.mxu0 %vm530_vm0, %v5611_v49 }
 0x556   : > { %v5783_v35 = vpop.f32.mrf.mxu0 }
 0x558   : > { %v5785_v14 = vpop.f32.mrf.mxu0 }
 0x55a   : > { %v5787_v20 = vpop.f32.mrf.mxu0 }
 0x55b   : > { %v1255_v36 = vpack.c.bf16 %v5787_v20, %v5783_v35  ;;  %v4921_v35 = vld [vmem:[%s6455_s3 + $0x38] sm:$0xff]  }
 0x55c   : > { %v5791_v37 = vpop.f32.mrf.mxu0 }
 0x55d   : > { %v1254_v24 = vpack.c.bf16 %v5791_v37, %v5785_v14  ;;  %v4919_v14 = vld [vmem:[%s6455_s3 + $0xa8] sm:$0xff]   ;;  %v4920_v37 = vld [vmem:[%s6455_s3 + $0xa0] sm:$0xff]  }
 0x55e   : > { %v4512_v27 = vpop.f32.mrf.mxu0 }
 0x560   : > { %v1239_v41 = vpop.f32.mrf.mxu0 }
 0x562   : > { %v4513_v42 = vpop.f32.mrf.mxu0 }
 0x563   : > { %v1257_v6 = vpack.c.bf16 %v4513_v42, %v4512_v27  ;;  %v4261_v27 = vld [vmem:[%s6457_s5 + $0x28] sm:$0xff]  }
 0x564   : > { %v1242_v44 = vpop.f32.mrf.mxu0 }
 0x565   : > { %v1256_v0 = vpack.c.bf16 %v1242_v44, %v1239_v41  ;;  %v4211_v41 = vunpack.c.l.bf16 %v4260_v31 }
 0x566   : > { %v4520_v32 = vpop.f32.mrf.mxu0 }
 0x567   : > { %v1327_v29 = vadd.f32 %v4520_v32, %v4005_v45 }
 0x568   : > { %v1318_v40 = vpop.f32.mrf.mxu0 }
 0x569   : > { %v1319_v50 = vadd.f32 %v4005_v45, %v1318_v40  ;;  %v4215_v40 = vunpack.c.l.bf16 %v4261_v27 }
 0x56a   : > { %v4521_v28 = vpop.f32.mrf.mxu0 }
 0x56b   : > { %v1330_v46 = vadd.f32 %v4521_v28, %v4005_v45 }
 0x56c   : > { %v1321_v47 = vpop.f32.mrf.mxu0 }
 0x56d   : > { %v1322_v21 = vadd.f32 %v4005_v45, %v1321_v47  ;;  %v1530_v53 = vpack.c.bf16 %v1330_v46, %v1327_v29  ;;  %v4212_v46 = vunpack.c.h.bf16 %v4260_v31  ;;  %v4262_v29 = vld [vmem:[%s6457_s5 + $0x30] sm:$0xff]  }
 0x56e   : > { %v4524_v38 = vpop.f32.mrf.mxu0 }
 0x56f   : > { %v1529_v52 = vpack.c.bf16 %v1322_v21, %v1319_v50  ;;  %v1343_v62 = vadd.f32 %v4524_v38, %v4005_v45  ;;  %v4216_v21 = vunpack.c.h.bf16 %v4261_v27  ;;  %v4074_v27 = vld [vmem:[#allocation2 + $0x6] ss:$0 sm:$0xff] }
 0x570   : > { %v1334_v54 = vpop.f32.mrf.mxu0 }
 0x571   : > { %4558 = vmatprep.mubr.msk.bf16.mxu1 %vm958_vm1, %v1529_v52  ;;  %v1335_v59 = vadd.f32 %v4005_v45, %v1334_v54  ;;  %v4263_v54 = vld [vmem:[%s6457_s5 + $0x38] sm:$0xff]  }
 0x572   : > { %v4525_v39 = vpop.f32.mrf.mxu0  ;;  %4559 = vmatmul.mubr.msk.bf16.vlgmr.msra.gmra.mxu1 %vm958_vm1, %v1530_v53 }
 0x573   : > { %4795 = vmatpush3.bf16.msra.mxu1 %v5797_v55  ;;  %v1346_v57 = vadd.f32 %v4525_v39, %v4005_v45 }
 0x574   : > { %v1337_v58 = vpop.f32.mrf.mxu0  ;;  %4614 = vmatprep.subr.bf16.mxu1 %v4915_v56 }
 0x575   : > { %v1338_v61 = vadd.f32 %v4005_v45, %v1337_v58  ;;  %v1532_v3 = vpack.c.bf16 %v1346_v57, %v1343_v62  ;;  %v4219_v57 = vunpack.c.l.bf16 %v4262_v29 }
 0x576   : > { %v4544_v63 = vpop.f32.mrf.mxu0 }
 0x577   : > { %v1531_v1 = vpack.c.bf16 %v1338_v61, %v1335_v59  ;;  %v1507_v22 = vadd.f32 %v4544_v63, %v4027_v9  ;;  %v4223_v61 = vunpack.c.l.bf16 %v4263_v54 }
 0x578   : > { %v1498_v4 = vpop.f32.mrf.mxu0 }
 0x579   : > { %4562 = vmatprep.mubr.msk.bf16.mxu1 %vm958_vm1, %v1531_v1  ;;  %v1499_v26 = vadd.f32 %v4027_v9, %v1498_v4 }
 0x57a   : > { %v4545_v60 = vpop.f32.mrf.mxu0  ;;  %4563 = vmatmul.mubr.msk.bf16.gmra.mxu1 %vm958_vm1, %v1532_v3 }
 0x57b   : > { %4598 = vmatprep.mubr.msk.bf16.mxu1 %vm958_vm1, %v1256_v0  ;;  %v1510_v18 = vadd.f32 %v4545_v60, %v4027_v9  ;;  %v4220_v60 = vunpack.c.h.bf16 %v4262_v29 }
 0x57c   : > { %v1501_v5 = vpop.f32.mrf.mxu0 }
 0x57d   : > { %v1752_v23 = vpack.c.bf16 %v1510_v18, %v1507_v22  ;;  %v1502_v25 = vadd.f32 %v4027_v9, %v1501_v5 }
 0x57e   : > { %v4548_v2 = vpop.f32.mrf.mxu0 }
 0x57f   : > { %v1523_v11 = vadd.f32 %v4548_v2, %v4027_v9  ;;  %v1751_v30 = vpack.c.bf16 %v1502_v25, %v1499_v26 }
 0x580   : > { %v1514_v7 = vpop.f32.mrf.mxu0 }
 0x581   : > { %v1515_v15 = vadd.f32 %v4027_v9, %v1514_v7 }
 0x582   : > { %v4549_v10 = vpop.f32.mrf.mxu0  ;;  %4599 = vmatmul.mubr.msk.bf16.vlgmr.msra.gmra.mxu1 %vm958_vm1, %v1257_v6  ;;  %v4224_v6 = vunpack.c.h.bf16 %v4263_v54 }
 0x583   : > { %v1526_v12 = vadd.f32 %v4549_v10, %v4027_v9  ;;  %4615 = vmatpush3.bf16.msra.mxu1 %v4915_v56  ;;  %4618 = vmatprep.mubr.msk.bf16.mxu1 %vm530_vm0, %v5586_v43 }
 0x584   : > { %v1517_v13 = vpop.f32.mrf.mxu0  ;;  %4616 = vmatprep.subr.bf16.mxu1 %v4916_v8 }
 0x585   : > { %v1754_v16 = vpack.c.bf16 %v1526_v12, %v1523_v11  ;;  %v1518_v17 = vadd.f32 %v4027_v9, %v1517_v13 }
 0x587   : > { %v1753_v19 = vpack.c.bf16 %v1518_v17, %v1515_v15  ;;  %4566 = vmatprep.subr.bf16.mxu0 %v1754_v16  ;;  %4617 = vmatpush3.bf16.msra.mxu1 %v4916_v8 }
 0x588   : > { %4567 = vmatpush3.bf16.msra.mxu0 %v1754_v16 }
 0x589   : > { %4568 = vmatprep.subr.bf16.mxu0 %v1753_v19 }
 0x58a   : > { %4619 = vmatmul.mubr.msk.bf16.vlgmr.msra.gmra.mxu1 %vm530_vm0, %v5594_v51 }
 0x58b   : > { %4622 = vmatprep.mubr.msk.bf16.mxu1 %vm530_vm0, %v5605_v48 }
 0x58c   : > { %4569 = vmatpush3.bf16.msra.mxu0 %v1753_v19 }
 0x58d   : > { %4570 = vmatprep.subr.bf16.mxu0 %v1752_v23 }
 0x590   : > { %4571 = vmatpush3.bf16.msra.mxu0 %v1752_v23 }
 0x591   : > { %4572 = vmatprep.subr.bf16.mxu0 %v1751_v30 }
 0x592   : > { %4623 = vmatmul.mubr.msk.bf16.gmra.mxu1 %vm530_vm0, %v5611_v49 }
 0x594   : > { %4573 = vmatpush3.bf16.msra.mxu0 %v1751_v30 }
 0x632   : > { %v4560_v33 = vpop.f32.mrf.mxu1 }
 0x633   : > { %v1628_v44 = vmul.f32 0.35355338, %v4560_v33 }
 0x634   : > { %v1595_v42 = vpop.f32.mrf.mxu1 }
 0x635   : > { %v1626_v32 = vmul.f32 0.35355338, %v1595_v42  ;;  %v5833_v53 = vadd.f32 %v4215_v40, %v1628_v44 }
 0x636   : > { %v4561_v28 = vpop.f32.mrf.mxu1 }
 0x637   : > { %v5826_v45 = vadd.f32 %v4211_v41, %v1626_v32  ;;  %v1629_v47 = vmul.f32 0.35355338, %v4561_v28  ;;  %v1665_v1 = vsel %vm1080_vm2, %v5833_v53, -inf }
 0x638   : > { %v1598_v50 = vpop.f32.mrf.mxu1 }
 0x639   : > { %v1627_v38 = vmul.f32 0.35355338, %v1598_v50  ;;  %v1659_v52 = vsel %vm1080_vm2, %v5826_v45, -inf  ;;  %v5840_v59 = vadd.f32 %v4216_v21, %v1629_v47 }
 0x63a   : > { %1660 = vmax.xlane.f32.xlu0 %v1659_v52  ;;  %v4564_v56 = vpop.f32.mrf.mxu1 }
 0x63b   : > { %v5838_v39 = vadd.f32 %v4212_v46, %v1627_v38  ;;  %v1632_v62 = vmul.f32 0.35355338, %v4564_v56  ;;  %v1668_v2 = vsel %vm1080_vm2, %v5840_v59, -inf }
 0x63c   : > { %v1611_v58 = vpop.f32.mrf.mxu1 }
 0x63d   : > { %v1630_v63 = vmul.f32 0.35355338, %v1611_v58  ;;  %v1662_v3 = vsel %vm1080_vm2, %v5838_v39, -inf  ;;  %v5852_v10 = vadd.f32 %v4223_v61, %v1632_v62 }
 0x63e   : > { %1666 = vmax.xlane.f32.xlu0 %v1665_v1  ;;  %1663 = vmax.xlane.f32.xlu1 %v1662_v3  ;;  %v4565_v4 = vpop.f32.mrf.mxu1 }
 0x63f   : > { %v5846_v0 = vadd.f32 %v4219_v57, %v1630_v63  ;;  %v1633_v7 = vmul.f32 0.35355338, %v4565_v4  ;;  %v1677_v15 = vsel %vm1080_vm2, %v5852_v10, -inf }
 0x640   : > { %v1614_v5 = vpop.f32.mrf.mxu1 }
 0x641   : > { %v1631_v8 = vmul.f32 0.35355338, %v1614_v5  ;;  %v1671_v9 = vsel %vm1080_vm2, %v5846_v0, -inf  ;;  %v5864_v17 = vadd.f32 %v4224_v6, %v1633_v7 }
 0x642   : > { %1669 = vmax.xlane.f32.xlu1 %v1668_v2  ;;  %1672 = vmax.xlane.f32.xlu0 %v1671_v9  ;;  %v5854_v11 = vpop.f32.mrf.mxu1 }
 0x643   : > { %v5856_v12 = vadd.f32 %v4220_v60, %v1631_v8  ;;  %v1680_v22 = vsel %vm1080_vm2, %v5864_v17, -inf }
 0x644   : > { %v5858_v13 = vpop.f32.mrf.mxu1 }
 0x645   : > { %v1674_v16 = vsel %vm1080_vm2, %v5856_v12, -inf }
 0x646   : > { %1678 = vmax.xlane.f32.xlu0 %v1677_v15  ;;  %1675 = vmax.xlane.f32.xlu1 %v1674_v16  ;;  %v5866_v18 = vpop.f32.mrf.mxu1 }
 0x648   : > { %v5868_v19 = vpop.f32.mrf.mxu1 }
 0x64a   : > { %1681 = vmax.xlane.f32.xlu1 %v1680_v22  ;;  %v4620_v23 = vpop.f32.mrf.mxu1 }
 0x64b   : > { %v2157_v29 = vadd.f32 %v4620_v23, %v4074_v27 }
 0x64c   : > { %v2148_v25 = vpop.f32.mrf.mxu1 }
 0x64d   : > { %v2149_v56 = vadd.f32 %v4074_v27, %v2148_v25 }
 0x64e   : > { %v4621_v26 = vpop.f32.mrf.mxu1 }
 0x64f   : > { %v2160_v21 = vadd.f32 %v4621_v26, %v4074_v27 }
 0x650   : > { %v2151_v30 = vpop.f32.mrf.mxu1 }
 0x651   : > { %v2274_v38 = vpack.c.bf16 %v2160_v21, %v2157_v29  ;;  %v2152_v54 = vadd.f32 %v4074_v27, %v2151_v30  ;;  %v4050_v29 = vld [vmem:[%s6458_s6 + $0x4] sm:$0xf] }
 0x652   : > { %v4624_v31 = vpop.f32.mrf.mxu1  ;;  %4804 = vmatprep.subr.msk.bf16.mxu0 %vm1850_vm3, %v4050_v29 }
 0x653   : > { %v2173_v42 = vadd.f32 %v4624_v31, %v4074_v27  ;;  %v2273_v57 = vpack.c.bf16 %v2152_v54, %v2149_v56  ;;  %v2293_v58 = vsel %vm958_vm1, %v2274_v38, 0 }
 0x654   : > { %v2164_v33 = vpop.f32.mrf.mxu1 }
 0x655   : > { %v2165_v40 = vadd.f32 %v4074_v27, %v2164_v33  ;;  %v2290_v61 = vsel %vm958_vm1, %v2273_v57, 0 }
 0x656   : > { %v4625_v41 = vpop.f32.mrf.mxu1 }
 0x657   : > { %v2176_v44 = vadd.f32 %v4625_v41, %v4074_v27 }
 0x658   : > { %v2167_v32 = vpop.f32.mrf.mxu1 }
 0x659   : > { %v2276_v28 = vpack.c.bf16 %v2176_v44, %v2173_v42  ;;  %v2168_v46 = vadd.f32 %v4074_v27, %v2167_v32 }
 0x65b   : > { %v2275_v47 = vpack.c.bf16 %v2168_v46, %v2165_v40  ;;  %4807 = vmatprep.subr.msk.bf16.mxu1 %vm958_vm1, %v2276_v28  ;;  %v2299_v50 = vsel %vm958_vm1, %v2276_v28, 0 }
 0x65c   : > { %4639 = vmatpush3.bf16.xpose.msra.mxu1 %v2299_v50 }
 0x65d   : > { %4808 = vmatprep.subr.msk.bf16.mxu1 %vm958_vm1, %v2275_v47  ;;  %v2296_v52 = vsel %vm958_vm1, %v2275_v47, 0 }
 0x664   : > { %4641 = vmatpush3.bf16.xpose.msra.mxu1 %v2296_v52 }
 0x665   : > { %4809 = vmatprep.subr.msk.bf16.mxu1 %vm958_vm1, %v2274_v38 }
 0x66c   : > { %4643 = vmatpush3.bf16.xpose.msra.mxu1 %v2293_v58 }
 0x66d   : > { %4810 = vmatprep.subr.msk.bf16.mxu1 %vm958_vm1, %v2273_v57 }
 0x674   : > { %4645 = vmatpush3.bf16.xpose.msra.mxu1 %v2290_v61 }
 0x675   : > { %4680 = vmatprep.subr.bf16.mxu1 %v4921_v35 }
 0x6c3   : > { %v1661_v62 = vpop.xlane.xlu0 %1660 }
 0x6c4   : > { %v1683_v63 = vsub.f32 %v5826_v45, %v1661_v62 }
 0x6c6   : > { %v1691_v1 = vmul.f32 1.442695, %v1683_v63 }
 0x6c7   : > { %v1667_v3 = vpop.xlane.xlu0 %1666  ;;  %v1664_v4 = vpop.xlane.xlu1 %1663 }
 0x6c8   : > { %4985 = vpow2.f32 %v1691_v1  ;;  %v1685_v60 = vsub.f32 %v5833_v53, %v1667_v3  ;;  %v1684_v5 = vsub.f32 %v5838_v39, %v1664_v4 }
 0x6ca   : > { %v1695_v2 = vmul.f32 1.442695, %v1685_v60  ;;  %v1693_v6 = vmul.f32 1.442695, %v1684_v5 }
 0x6cb   : > { %v1670_v7 = vpop.xlane.xlu1 %1669  ;;  %v1673_v8 = vpop.xlane.xlu0 %1672 }
 0x6cc   : > { %4987 = vpow2.f32 %v1695_v2  ;;  %v1686_v9 = vsub.f32 %v5840_v59, %v1670_v7  ;;  %v1687_v15 = vsub.f32 %v5846_v0, %v1673_v8 }
 0x6cd   : > { %4989 = vpow2.f32 %v1693_v6 }
 0x6ce   : > { %v1697_v16 = vmul.f32 1.442695, %v1686_v9  ;;  %v1699_v45 = vmul.f32 1.442695, %v1687_v15  ;;  %v1852_v15 = vsel %vm1850_vm3, %v4050_v29, 0 }
 0x6cf   : > { %v1679_v22 = vpop.xlane.xlu0 %1678  ;;  %v1676_v23 = vpop.xlane.xlu1 %1675 }
 0x6d0   : > { %4991 = vpow2.f32 %v1697_v16  ;;  %v1689_v25 = vsub.f32 %v5852_v10, %v1679_v22  ;;  %v1688_v53 = vsub.f32 %v5856_v12, %v1676_v23 }
 0x6d1   : > { %4993 = vpow2.f32 %v1699_v45 }
 0x6d2   : > { %v1703_v39 = vmul.f32 1.442695, %v1689_v25  ;;  %v1701_v26 = vmul.f32 1.442695, %v1688_v53 }
 0x6d3   : > { %v1682_v30 = vpop.xlane.xlu1 %1681 }
 0x6d4   : > { %4995 = vpow2.f32 %v1703_v39  ;;  %v1690_v31 = vsub.f32 %v5864_v17, %v1682_v30 }
 0x6d5   : > { %v4986_v59 = vpop.eup %4985  ;;  %4997 = vpow2.f32 %v1701_v26 }
 0x6d6   : > { %v1705_v0 = vmul.f32 1.442695, %v1690_v31  ;;  %v1707_v33 = vsel %vm1080_vm2, %v4986_v59, 0.0 }
 0x6d7   : > { %1708 = vadd.xlane.f32.xlu0 %v1707_v33 }
 0x6d8   : > { %4999 = vpow2.f32 %v1705_v0 }
 0x6d9   : > { %v4988_v27 = vpop.eup %4987 }
 0x6da   : > { %v4990_v41 = vpop.eup %4989  ;;  %v1713_v10 = vsel %vm1080_vm2, %v4988_v27, 0.0 }
 0x6db   : > { %1714 = vadd.xlane.f32.xlu0 %v1713_v10  ;;  %v1710_v12 = vsel %vm1080_vm2, %v4990_v41, 0.0 }
 0x6dc   : > { %1711 = vadd.xlane.f32.xlu1 %v1710_v12  ;;  %v4917_v12 = vld [vmem:[%s6455_s3 + $0x28] sm:$0xff]  }
 0x6dd   : > { %v4992_v42 = vpop.eup %4991 }
 0x6de   : > { %v4994_v44 = vpop.eup %4993  ;;  %v1716_v32 = vsel %vm1080_vm2, %v4992_v42, 0.0 }
 0x6df   : > { %v1719_v17 = vsel %vm1080_vm2, %v4994_v44, 0.0 }
 0x6e0   : > { %1720 = vadd.xlane.f32.xlu0 %v1719_v17  ;;  %1717 = vadd.xlane.f32.xlu1 %v1716_v32 }
 0x6e1   : > { %v4996_v40 = vpop.eup %4995 }
 0x6e2   : > { %v4998_v28 = vpop.eup %4997  ;;  %v1725_v46 = vsel %vm1080_vm2, %v4996_v40, 0.0 }
 0x6e3   : > { %v1722_v47 = vsel %vm1080_vm2, %v4998_v28, 0.0 }
 0x6e4   : > { %1726 = vadd.xlane.f32.xlu0 %v1725_v46  ;;  %1723 = vadd.xlane.f32.xlu1 %v1722_v47 }
 0x6e5   : > { %v5000_v50 = vpop.eup %4999 }
 0x6e6   : > { %v1728_v21 = vsel %vm1080_vm2, %v5000_v50, 0.0 }
 0x6e8   : > { %1729 = vadd.xlane.f32.xlu1 %v1728_v21 }
 0x760   : > { %v1709_v38 = vpop.xlane.xlu0 %1708 }
 0x761   : > { %5001 = vrcp.f32 %v1709_v38 }
 0x764   : > { %v1715_v52 = vpop.xlane.xlu0 %1714 }
 0x765   : > { %v1712_v54 = vpop.xlane.xlu1 %1711 }
 0x766   : > { %5003 = vrcp.f32 %v1712_v54 }
 0x767   : > { %5005 = vrcp.f32 %v1715_v52 }
 0x769   : > { %v1721_v56 = vpop.xlane.xlu0 %1720  ;;  %v1718_v57 = vpop.xlane.xlu1 %1717 }
 0x76a   : > { %5007 = vrcp.f32 %v1718_v57 }
 0x76b   : > { %5009 = vrcp.f32 %v1721_v56 }
 0x76d   : > { %v1727_v58 = vpop.xlane.xlu0 %1726  ;;  %v1724_v61 = vpop.xlane.xlu1 %1723 }
 0x76e   : > { %5011 = vrcp.f32 %v1724_v61  ;;  %v5002_v62 = vpop.eup %5001 }
 0x76f   : > { %5013 = vrcp.f32 %v1727_v58  ;;  %v1739_v3 = vmul.f32 %v5002_v62, %v4986_v59 }
 0x771   : > { %v1730_v63 = vpop.xlane.xlu1 %1729 }
 0x772   : > { %5015 = vrcp.f32 %v1730_v63 }
 0x773   : > { %v5004_v1 = vpop.eup %5003 }
 0x774   : > { %v1740_v4 = vmul.f32 %v5004_v1, %v4990_v41  ;;  %v5006_v60 = vpop.eup %5005  ;;  %v4063_v1 = vld [vmem:[#allocation2 + $0x2] ss:$0 sm:$0xff] }
 0x775   : > { %v1741_v6 = vmul.f32 %v5006_v60, %v4988_v27 }
 0x776   : > { %v1747_v5 = vpack.c.bf16 %v1740_v4, %v1739_v3 }
 0x777   : > { %v5008_v2 = vpop.eup %5007 }
 0x778   : > { %4574 = vmatprep.mubr.msk.bf16.mxu0 %vm1080_vm2, %v1747_v5  ;;  %v1742_v7 = vmul.f32 %v5008_v2, %v4992_v42  ;;  %v5010_v8 = vpop.eup %5009 }
 0x779   : > { %v1743_v22 = vmul.f32 %v5010_v8, %v4994_v44 }
 0x77a   : > { %v1748_v9 = vpack.c.bf16 %v1742_v7, %v1741_v6 }
 0x77b   : > { %v5012_v16 = vpop.eup %5011 }
 0x77c   : > { %v5014_v45 = vpop.eup %5013  ;;  %4575 = vmatmul.mubr.msk.bf16.vlgmr.msra.gmra.mxu0 %vm1080_vm2, %v1748_v9  ;;  %v1744_v23 = vmul.f32 %v5012_v16, %v4998_v28 }
 0x77d   : > { %4583 = vmatpush3.bf16.msra.mxu0 %v1852_v15  ;;  %v1745_v39 = vmul.f32 %v5014_v45, %v4996_v40  ;;  %v4918_v40 = vld [vmem:[%s6455_s3 + $0x20] sm:$0xff]   ;;  %v4922_v15 = vld [vmem:[%s6455_s3 + $0x30] sm:$0xff]  }
 0x77e   : > { %v1749_v53 = vpack.c.bf16 %v1744_v23, %v1743_v22  ;;  %4805 = vmatprep.subr.msk.bf16.mxu0 %vm1850_vm3, %v5779_v34  ;;  %v4923_v23 = vld [vmem:[%s6455_s3 + $0xb8] sm:$0xff]  }
 0x77f   : > { %v5016_v25 = vpop.eup %5015 }
 0x780   : > { %v1746_v26 = vmul.f32 %v5016_v25, %v5000_v50  ;;  %4578 = vmatprep.mubr.msk.bf16.mxu0 %vm1080_vm2, %v1749_v53 }
 0x782   : > { %v1750_v30 = vpack.c.bf16 %v1746_v26, %v1745_v39 }
 0x784   : > { %4579 = vmatmul.mubr.msk.bf16.gmra.mxu0 %vm1080_vm2, %v1750_v30 }
 0x83c   : > { %v4576_v31 = vpop.f32.mrf.mxu0 }
 0x83e   : > { %v1801_v59 = vpop.f32.mrf.mxu0 }
 0x840   : > { %v4577_v0 = vpop.f32.mrf.mxu0 }
 0x841   : > { %v1833_v41 = vpack.c.bf16 %v4577_v0, %v4576_v31 }
 0x842   : > { %v1804_v33 = vpop.f32.mrf.mxu0 }
 0x843   : > { %v1832_v27 = vpack.c.bf16 %v1804_v33, %v1801_v59 }
 0x844   : > { %v4580_v10 = vpop.f32.mrf.mxu0 }
 0x845   : > { %4584 = vmatprep.mubr.msk.bf16.mxu0 %vm958_vm1, %v1832_v27 }
 0x846   : > { %v1817_v34 = vpop.f32.mrf.mxu0  ;;  %4585 = vmatmul.mubr.msk.bf16.vlgmr.msra.gmra.mxu0 %vm958_vm1, %v1833_v41 }
 0x847   : > { %4593 = vmatpush3.bf16.msra.mxu0 %v5797_v55 }
 0x848   : > { %v4581_v42 = vpop.f32.mrf.mxu0  ;;  %4602 = vmatprep.subr.bf16.mxu0 %v4917_v12 }
 0x849   : > { %v1835_v17 = vpack.c.bf16 %v4581_v42, %v4580_v10  ;;  %v4924_v10 = vld [vmem:[%s6455_s3 + $0xb0] sm:$0xff]  }
 0x84a   : > { %v1820_v44 = vpop.f32.mrf.mxu0 }
 0x84b   : > { %v1834_v32 = vpack.c.bf16 %v1820_v44, %v1817_v34 }
 0x84d   : > { %4588 = vmatprep.mubr.msk.bf16.mxu0 %vm958_vm1, %v1834_v32 }
 0x84e   : > { %4589 = vmatmul.mubr.msk.bf16.gmra.mxu0 %vm958_vm1, %v1835_v17 }
 0x84f   : > { %4594 = vmatprep.mubr.msk.bf16.mxu0 %vm958_vm1, %v1254_v24 }
 0x856   : > { %4595 = vmatmul.mubr.msk.bf16.vlgmr.msra.gmra.mxu0 %vm958_vm1, %v1255_v36 }
 0x857   : > { %4603 = vmatpush3.bf16.msra.mxu0 %v4917_v12  ;;  %4606 = vmatprep.mubr.msk.bf16.mxu0 %vm530_vm0, %v5586_v43  ;;  %v4085_v12 = vld [vmem:[#allocation2 + $0xa] ss:$0 sm:$0xff] }
 0x858   : > { %4604 = vmatprep.subr.bf16.mxu0 %v4918_v40 }
 0x85b   : > { %4605 = vmatpush3.bf16.msra.mxu0 %v4918_v40 }
 0x85c   : > { %4626 = vmatprep.subr.bf16.mxu0 %v4919_v14 }
 0x85e   : > { %4607 = vmatmul.mubr.msk.bf16.vlgmr.msra.gmra.mxu0 %vm530_vm0, %v5594_v51 }
 0x85f   : > { %4610 = vmatprep.mubr.msk.bf16.mxu0 %vm530_vm0, %v5605_v48  ;;  %4627 = vmatpush3.bf16.msra.mxu0 %v4919_v14 }
 0x860   : > { %4628 = vmatprep.subr.bf16.mxu0 %v4920_v37 }
 0x863   : > { %4629 = vmatpush3.bf16.msra.mxu0 %v4920_v37 }
 0x866   : > { %4611 = vmatmul.mubr.msk.bf16.gmra.mxu0 %vm530_vm0, %v5611_v49 }
 0x867   : > { %4630 = vmatprep.mubr.msk.bf16.mxu0 %vm530_vm0, %v5586_v43 }
 0x86e   : > { %4631 = vmatmul.mubr.msk.bf16.vlgmr.msra.gmra.mxu0 %vm530_vm0, %v5594_v51 }
 0x86f   : > { %4634 = vmatprep.mubr.msk.bf16.mxu0 %vm530_vm0, %v5605_v48 }
 0x876   : > { %4635 = vmatmul.mubr.msk.bf16.gmra.mxu0 %vm530_vm0, %v5611_v49 }
 0x906   : > { %v4586_v20 = vpop.f32.mrf.mxu0 }
 0x908   : > { %v1888_v36 = vpop.f32.mrf.mxu0 }
 0x90a   : > { %v4587_v24 = vpop.f32.mrf.mxu0 }
 0x90c   : > { %v1891_v55 = vpop.f32.mrf.mxu0 }
 0x90e   : > { %v5951_v28 = vpop.f32.mrf.mxu0 }
 0x910   : > { %v5953_v46 = vpop.f32.mrf.mxu0 }
 0x912   : > { %v5955_v47 = vpop.f32.mrf.mxu0 }
 0x914   : > { %v5957_v50 = vpop.f32.mrf.mxu0 }
 0x916   : > { %v4596_v21 = vpop.f32.mrf.mxu0 }
 0x917   : > { %v5959_v29 = vadd.f32 %v4596_v21, %v4586_v20 }
 0x918   : > { %v1968_v38 = vpop.f32.mrf.mxu0 }
 0x919   : > { %v5961_v52 = vadd.f32 %v1968_v38, %v1888_v36  ;;  %v4264_v38 = vld [vmem:[%s6457_s5 + $0x40] sm:$0xff]  }
 0x91a   : > { %v4597_v54 = vpop.f32.mrf.mxu0 }
 0x91b   : > { %v5963_v56 = vadd.f32 %v4597_v54, %v4587_v24 }
 0x91c   : > { %v1971_v57 = vpop.f32.mrf.mxu0 }
 0x91d   : > { %v5965_v58 = vadd.f32 %v1971_v57, %v1891_v55  ;;  %v4265_v57 = vld [vmem:[%s6457_s5 + $0x48] sm:$0xff]  }
 0x91e   : > { %v4608_v61 = vpop.f32.mrf.mxu0 }
 0x91f   : > { %v2067_v2 = vadd.f32 %v4608_v61, %v4063_v1  ;;  %v4227_v61 = vunpack.c.l.bf16 %v4264_v38 }
 0x920   : > { %v2058_v62 = vpop.f32.mrf.mxu0 }
 0x921   : > { %v2059_v60 = vadd.f32 %v4063_v1, %v2058_v62 }
 0x922   : > { %v4609_v63 = vpop.f32.mrf.mxu0 }
 0x923   : > { %v2070_v3 = vadd.f32 %v4609_v63, %v4063_v1 }
 0x924   : > { %v2061_v4 = vpop.f32.mrf.mxu0 }
 0x925   : > { %v2062_v5 = vadd.f32 %v4063_v1, %v2061_v4  ;;  %v2270_v8 = vpack.c.bf16 %v2070_v3, %v2067_v2  ;;  %v4231_v3 = vunpack.c.l.bf16 %v4265_v57 }
 0x926   : > { %v4612_v6 = vpop.f32.mrf.mxu0 }
 0x927   : > { %v2269_v7 = vpack.c.bf16 %v2062_v5, %v2059_v60  ;;  %v2083_v39 = vadd.f32 %v4612_v6, %v4063_v1  ;;  %v4228_v5 = vunpack.c.h.bf16 %v4264_v38 }
 0x928   : > { %v2074_v9 = vpop.f32.mrf.mxu0 }
 0x929   : > { %4646 = vmatprep.mubr.msk.bf16.mxu1 %vm958_vm1, %v2269_v7  ;;  %v2075_v25 = vadd.f32 %v4063_v1, %v2074_v9  ;;  %v4232_v7 = vunpack.c.h.bf16 %v4265_v57 }
 0x92a   : > { %v4613_v16 = vpop.f32.mrf.mxu0  ;;  %4647 = vmatmul.mubr.msk.bf16.vlgmr.msra.gmra.mxu1 %vm958_vm1, %v2270_v8  ;;  %v4266_v8 = vld [vmem:[%s6457_s5 + $0x50] sm:$0xff]  }
 0x92b   : > { %4681 = vmatpush3.bf16.msra.mxu1 %v4921_v35  ;;  %v2086_v45 = vadd.f32 %v4613_v16, %v4063_v1 }
 0x92c   : > { %v2077_v22 = vpop.f32.mrf.mxu0  ;;  %4682 = vmatprep.subr.bf16.mxu1 %v4922_v15 }
 0x92d   : > { %v2078_v53 = vadd.f32 %v4063_v1, %v2077_v22  ;;  %v2272_v31 = vpack.c.bf16 %v2086_v45, %v2083_v39  ;;  %v4267_v45 = vld [vmem:[%s6457_s5 + $0x58] sm:$0xff]  }
 0x92e   : > { %v4632_v26 = vpop.f32.mrf.mxu0 }
 0x92f   : > { %v2271_v30 = vpack.c.bf16 %v2078_v53, %v2075_v25  ;;  %4683 = vmatpush3.bf16.msra.mxu1 %v4922_v15  ;;  %v2247_v20 = vadd.f32 %v4632_v26, %v4085_v12  ;;  %v4235_v25 = vunpack.c.l.bf16 %v4266_v8  ;;  %v4239_v26 = vunpack.c.l.bf16 %v4267_v45 }
 0x930   : > { %v2238_v59 = vpop.f32.mrf.mxu0  ;;  %4704 = vmatprep.subr.bf16.mxu1 %v4923_v23 }
 0x931   : > { %4650 = vmatprep.mubr.msk.bf16.mxu1 %vm958_vm1, %v2271_v30  ;;  %v2239_v55 = vadd.f32 %v4085_v12, %v2238_v59 }
 0x932   : > { %v4633_v0 = vpop.f32.mrf.mxu0  ;;  %4651 = vmatmul.mubr.msk.bf16.gmra.mxu1 %vm958_vm1, %v2272_v31 }
 0x933   : > { %4684 = vmatprep.mubr.msk.bf16.mxu1 %vm530_vm0, %v5586_v43  ;;  %v2250_v37 = vadd.f32 %v4633_v0, %v4085_v12 }
 0x934   : > { %v2241_v33 = vpop.f32.mrf.mxu0 }
 0x935   : > { %v2492_v36 = vpack.c.bf16 %v2250_v37, %v2247_v20  ;;  %v2242_v24 = vadd.f32 %v4085_v12, %v2241_v33 }
 0x936   : > { %v4636_v27 = vpop.f32.mrf.mxu0 }
 0x937   : > { %v2263_v42 = vadd.f32 %v4636_v27, %v4085_v12  ;;  %v2491_v21 = vpack.c.bf16 %v2242_v24, %v2239_v55 }
 0x938   : > { %v2254_v41 = vpop.f32.mrf.mxu0 }
 0x939   : > { %v2255_v17 = vadd.f32 %v4085_v12, %v2254_v41  ;;  %v4236_v41 = vunpack.c.h.bf16 %v4266_v8 }
 0x93a   : > { %v4637_v34 = vpop.f32.mrf.mxu0  ;;  %4685 = vmatmul.mubr.msk.bf16.vlgmr.msra.gmra.mxu1 %vm530_vm0, %v5594_v51 }
 0x93b   : > { %v2266_v44 = vadd.f32 %v4637_v34, %v4085_v12  ;;  %4688 = vmatprep.mubr.msk.bf16.mxu1 %vm530_vm0, %v5605_v48  ;;  %4705 = vmatpush3.bf16.msra.mxu1 %v4923_v23  ;;  %v4117_v34 = vld [vmem:[#allocation2 + $0x3] ss:$0 sm:$0xff] }
 0x93c   : > { %v2257_v32 = vpop.f32.mrf.mxu0  ;;  %4706 = vmatprep.subr.bf16.mxu1 %v4924_v10 }
 0x93d   : > { %v2494_v40 = vpack.c.bf16 %v2266_v44, %v2263_v42  ;;  %v2258_v14 = vadd.f32 %v4085_v12, %v2257_v32  ;;  %v4240_v42 = vunpack.c.h.bf16 %v4267_v45 }
 0x93f   : > { %v2493_v35 = vpack.c.bf16 %v2258_v14, %v2255_v17  ;;  %4654 = vmatprep.subr.bf16.mxu0 %v2494_v40  ;;  %4707 = vmatpush3.bf16.msra.mxu1 %v4924_v10 }
 0x940   : > { %4655 = vmatpush3.bf16.msra.mxu0 %v2494_v40 }
 0x941   : > { %4656 = vmatprep.subr.bf16.mxu0 %v2493_v35 }
 0x942   : > { %4689 = vmatmul.mubr.msk.bf16.gmra.mxu1 %vm530_vm0, %v5611_v49 }
 0x943   : > { %4708 = vmatprep.mubr.msk.bf16.mxu1 %vm530_vm0, %v5586_v43 }
 0x944   : > { %4657 = vmatpush3.bf16.msra.mxu0 %v2493_v35 }
 0x945   : > { %4658 = vmatprep.subr.bf16.mxu0 %v2492_v36 }
 0x948   : > { %4659 = vmatpush3.bf16.msra.mxu0 %v2492_v36 }
 0x949   : > { %4660 = vmatprep.subr.bf16.mxu0 %v2491_v21 }
 0x94a   : > { %4709 = vmatmul.mubr.msk.bf16.vlgmr.msra.gmra.mxu1 %vm530_vm0, %v5594_v51 }
 0x94b   : > { %4712 = vmatprep.mubr.msk.bf16.mxu1 %vm530_vm0, %v5605_v48 }
 0x94c   : > { %4661 = vmatpush3.bf16.msra.mxu0 %v2491_v21 }
 0x952   : > { %4713 = vmatmul.mubr.msk.bf16.gmra.mxu1 %vm530_vm0, %v5611_v49 }
 0x9ea   : > { %v4648_v54 = vpop.f32.mrf.mxu1 }
 0x9eb   : > { %v2368_v63 = vmul.f32 0.35355338, %v4648_v54 }
 0x9ec   : > { %v2335_v62 = vpop.f32.mrf.mxu1 }
 0x9ed   : > { %v2366_v1 = vmul.f32 0.35355338, %v2335_v62  ;;  %v6009_v16 = vadd.f32 %v4231_v3, %v2368_v63 }
 0x9ee   : > { %v4649_v4 = vpop.f32.mrf.mxu1 }
 0x9ef   : > { %v6002_v60 = vadd.f32 %v4227_v61, %v2366_v1  ;;  %v2369_v2 = vmul.f32 0.35355338, %v4649_v4  ;;  %v2405_v59 = vsel %vm1080_vm2, %v6009_v16, -inf }
 0x9f0   : > { %v2338_v6 = vpop.f32.mrf.mxu1 }
 0x9f1   : > { %v2367_v9 = vmul.f32 0.35355338, %v2338_v6  ;;  %v2399_v15 = vsel %vm1080_vm2, %v6002_v60, -inf  ;;  %v6016_v39 = vadd.f32 %v4232_v7, %v2369_v2 }
 0x9f2   : > { %2400 = vmax.xlane.f32.xlu0 %v2399_v15  ;;  %v4652_v22 = vpop.f32.mrf.mxu1 }
 0x9f3   : > { %v6014_v23 = vadd.f32 %v4228_v5, %v2367_v9  ;;  %v2372_v30 = vmul.f32 0.35355338, %v4652_v22  ;;  %v2408_v12 = vsel %vm1080_vm2, %v6016_v39, -inf }
 0x9f4   : > { %v2351_v53 = vpop.f32.mrf.mxu1 }
 0x9f5   : > { %v2370_v31 = vmul.f32 0.35355338, %v2351_v53  ;;  %v2402_v0 = vsel %vm1080_vm2, %v6014_v23, -inf  ;;  %v6028_v40 = vadd.f32 %v4239_v26, %v2372_v30 }
 0x9f6   : > { %2406 = vmax.xlane.f32.xlu0 %v2405_v59  ;;  %2403 = vmax.xlane.f32.xlu1 %v2402_v0  ;;  %v4653_v33 = vpop.f32.mrf.mxu1  ;;  %v4139_v59 = vld [vmem:[#allocation2 + $0xb] ss:$0 sm:$0xff] }
 0x9f7   : > { %v6022_v27 = vadd.f32 %v4235_v25, %v2370_v31  ;;  %v2373_v44 = vmul.f32 0.35355338, %v4653_v33  ;;  %v2417_v36 = vsel %vm1080_vm2, %v6028_v40, -inf }
 0x9f8   : > { %v2354_v10 = vpop.f32.mrf.mxu1 }
 0x9f9   : > { %v2371_v32 = vmul.f32 0.35355338, %v2354_v10  ;;  %v2411_v17 = vsel %vm1080_vm2, %v6022_v27, -inf  ;;  %v6038_v55 = vadd.f32 %v4240_v42, %v2373_v44 }
 0x9fa   : > { %2409 = vmax.xlane.f32.xlu1 %v2408_v12  ;;  %2412 = vmax.xlane.f32.xlu0 %v2411_v17  ;;  %v4686_v14 = vpop.f32.mrf.mxu1 }
 0x9fb   : > { %v6030_v37 = vadd.f32 %v4686_v14, %v4117_v34  ;;  %v6032_v35 = vadd.f32 %v4236_v41, %v2371_v32  ;;  %v2420_v63 = vsel %vm1080_vm2, %v6038_v55, -inf }
 0x9fc   : > { %v2725_v20 = vpop.f32.mrf.mxu1 }
 0x9fd   : > { %v2414_v24 = vsel %vm1080_vm2, %v6032_v35, -inf  ;;  %v6042_v57 = vadd.f32 %v4117_v34, %v2725_v20 }
 0x9fe   : > { %2418 = vmax.xlane.f32.xlu0 %v2417_v36  ;;  %v4687_v21 = vpop.f32.mrf.mxu1  ;;  %2415 = vmax.xlane.f32.xlu1 %v2414_v24 }
 0x9ff   : > { %v6040_v38 = vadd.f32 %v4687_v21, %v4117_v34 }
 0xa00   : > { %v2728_v54 = vpop.f32.mrf.mxu1 }
 0xa01   : > { %v2937_v61 = vpack.c.bf16 %v6040_v38, %v6030_v37  ;;  %v6046_v62 = vadd.f32 %v4117_v34, %v2728_v54  ;;  %v4269_v37 = vld [vmem:[%s6457_s5 + $0x68] sm:$0xff]  }
 0xa02   : > { %v4690_v1 = vpop.f32.mrf.mxu1  ;;  %2421 = vmax.xlane.f32.xlu1 %v2420_v63 }
 0xa03   : > { %v2936_v3 = vpack.c.bf16 %v6046_v62, %v6042_v57  ;;  %v6052_v4 = vadd.f32 %v4690_v1, %v4117_v34 }
 0xa04   : > { %v2741_v5 = vpop.f32.mrf.mxu1 }
 0xa05   : > { %v6054_v2 = vadd.f32 %v4117_v34, %v2741_v5 }
 0xa06   : > { %v4691_v6 = vpop.f32.mrf.mxu1 }
 0xa07   : > { %v6056_v7 = vadd.f32 %v4691_v6, %v4117_v34 }
 0xa08   : > { %v2744_v8 = vpop.f32.mrf.mxu1 }
 0xa09   : > { %v2939_v9 = vpack.c.bf16 %v6056_v7, %v6052_v4  ;;  %v6060_v15 = vadd.f32 %v4117_v34, %v2744_v8 }
 0xa0a   : > { %v4710_v45 = vpop.f32.mrf.mxu1 }
 0xa0b   : > { %v2938_v22 = vpack.c.bf16 %v6060_v15, %v6054_v2  ;;  %v2914_v17 = vadd.f32 %v4710_v45, %v4139_v59  ;;  %v4247_v15 = vunpack.c.l.bf16 %v4269_v37 }
 0xa0c   : > { %v2905_v25 = vpop.f32.mrf.mxu1 }
 0xa0d   : > { %v2906_v36 = vadd.f32 %v4139_v59, %v2905_v25 }
 0xa0e   : > { %v4711_v53 = vpop.f32.mrf.mxu1 }
 0xa0f   : > { %v2917_v32 = vadd.f32 %v4711_v53, %v4139_v59 }
 0xa10   : > { %v2908_v26 = vpop.f32.mrf.mxu1 }
 0xa11   : > { %v3159_v14 = vpack.c.bf16 %v2917_v32, %v2914_v17  ;;  %v2909_v20 = vadd.f32 %v4139_v59, %v2908_v26 }
 0xa12   : > { %v4714_v30 = vpop.f32.mrf.mxu1 }
 0xa13   : > { %v2930_v33 = vadd.f32 %v4714_v30, %v4139_v59  ;;  %v3158_v24 = vpack.c.bf16 %v2909_v20, %v2906_v36 }
 0xa14   : > { %v2921_v31 = vpop.f32.mrf.mxu1 }
 0xa15   : > { %v2922_v12 = vadd.f32 %v4139_v59, %v2921_v31 }
 0xa16   : > { %v4715_v0 = vpop.f32.mrf.mxu1 }
 0xa17   : > { %v2933_v41 = vadd.f32 %v4715_v0, %v4139_v59 }
 0xa18   : > { %v2924_v10 = vpop.f32.mrf.mxu1 }
 0xa19   : > { %v3161_v42 = vpack.c.bf16 %v2933_v41, %v2930_v33  ;;  %v2925_v44 = vadd.f32 %v4139_v59, %v2924_v10 }
 0xa1b   : > { %v3160_v34 = vpack.c.bf16 %v2925_v44, %v2922_v12  ;;  %4732 = vmatprep.subr.bf16.mxu1 %v3161_v42 }
 0xa1c   : > { %4733 = vmatpush3.bf16.msra.mxu1 %v3161_v42 }
 0xa1d   : > { %4734 = vmatprep.subr.bf16.mxu1 %v3160_v34 }
 0xa20   : > { %4735 = vmatpush3.bf16.msra.mxu1 %v3160_v34 }
 0xa21   : > { %4736 = vmatprep.subr.bf16.mxu1 %v3159_v14 }
 0xa24   : > { %4737 = vmatpush3.bf16.msra.mxu1 %v3159_v14 }
 0xa25   : > { %4738 = vmatprep.subr.bf16.mxu1 %v3158_v24 }
 0xa28   : > { %4739 = vmatpush3.bf16.msra.mxu1 %v3158_v24 }
 0xa7b   : > { %v2401_v21 = vpop.xlane.xlu0 %2400 }
 0xa7c   : > { %v2423_v54 = vsub.f32 %v6002_v60, %v2401_v21 }
 0xa7e   : > { %v2431_v63 = vmul.f32 1.442695, %v2423_v54 }
 0xa7f   : > { %v2407_v1 = vpop.xlane.xlu0 %2406  ;;  %v2404_v5 = vpop.xlane.xlu1 %2403 }
 0xa80   : > { %5017 = vpow2.f32 %v2431_v63  ;;  %v2425_v6 = vsub.f32 %v6009_v16, %v2407_v1  ;;  %v2424_v8 = vsub.f32 %v6014_v23, %v2404_v5  ;;  %v4108_v5 = vld [vmem:[%s6458_s6 + $0x8] sm:$0xf] }
 0xa81   : > { %4811 = vmatprep.subr.msk.bf16.mxu0 %vm1850_vm3, %v4108_v5 }
 0xa82   : > { %v2435_v45 = vmul.f32 1.442695, %v2425_v6  ;;  %v2433_v53 = vmul.f32 1.442695, %v2424_v8 }
 0xa83   : > { %v2410_v26 = vpop.xlane.xlu1 %2409  ;;  %v2413_v25 = vpop.xlane.xlu0 %2412 }
 0xa84   : > { %5019 = vpow2.f32 %v2435_v45  ;;  %v2426_v30 = vsub.f32 %v6016_v39, %v2410_v26  ;;  %v2427_v31 = vsub.f32 %v6022_v27, %v2413_v25 }
 0xa85   : > { %5021 = vpow2.f32 %v2433_v53 }
 0xa86   : > { %v2437_v59 = vmul.f32 1.442695, %v2426_v30  ;;  %v2439_v60 = vmul.f32 1.442695, %v2427_v31 }
 0xa87   : > { %v2419_v0 = vpop.xlane.xlu0 %2418  ;;  %v2416_v33 = vpop.xlane.xlu1 %2415 }
 0xa88   : > { %5023 = vpow2.f32 %v2437_v59  ;;  %v2429_v41 = vsub.f32 %v6028_v40, %v2419_v0  ;;  %v2428_v16 = vsub.f32 %v6032_v35, %v2416_v33 }
 0xa89   : > { %5025 = vpow2.f32 %v2439_v60 }
 0xa8a   : > { %v2443_v23 = vmul.f32 1.442695, %v2429_v41  ;;  %v2441_v10 = vmul.f32 1.442695, %v2428_v16 }
 0xa8b   : > { %v2422_v12 = vpop.xlane.xlu1 %2421 }
 0xa8c   : > { %5027 = vpow2.f32 %v2443_v23  ;;  %v2430_v42 = vsub.f32 %v6038_v55, %v2422_v12 }
 0xa8d   : > { %v5018_v39 = vpop.eup %5017  ;;  %5029 = vpow2.f32 %v2441_v10 }
 0xa8e   : > { %v2445_v27 = vmul.f32 1.442695, %v2430_v42  ;;  %v2447_v44 = vsel %vm1080_vm2, %v5018_v39, 0.0 }
 0xa8f   : > { %2448 = vadd.xlane.f32.xlu0 %v2447_v44  ;;  %v2591_v44 = vsel %vm1850_vm3, %v4108_v5, 0 }
 0xa90   : > { %5031 = vpow2.f32 %v2445_v27 }
 0xa91   : > { %v5020_v32 = vpop.eup %5019 }
 0xa92   : > { %v5022_v34 = vpop.eup %5021  ;;  %v2453_v40 = vsel %vm1080_vm2, %v5020_v32, 0.0 }
 0xa93   : > { %2454 = vadd.xlane.f32.xlu0 %v2453_v40  ;;  %v2450_v35 = vsel %vm1080_vm2, %v5022_v34, 0.0 }
 0xa94   : > { %2451 = vadd.xlane.f32.xlu1 %v2450_v35 }
 0xa95   : > { %v5024_v17 = vpop.eup %5023 }
 0xa96   : > { %v5026_v14 = vpop.eup %5025  ;;  %v2456_v20 = vsel %vm1080_vm2, %v5024_v17, 0.0 }
 0xa97   : > { %v2459_v55 = vsel %vm1080_vm2, %v5026_v14, 0.0 }
 0xa98   : > { %2460 = vadd.xlane.f32.xlu0 %v2459_v55  ;;  %2457 = vadd.xlane.f32.xlu1 %v2456_v20 }
 0xa99   : > { %v5028_v36 = vpop.eup %5027 }
 0xa9a   : > { %v5030_v24 = vpop.eup %5029  ;;  %v2465_v21 = vsel %vm1080_vm2, %v5028_v36, 0.0 }
 0xa9b   : > { %v2462_v54 = vsel %vm1080_vm2, %v5030_v24, 0.0 }
 0xa9c   : > { %2466 = vadd.xlane.f32.xlu0 %v2465_v21  ;;  %2463 = vadd.xlane.f32.xlu1 %v2462_v54 }
 0xa9d   : > { %v5032_v63 = vpop.eup %5031 }
 0xa9e   : > { %v2468_v1 = vsel %vm1080_vm2, %v5032_v63, 0.0 }
 0xaa0   : > { %2469 = vadd.xlane.f32.xlu1 %v2468_v1 }
 0xb18   : > { %v2449_v6 = vpop.xlane.xlu0 %2448 }
 0xb19   : > { %5033 = vrcp.f32 %v2449_v6 }
 0xb1c   : > { %v2455_v8 = vpop.xlane.xlu0 %2454 }
 0xb1d   : > { %v2452_v45 = vpop.xlane.xlu1 %2451 }
 0xb1e   : > { %5035 = vrcp.f32 %v2452_v45 }
 0xb1f   : > { %5037 = vrcp.f32 %v2455_v8 }
 0xb21   : > { %v2461_v53 = vpop.xlane.xlu0 %2460  ;;  %v2458_v26 = vpop.xlane.xlu1 %2457 }
 0xb22   : > { %5039 = vrcp.f32 %v2458_v26 }
 0xb23   : > { %5041 = vrcp.f32 %v2461_v53 }
 0xb25   : > { %v2467_v25 = vpop.xlane.xlu0 %2466  ;;  %v2464_v30 = vpop.xlane.xlu1 %2463 }
 0xb26   : > { %5043 = vrcp.f32 %v2464_v30  ;;  %v5034_v31 = vpop.eup %5033 }
 0xb27   : > { %5045 = vrcp.f32 %v2467_v25  ;;  %v2479_v0 = vmul.f32 %v5034_v31, %v5018_v39 }
 0xb29   : > { %v2470_v59 = vpop.xlane.xlu1 %2469 }
 0xb2a   : > { %5047 = vrcp.f32 %v2470_v59 }
 0xb2b   : > { %v5036_v60 = vpop.eup %5035 }
 0xb2c   : > { %v2480_v33 = vmul.f32 %v5036_v60, %v5022_v34  ;;  %v5038_v41 = vpop.eup %5037 }
 0xb2d   : > { %v2481_v10 = vmul.f32 %v5038_v41, %v5020_v32  ;;  %v4925_v32 = vld [vmem:[%s6455_s3 + $0x78] sm:$0xff]  }
 0xb2e   : > { %v2487_v16 = vpack.c.bf16 %v2480_v33, %v2479_v0 }
 0xb2f   : > { %v5040_v23 = vpop.eup %5039 }
 0xb30   : > { %4662 = vmatprep.mubr.msk.bf16.mxu0 %vm1080_vm2, %v2487_v16  ;;  %v2482_v12 = vmul.f32 %v5040_v23, %v5024_v17  ;;  %v5042_v42 = vpop.eup %5041  ;;  %v1988_v16 = vadd.f32 %v5868_v19, %v5957_v50 }
 0xb31   : > { %v2483_v20 = vmul.f32 %v5042_v42, %v5026_v14 }
 0xb32   : > { %v2488_v27 = vpack.c.bf16 %v2482_v12, %v2481_v10 }
 0xb33   : > { %v5044_v40 = vpop.eup %5043 }
 0xb34   : > { %v5046_v35 = vpop.eup %5045  ;;  %4663 = vmatmul.mubr.msk.bf16.vlgmr.msra.gmra.mxu0 %vm1080_vm2, %v2488_v27  ;;  %v2484_v55 = vmul.f32 %v5044_v40, %v5030_v24  ;;  %v4128_v27 = vld [vmem:[#allocation2 + $0x7] ss:$0 sm:$0xff] }
 0xb35   : > { %4671 = vmatpush3.bf16.msra.mxu0 %v2591_v44  ;;  %v2485_v21 = vmul.f32 %v5046_v35, %v5028_v36  ;;  %v4926_v36 = vld [vmem:[%s6455_s3 + $0x70] sm:$0xff]  }
 0xb36   : > { %v2489_v34 = vpack.c.bf16 %v2484_v55, %v2483_v20  ;;  %4692 = vmatprep.subr.bf16.mxu0 %v4925_v32 }
 0xb37   : > { %v5048_v39 = vpop.eup %5047 }
 0xb38   : > { %v2486_v54 = vmul.f32 %v5048_v39, %v5032_v63  ;;  %4666 = vmatprep.mubr.msk.bf16.mxu0 %vm1080_vm2, %v2489_v34 }
 0xb3a   : > { %v2490_v1 = vpack.c.bf16 %v2486_v54, %v2485_v21 }
 0xb3c   : > { %4667 = vmatmul.mubr.msk.bf16.gmra.mxu0 %vm1080_vm2, %v2490_v1 }
 0xbf4   : > { %v4664_v17 = vpop.f32.mrf.mxu0 }
 0xbf6   : > { %v2541_v5 = vpop.f32.mrf.mxu0 }
 0xbf8   : > { %v4665_v6 = vpop.f32.mrf.mxu0 }
 0xbf9   : > { %v2573_v8 = vpack.c.bf16 %v4665_v6, %v4664_v17 }
 0xbfa   : > { %v2544_v14 = vpop.f32.mrf.mxu0 }
 0xbfb   : > { %v2572_v24 = vpack.c.bf16 %v2544_v14, %v2541_v5  ;;  %v4268_v14 = vld [vmem:[%s6457_s5 + $0x60] sm:$0xff]  }
 0xbfc   : > { %v4668_v45 = vpop.f32.mrf.mxu0  ;;  %v4243_v38 = vunpack.c.l.bf16 %v4268_v14 }
 0xbfd   : > { %4672 = vmatprep.mubr.msk.bf16.mxu0 %vm958_vm1, %v2572_v24 }
 0xbfe   : > { %v2557_v63 = vpop.f32.mrf.mxu0  ;;  %4673 = vmatmul.mubr.msk.bf16.vlgmr.msra.gmra.mxu0 %vm958_vm1, %v2573_v8 }
 0xbff   : > { %4693 = vmatpush3.bf16.msra.mxu0 %v4925_v32 }
 0xc00   : > { %v4669_v53 = vpop.f32.mrf.mxu0  ;;  %4694 = vmatprep.subr.bf16.mxu0 %v4926_v36 }
 0xc01   : > { %v2575_v30 = vpack.c.bf16 %v4669_v53, %v4668_v45 }
 0xc02   : > { %v2560_v26 = vpop.f32.mrf.mxu0 }
 0xc03   : > { %v2574_v25 = vpack.c.bf16 %v2560_v26, %v2557_v63  ;;  %4695 = vmatpush3.bf16.msra.mxu0 %v4926_v36  ;;  %v4244_v36 = vunpack.c.h.bf16 %v4268_v14  ;;  %v4270_v63 = vld [vmem:[%s6457_s5 + $0x70] sm:$0xff]  }
 0xc05   : > { %4676 = vmatprep.mubr.msk.bf16.mxu0 %vm958_vm1, %v2574_v25 }
 0xc06   : > { %4677 = vmatmul.mubr.msk.bf16.gmra.mxu0 %vm958_vm1, %v2575_v30  ;;  %v4271_v30 = vld [vmem:[%s6457_s5 + $0x78] sm:$0xff]  }
 0xc07   : > { %4696 = vmatprep.mubr.msk.bf16.mxu0 %vm530_vm0, %v5586_v43 }
 0xc0e   : > { %4697 = vmatmul.mubr.msk.bf16.vlgmr.msra.gmra.mxu0 %vm530_vm0, %v5594_v51 }
 0xc0f   : > { %4700 = vmatprep.mubr.msk.bf16.mxu0 %vm530_vm0, %v5605_v48 }
 0xc16   : > { %4701 = vmatmul.mubr.msk.bf16.gmra.mxu0 %vm530_vm0, %v5611_v49  ;;  %v1993_v49 = vadd.f32 %v5854_v11, %v5951_v28 }
 0xc17   : > { %4724 = vmatprep.mubr.msk.bf16.mxu0 %vm958_vm1, %v2936_v3 }
 0xcbe   : > { %v4674_v31 = vpop.f32.mrf.mxu0 }
 0xcbf   : > { %v6112_v59 = vadd.f32 %v4674_v31, %v5959_v29  ;;  %v1985_v29 = vadd.f32 %v5858_v13, %v5953_v46 }
 0xcc0   : > { %v2627_v60 = vpop.f32.mrf.mxu0 }
 0xcc1   : > { %v6115_v43 = vadd.f32 %v2627_v60, %v5961_v52  ;;  %v1996_v52 = vadd.f32 %v5866_v18, %v5955_v47 }
 0xcc2   : > { %v4675_v51 = vpop.f32.mrf.mxu0 }
 0xcc3   : > { %v6118_v0 = vadd.f32 %v4675_v51, %v5963_v56  ;;  %v4251_v51 = vunpack.c.l.bf16 %v4270_v63 }
 0xcc4   : > { %v2630_v48 = vpop.f32.mrf.mxu0 }
 0xcc5   : > { %v6123_v57 = vadd.f32 %v2630_v48, %v5965_v58 }
 0xcc6   : > { %v4678_v62 = vpop.f32.mrf.mxu0 }
 0xcc7   : > { %v6127_v3 = vadd.f32 %v4678_v62, %v1993_v49  ;;  %v4255_v62 = vunpack.c.l.bf16 %v4271_v30 }
 0xcc8   : > { %v2643_v33 = vpop.f32.mrf.mxu0 }
 0xcc9   : > { %v6131_v41 = vadd.f32 %v2643_v33, %v1985_v29 }
 0xcca   : > { %v4679_v56 = vpop.f32.mrf.mxu0 }
 0xccb   : > { %v6135_v11 = vadd.f32 %v4679_v56, %v1996_v52 }
 0xccc   : > { %v2646_v28 = vpop.f32.mrf.mxu0 }
 0xccd   : > { %v6137_v58 = vadd.f32 %v2646_v28, %v1988_v16 }
 0xcce   : > { %v4698_v23 = vpop.f32.mrf.mxu0 }
 0xccf   : > { %v2824_v34 = vadd.f32 %v4698_v23, %v4128_v27  ;;  %v4252_v23 = vunpack.c.h.bf16 %v4270_v63 }
 0xcd0   : > { %v2815_v10 = vpop.f32.mrf.mxu0 }
 0xcd1   : > { %v2816_v32 = vadd.f32 %v4128_v27, %v2815_v10 }
 0xcd2   : > { %v4699_v13 = vpop.f32.mrf.mxu0 }
 0xcd3   : > { %v2827_v39 = vadd.f32 %v4699_v13, %v4128_v27 }
 0xcd4   : > { %v2818_v46 = vpop.f32.mrf.mxu0 }
 0xcd5   : > { %v2941_v21 = vpack.c.bf16 %v2827_v39, %v2824_v34  ;;  %v2819_v1 = vadd.f32 %v4128_v27, %v2818_v46  ;;  %v4256_v46 = vunpack.c.h.bf16 %v4271_v30 }
 0xcd6   : > { %v4702_v12 = vpop.f32.mrf.mxu0 }
 0xcd7   : > { %v2840_v18 = vadd.f32 %v4702_v12, %v4128_v27  ;;  %v2940_v17 = vpack.c.bf16 %v2819_v1, %v2816_v32  ;;  %v2960_v5 = vsel %vm958_vm1, %v2941_v21, 0 }
 0xcd8   : > { %v2831_v42 = vpop.f32.mrf.mxu0 }
 0xcd9   : > { %v2832_v35 = vadd.f32 %v4128_v27, %v2831_v42  ;;  %v2957_v6 = vsel %vm958_vm1, %v2940_v17, 0 }
 0xcda   : > { %v4703_v44 = vpop.f32.mrf.mxu0 }
 0xcdb   : > { %v2843_v47 = vadd.f32 %v4703_v44, %v4128_v27 }
 0xcdc   : > { %v2834_v40 = vpop.f32.mrf.mxu0 }
 0xcdd   : > { %v2943_v20 = vpack.c.bf16 %v2843_v47, %v2840_v18  ;;  %v2835_v55 = vadd.f32 %v4128_v27, %v2834_v40 }
 0xcdf   : > { %v2942_v19 = vpack.c.bf16 %v2835_v55, %v2832_v35  ;;  %4812 = vmatprep.subr.msk.bf16.mxu0 %vm958_vm1, %v2943_v20  ;;  %v2966_v50 = vsel %vm958_vm1, %v2943_v20, 0 }
 0xce0   : > { %4717 = vmatpush3.bf16.xpose.msra.mxu0 %v2966_v50 }
 0xce1   : > { %4813 = vmatprep.subr.msk.bf16.mxu0 %vm958_vm1, %v2942_v19  ;;  %v2963_v54 = vsel %vm958_vm1, %v2942_v19, 0 }
 0xce8   : > { %4719 = vmatpush3.bf16.xpose.msra.mxu0 %v2963_v54 }
 0xce9   : > { %4814 = vmatprep.subr.msk.bf16.mxu0 %vm958_vm1, %v2941_v21 }
 0xcf0   : > { %4721 = vmatpush3.bf16.xpose.msra.mxu0 %v2960_v5 }
 0xcf1   : > { %4815 = vmatprep.subr.msk.bf16.mxu0 %vm958_vm1, %v2940_v17 }
 0xcf8   : > { %4723 = vmatpush3.bf16.xpose.msra.mxu0 %v2957_v6 }
 0xcff   : > { %4725 = vmatmul.mubr.msk.bf16.vlgmr.msra.gmra.mxu0 %vm958_vm1, %v2937_v61 }
 0xd00   : > { %4728 = vmatprep.mubr.msk.bf16.mxu0 %vm958_vm1, %v2938_v22 }
 0xd07   : > { %4729 = vmatmul.mubr.msk.bf16.gmra.mxu0 %vm958_vm1, %v2939_v9  ;;  %v4248_v9 = vunpack.c.h.bf16 %v4269_v37 }
 0xdbf   : > { %v4726_v24 = vpop.f32.mrf.mxu0 }
 0xdc0   : > { %v3035_v8 = vmul.f32 0.35355338, %v4726_v24 }
 0xdc1   : > { %v3002_v61 = vpop.f32.mrf.mxu0 }
 0xdc2   : > { %v3033_v2 = vmul.f32 0.35355338, %v3002_v61  ;;  %v3060_v25 = vadd.f32 %v4247_v15, %v3035_v8 }
 0xdc3   : > { %v4727_v22 = vpop.f32.mrf.mxu0 }
 0xdc4   : > { %v3058_v45 = vadd.f32 %v4243_v38, %v3033_v2  ;;  %v3036_v4 = vmul.f32 0.35355338, %v4727_v22  ;;  %v3072_v52 = vsel %vm1080_vm2, %v3060_v25, -inf }
 0xdc5   : > { %v3005_v7 = vpop.f32.mrf.mxu0 }
 0xdc6   : > { %v3034_v53 = vmul.f32 0.35355338, %v3005_v7  ;;  %v3066_v26 = vsel %vm1080_vm2, %v3058_v45, -inf  ;;  %v3061_v49 = vadd.f32 %v4248_v9, %v3036_v4 }
 0xdc7   : > { %3067 = vmax.xlane.f32.xlu0 %v3066_v26  ;;  %v4730_v31 = vpop.f32.mrf.mxu0 }
 0xdc8   : > { %v3059_v60 = vadd.f32 %v4244_v36, %v3034_v53  ;;  %v3039_v29 = vmul.f32 0.35355338, %v4730_v31  ;;  %v3075_v13 = vsel %vm1080_vm2, %v3061_v49, -inf }
 0xdc9   : > { %v3018_v48 = vpop.f32.mrf.mxu0 }
 0xdca   : > { %v3037_v33 = vmul.f32 0.35355338, %v3018_v48  ;;  %v3069_v56 = vsel %vm1080_vm2, %v3059_v60, -inf  ;;  %v3064_v44 = vadd.f32 %v4255_v62, %v3039_v29 }
 0xdcb   : > { %3073 = vmax.xlane.f32.xlu0 %v3072_v52  ;;  %3070 = vmax.xlane.f32.xlu1 %v3069_v56  ;;  %v4731_v16 = vpop.f32.mrf.mxu0  ;;  %v4162_v56 = vld [vmem:[%s6458_s6 + $0xc] sm:$0xf] }
 0xdcc   : > { %v3062_v28 = vadd.f32 %v4251_v51, %v3037_v33  ;;  %v3040_v12 = vmul.f32 0.35355338, %v4731_v16  ;;  %v3084_v47 = vsel %vm1080_vm2, %v3064_v44, -inf  ;;  %4816 = vmatprep.subr.msk.bf16.mxu1 %vm1850_vm3, %v4162_v56 }
 0xdcd   : > { %v3021_v10 = vpop.f32.mrf.mxu0 }
 0xdce   : > { %v3038_v42 = vmul.f32 0.35355338, %v3021_v10  ;;  %v3078_v27 = vsel %vm1080_vm2, %v3062_v28, -inf  ;;  %v3065_v35 = vadd.f32 %v4256_v46, %v3040_v12 }
 0xdcf   : > { %3076 = vmax.xlane.f32.xlu1 %v3075_v13  ;;  %3079 = vmax.xlane.f32.xlu0 %v3078_v27 }
 0xdd0   : > { %v3063_v18 = vadd.f32 %v4252_v23, %v3038_v42  ;;  %v3087_v20 = vsel %vm1080_vm2, %v3065_v35, -inf }
 0xdd2   : > { %v3081_v40 = vsel %vm1080_vm2, %v3063_v18, -inf }
 0xdd3   : > { %3085 = vmax.xlane.f32.xlu0 %v3084_v47  ;;  %3082 = vmax.xlane.f32.xlu1 %v3081_v40 }
 0xdd7   : > { %3088 = vmax.xlane.f32.xlu1 %v3087_v20 }
 0xe50   : > { %v3068_v55 = vpop.xlane.xlu0 %3067 }
 0xe51   : > { %v3090_v19 = vsub.f32 %v3058_v45, %v3068_v55 }
 0xe53   : > { %v3098_v50 = vmul.f32 1.442695, %v3090_v19 }
 0xe54   : > { %v3074_v39 = vpop.xlane.xlu0 %3073  ;;  %v3071_v34 = vpop.xlane.xlu1 %3070 }
 0xe55   : > { %5049 = vpow2.f32 %v3098_v50  ;;  %v3092_v21 = vsub.f32 %v3060_v25, %v3074_v39  ;;  %v3091_v54 = vsub.f32 %v3059_v60, %v3071_v34  ;;  %v3258_v34 = vsel %vm1850_vm3, %v4162_v56, 0 }
 0xe57   : > { %v3102_v1 = vmul.f32 1.442695, %v3092_v21  ;;  %v3100_v32 = vmul.f32 1.442695, %v3091_v54 }
 0xe58   : > { %v3077_v17 = vpop.xlane.xlu1 %3076  ;;  %v3080_v5 = vpop.xlane.xlu0 %3079 }
 0xe59   : > { %5051 = vpow2.f32 %v3102_v1  ;;  %v3093_v6 = vsub.f32 %v3061_v49, %v3077_v17  ;;  %v3094_v14 = vsub.f32 %v3062_v28, %v3080_v5 }
 0xe5a   : > { %5053 = vpow2.f32 %v3100_v32 }
 0xe5b   : > { %v3104_v24 = vmul.f32 1.442695, %v3093_v6  ;;  %v3106_v37 = vmul.f32 1.442695, %v3094_v14 }
 0xe5c   : > { %v3086_v38 = vpop.xlane.xlu0 %3085  ;;  %v3083_v61 = vpop.xlane.xlu1 %3082 }
 0xe5d   : > { %5055 = vpow2.f32 %v3104_v24  ;;  %v3096_v8 = vsub.f32 %v3064_v44, %v3086_v38  ;;  %v3095_v2 = vsub.f32 %v3063_v18, %v3083_v61 }
 0xe5e   : > { %5057 = vpow2.f32 %v3106_v37 }
 0xe5f   : > { %v3110_v15 = vmul.f32 1.442695, %v3096_v8  ;;  %v3108_v22 = vmul.f32 1.442695, %v3095_v2 }
 0xe60   : > { %v3089_v45 = vpop.xlane.xlu1 %3088 }
 0xe61   : > { %5059 = vpow2.f32 %v3110_v15  ;;  %v3097_v36 = vsub.f32 %v3065_v35, %v3089_v45 }
 0xe62   : > { %v5050_v4 = vpop.eup %5049  ;;  %5061 = vpow2.f32 %v3108_v22 }
 0xe63   : > { %v3112_v7 = vmul.f32 1.442695, %v3097_v36  ;;  %v3114_v9 = vsel %vm1080_vm2, %v5050_v4, 0.0 }
 0xe64   : > { %3115 = vadd.xlane.f32.xlu0 %v3114_v9 }
 0xe65   : > { %5063 = vpow2.f32 %v3112_v7 }
 0xe66   : > { %v5052_v63 = vpop.eup %5051 }
 0xe67   : > { %v5054_v53 = vpop.eup %5053  ;;  %v3120_v26 = vsel %vm1080_vm2, %v5052_v63, 0.0 }
 0xe68   : > { %3121 = vadd.xlane.f32.xlu0 %v3120_v26  ;;  %v3117_v25 = vsel %vm1080_vm2, %v5054_v53, 0.0 }
 0xe69   : > { %3118 = vadd.xlane.f32.xlu1 %v3117_v25 }
 0xe6a   : > { %v5056_v30 = vpop.eup %5055 }
 0xe6b   : > { %v5058_v31 = vpop.eup %5057  ;;  %v3123_v60 = vsel %vm1080_vm2, %v5056_v30, 0.0 }
 0xe6c   : > { %v3126_v51 = vsel %vm1080_vm2, %v5058_v31, 0.0 }
 0xe6d   : > { %3127 = vadd.xlane.f32.xlu0 %v3126_v51  ;;  %3124 = vadd.xlane.f32.xlu1 %v3123_v60  ;;  %v4167_v51 = vld [vmem:[%s6459_s7] ss:$0 sm:$0xff] }
 0xe6e   : > { %v5060_v48 = vpop.eup %5059 }
 0xe6f   : > { %v5062_v49 = vpop.eup %5061  ;;  %v3132_v62 = vsel %vm1080_vm2, %v5060_v48, 0.0 }
 0xe70   : > { %v3129_v29 = vsel %vm1080_vm2, %v5062_v49, 0.0 }
 0xe71   : > { %3133 = vadd.xlane.f32.xlu0 %v3132_v62  ;;  %3130 = vadd.xlane.f32.xlu1 %v3129_v29 }
 0xe72   : > { %v5064_v33 = vpop.eup %5063 }
 0xe73   : > { %v3135_v52 = vsel %vm1080_vm2, %v5064_v33, 0.0 }
 0xe75   : > { %3136 = vadd.xlane.f32.xlu1 %v3135_v52 }
 0xeed   : > { %v3116_v16 = vpop.xlane.xlu0 %3115 }
 0xeee   : > { %5065 = vrcp.f32 %v3116_v16 }
 0xef1   : > { %v3122_v28 = vpop.xlane.xlu0 %3121 }
 0xef2   : > { %v3119_v23 = vpop.xlane.xlu1 %3118 }
 0xef3   : > { %5067 = vrcp.f32 %v3119_v23 }
 0xef4   : > { %5069 = vrcp.f32 %v3122_v28  ;;  %v5116_v28 = vld [vmem:[%s5499_s26 + $0x8] sm:$0xff] }
 0xef6   : > { %v3128_v10 = vpop.xlane.xlu0 %3127  ;;  %v3125_v13 = vpop.xlane.xlu1 %3124 }
 0xef7   : > { %5071 = vrcp.f32 %v3125_v13 }
 0xef8   : > { %5073 = vrcp.f32 %v3128_v10 }
 0xefa   : > { %v3134_v46 = vpop.xlane.xlu0 %3133  ;;  %v3131_v12 = vpop.xlane.xlu1 %3130 }
 0xefb   : > { %5075 = vrcp.f32 %v3131_v12  ;;  %v5066_v42 = vpop.eup %5065 }
 0xefc   : > { %5077 = vrcp.f32 %v3134_v46  ;;  %v3146_v18 = vmul.f32 %v5066_v42, %v5050_v4 }
 0xefe   : > { %v3137_v27 = vpop.xlane.xlu1 %3136 }
 0xeff   : > { %5079 = vrcp.f32 %v3137_v27 }
 0xf00   : > { %v5068_v44 = vpop.eup %5067 }
 0xf01   : > { %v3147_v47 = vmul.f32 %v5068_v44, %v5054_v53  ;;  %v5070_v40 = vpop.eup %5069  ;;  %v5117_v44 = vld [vmem:[%s5499_s26 + $0x30] sm:$0xff] }
 0xf02   : > { %v3148_v55 = vmul.f32 %v5070_v40, %v5052_v63 }
 0xf03   : > { %v3154_v35 = vpack.c.bf16 %v3147_v47, %v3146_v18 }
 0xf04   : > { %v5072_v20 = vpop.eup %5071 }
 0xf05   : > { %4740 = vmatprep.mubr.msk.bf16.mxu1 %vm1080_vm2, %v3154_v35  ;;  %v3149_v19 = vmul.f32 %v5072_v20, %v5056_v30  ;;  %v5074_v50 = vpop.eup %5073  ;;  %v5113_v30 = vld [vmem:[%s5499_s26 + $0x10] sm:$0xff] }
 0xf06   : > { %v3150_v1 = vmul.f32 %v5074_v50, %v5058_v31 }
 0xf07   : > { %v3155_v39 = vpack.c.bf16 %v3149_v19, %v3148_v55 }
 0xf08   : > { %v5076_v21 = vpop.eup %5075 }
 0xf09   : > { %v5078_v54 = vpop.eup %5077  ;;  %4741 = vmatmul.mubr.msk.bf16.vlgmr.msra.gmra.mxu1 %vm1080_vm2, %v3155_v39  ;;  %v3151_v32 = vmul.f32 %v5076_v21, %v5062_v49  ;;  %v5119_v39 = vld [vmem:[%s5499_s26 + $0x38] sm:$0xff]  ;;  %v5120_v21 = vld [vmem:[%s5499_s26 + $0x28] sm:$0xff] }
 0xf0a   : > { %4749 = vmatpush3.bf16.msra.mxu1 %v3258_v34  ;;  %v3152_v6 = vmul.f32 %v5078_v54, %v5060_v48  ;;  %v5114_v48 = vld [vmem:[%s5499_s26] sm:$0xff] }
 0xf0b   : > { %v3156_v5 = vpack.c.bf16 %v3151_v32, %v3150_v1 }
 0xf0c   : > { %v5080_v17 = vpop.eup %5079 }
 0xf0d   : > { %v3153_v14 = vmul.f32 %v5080_v17, %v5064_v33  ;;  %4744 = vmatprep.mubr.msk.bf16.mxu1 %vm1080_vm2, %v3156_v5 }
 0xf0f   : > { %v3157_v24 = vpack.c.bf16 %v3153_v14, %v3152_v6 }
 0xf11   : > { %4745 = vmatmul.mubr.msk.bf16.gmra.mxu1 %vm1080_vm2, %v3157_v24 }
 0xfc9   : > { %v4742_v37 = vpop.f32.mrf.mxu1 }
 0xfcb   : > { %v3208_v38 = vpop.f32.mrf.mxu1 }
 0xfcd   : > { %v4743_v61 = vpop.f32.mrf.mxu1 }
 0xfce   : > { %v3240_v15 = vpack.c.bf16 %v4743_v61, %v4742_v37 }
 0xfcf   : > { %v3211_v8 = vpop.f32.mrf.mxu1 }
 0xfd0   : > { %v3239_v2 = vpack.c.bf16 %v3211_v8, %v3208_v38 }
 0xfd1   : > { %v4746_v22 = vpop.f32.mrf.mxu1 }
 0xfd2   : > { %4750 = vmatprep.mubr.msk.bf16.mxu1 %vm958_vm1, %v3239_v2 }
 0xfd3   : > { %v3224_v45 = vpop.f32.mrf.mxu1  ;;  %4751 = vmatmul.mubr.msk.bf16.vlgmr.msra.gmra.mxu1 %vm958_vm1, %v3240_v15 }
 0xfd5   : > { %v4747_v36 = vpop.f32.mrf.mxu1 }
 0xfd6   : > { %v3242_v9 = vpack.c.bf16 %v4747_v36, %v4746_v22 }
 0xfd7   : > { %v3227_v4 = vpop.f32.mrf.mxu1 }
 0xfd8   : > { %v3241_v7 = vpack.c.bf16 %v3227_v4, %v3224_v45 }
 0xfda   : > { %4754 = vmatprep.mubr.msk.bf16.mxu1 %vm958_vm1, %v3241_v7 }
 0xfdb   : > { %4755 = vmatmul.mubr.msk.bf16.gmra.mxu1 %vm958_vm1, %v3242_v9 }
0x1093   : > { %v4752_v63 = vpop.f32.mrf.mxu1 }
0x1094   : > { %v3327_v53 = vadd.f32 %v4752_v63, %v6112_v59 }
0x1095   : > { %v3294_v26 = vpop.f32.mrf.mxu1 }
0x1096   : > { %v3325_v25 = vadd.f32 %v3294_v26, %v6115_v43  ;;  %v3335_v31 = vadd.f32 %v5113_v30, %v3327_v53  ;;  %v5115_v43 = vld [vmem:[%s5499_s26 + $0x18] sm:$0xff] }
0x1097   : > { %v4753_v60 = vpop.f32.mrf.mxu1 }
0x1098   : > { %v3333_v49 = vadd.f32 %v5114_v48, %v3325_v25  ;;  %v3328_v62 = vadd.f32 %v4753_v60, %v6118_v0  ;;  %v6211_v52 = vadd.f32 %v4167_v51, %v3335_v31 }
0x1099   : > { %v3297_v29 = vpop.f32.mrf.mxu1 }
0x109a   : > { %v6208_v33 = vadd.f32 %v4167_v51, %v3333_v49  ;;  %v3326_v59 = vadd.f32 %v3297_v29, %v6123_v57  ;;  %v3336_v56 = vadd.f32 %v5115_v43, %v3328_v62  ;;  %v3362_v27 = vsel %vm530_vm0, %v6211_v52, 0.0 }
0x109b   : > { %v4756_v16 = vpop.f32.mrf.mxu1 }
0x109c   : > { %v3334_v23 = vadd.f32 %v5116_v28, %v3326_v59  ;;  %v3331_v10 = vadd.f32 %v4756_v16, %v6127_v3  ;;  %v3356_v13 = vsel %vm530_vm0, %v6208_v33, 0.0  ;;  %v6221_v12 = vadd.f32 %v4167_v51, %v3336_v56  ;;  %v5118_v3 = vld [vmem:[%s5499_s26 + $0x20] sm:$0xff] }
0x109d   : > { %3357 = vadd.xlane.f32.xlu0 %v3356_v13  ;;  %v3310_v0 = vpop.f32.mrf.mxu1 }
0x109e   : > { %v6218_v46 = vadd.f32 %v4167_v51, %v3334_v23  ;;  %v3329_v57 = vadd.f32 %v3310_v0, %v6131_v41  ;;  %v3339_v18 = vadd.f32 %v5117_v44, %v3331_v10  ;;  %v3365_v19 = vsel %vm530_vm0, %v6221_v12, 0.0 }
0x109f   : > { %v4757_v42 = vpop.f32.mrf.mxu1 }
0x10a0   : > { %v3337_v47 = vadd.f32 %v5118_v3, %v3329_v57  ;;  %v3332_v40 = vadd.f32 %v4757_v42, %v6135_v11  ;;  %v3359_v35 = vsel %vm530_vm0, %v6218_v46, 0.0  ;;  %v6235_v50 = vadd.f32 %v4167_v51, %v3339_v18  ;;  %v4927_v18 = vld [vmem:[#allocation5 + $0x8] sm:$0xff]   ;;  %v4928_v3 = vld [vmem:[#allocation5] sm:$0xff]  }
0x10a1   : > { %3363 = vadd.xlane.f32.xlu0 %v3362_v27  ;;  %3360 = vadd.xlane.f32.xlu1 %v3359_v35  ;;  %v3313_v41 = vpop.f32.mrf.mxu1 }
0x10a2   : > { %v6230_v20 = vadd.f32 %v4167_v51, %v3337_v47  ;;  %v3330_v55 = vadd.f32 %v3313_v41, %v6137_v58  ;;  %v3340_v34 = vadd.f32 %v5119_v39, %v3332_v40  ;;  %v3374_v17 = vsel %vm530_vm0, %v6235_v50, 0.0  ;;  %4758 = vmatprep.subr.bf16.mxu0 %v4927_v18 }
0x10a3   : > { %4759 = vmatpush3.bf16.msra.mxu0 %v4927_v18 }
0x10a4   : > { %v3338_v54 = vadd.f32 %v5120_v21, %v3330_v55  ;;  %v3368_v11 = vsel %vm530_vm0, %v6230_v20, 0.0  ;;  %v6243_v32 = vadd.f32 %v4167_v51, %v3340_v34  ;;  %4760 = vmatprep.subr.bf16.mxu0 %v4928_v3 }
0x10a5   : > { %3366 = vadd.xlane.f32.xlu1 %v3365_v19  ;;  %3369 = vadd.xlane.f32.xlu0 %v3368_v11 }
0x10a6   : > { %v6241_v1 = vadd.f32 %v4167_v51, %v3338_v54  ;;  %v3377_v5 = vsel %vm530_vm0, %v6243_v32, 0.0 }
0x10a7   : > { %4761 = vmatpush3.bf16.msra.mxu0 %v4928_v3 }
0x10a8   : > { %v3371_v58 = vsel %vm530_vm0, %v6241_v1, 0.0 }
0x10a9   : > { %3372 = vadd.xlane.f32.xlu1 %v3371_v58  ;;  %3375 = vadd.xlane.f32.xlu0 %v3374_v17 }
0x10ad   : > { %3378 = vadd.xlane.f32.xlu1 %v3377_v5 }
0x1126   : > { %v3358_v6 = vpop.xlane.xlu0 %3357 }
0x1127   : > { %v3380_v14 = vmul.f32 0.03125, %v3358_v6 }
0x1129   : > { %v6252_v24 = vsub.f32 %v6208_v33, %v3380_v14 }
0x112a   : > { %v3364_v37 = vpop.xlane.xlu0 %3363  ;;  %v3361_v38 = vpop.xlane.xlu1 %3360 }
0x112b   : > { %v3382_v61 = vmul.f32 0.03125, %v3364_v37  ;;  %v3381_v8 = vmul.f32 0.03125, %v3361_v38  ;;  %v3396_v2 = vmul.f32 %v6252_v24, %v6252_v24 }
0x112d   : > { %v6257_v15 = vsub.f32 %v6211_v52, %v3382_v61  ;;  %v6260_v22 = vsub.f32 %v6218_v46, %v3381_v8  ;;  %v3404_v45 = vsel %vm530_vm0, %v3396_v2, 0.0 }
0x112e   : > { %v3367_v36 = vpop.xlane.xlu1 %3366  ;;  %3405 = vadd.xlane.f32.xlu0 %v3404_v45  ;;  %v3370_v4 = vpop.xlane.xlu0 %3369 }
0x112f   : > { %v3383_v7 = vmul.f32 0.03125, %v3367_v36  ;;  %v3384_v9 = vmul.f32 0.03125, %v3370_v4  ;;  %v3397_v63 = vmul.f32 %v6260_v22, %v6260_v22  ;;  %v3398_v53 = vmul.f32 %v6257_v15, %v6257_v15 }
0x1131   : > { %v6268_v26 = vsub.f32 %v6221_v12, %v3383_v7  ;;  %v6271_v25 = vsub.f32 %v6230_v20, %v3384_v9  ;;  %v3407_v30 = vsel %vm530_vm0, %v3397_v63, 0.0  ;;  %v3410_v31 = vsel %vm530_vm0, %v3398_v53, 0.0  ;;  %v4168_v63 = vld [vmem:[%s6460_s8] ss:$0 sm:$0xff] }
0x1132   : > { %3408 = vadd.xlane.f32.xlu1 %v3407_v30  ;;  %v3373_v60 = vpop.xlane.xlu1 %3372  ;;  %3411 = vadd.xlane.f32.xlu0 %v3410_v31  ;;  %v3376_v51 = vpop.xlane.xlu0 %3375 }
0x1133   : > { %v3385_v48 = vmul.f32 0.03125, %v3373_v60  ;;  %v3386_v49 = vmul.f32 0.03125, %v3376_v51  ;;  %v3399_v62 = vmul.f32 %v6268_v26, %v6268_v26  ;;  %v3400_v29 = vmul.f32 %v6271_v25, %v6271_v25 }
0x1135   : > { %v6280_v59 = vsub.f32 %v6241_v1, %v3385_v48  ;;  %v6283_v43 = vsub.f32 %v6235_v50, %v3386_v49  ;;  %v3413_v56 = vsel %vm530_vm0, %v3399_v62, 0.0  ;;  %v3416_v16 = vsel %vm530_vm0, %v3400_v29, 0.0  ;;  %v4169_v48 = vld [vmem:[%s6461_s9] ss:$0 sm:$0xff] }
0x1136   : > { %3414 = vadd.xlane.f32.xlu1 %v3413_v56  ;;  %v3379_v28 = vpop.xlane.xlu1 %3378  ;;  %3417 = vadd.xlane.f32.xlu0 %v3416_v16 }
0x1137   : > { %v3387_v23 = vmul.f32 0.03125, %v3379_v28  ;;  %v3401_v10 = vmul.f32 %v6280_v59, %v6280_v59  ;;  %v3402_v13 = vmul.f32 %v6283_v43, %v6283_v43 }
0x1139   : > { %v6292_v0 = vsub.f32 %v6243_v32, %v3387_v23  ;;  %v3419_v57 = vsel %vm530_vm0, %v3401_v10, 0.0  ;;  %v3422_v42 = vsel %vm530_vm0, %v3402_v13, 0.0 }
0x113a   : > { %3420 = vadd.xlane.f32.xlu1 %v3419_v57  ;;  %3423 = vadd.xlane.f32.xlu0 %v3422_v42 }
0x113b   : > { %v3403_v27 = vmul.f32 %v6292_v0, %v6292_v0 }
0x113d   : > { %v3425_v44 = vsel %vm530_vm0, %v3403_v27, 0.0 }
0x113e   : > { %3426 = vadd.xlane.f32.xlu1 %v3425_v44 }
0x11b7   : > { %v3406_v47 = vpop.xlane.xlu0 %3405 }
0x11b8   : > { %v3428_v40 = vmul.f32 0.03125, %v3406_v47 }
0x11ba   : > { %v3436_v35 = vadd.f32 1e-05, %v3428_v40 }
0x11bb   : > { %v3409_v41 = vpop.xlane.xlu1 %3408  ;;  %v3412_v55 = vpop.xlane.xlu0 %3411 }
0x11bc   : > { %5081 = vrsqrt.f32 %v3436_v35  ;;  %v3429_v19 = vmul.f32 0.03125, %v3409_v41  ;;  %v3430_v39 = vmul.f32 0.03125, %v3412_v55 }
0x11be   : > { %v3437_v34 = vadd.f32 1e-05, %v3429_v19  ;;  %v3438_v21 = vadd.f32 1e-05, %v3430_v39 }
0x11bf   : > { %v3415_v54 = vpop.xlane.xlu1 %3414  ;;  %v3418_v11 = vpop.xlane.xlu0 %3417 }
0x11c0   : > { %5083 = vrsqrt.f32 %v3437_v34  ;;  %v3431_v58 = vmul.f32 0.03125, %v3415_v54  ;;  %v3432_v17 = vmul.f32 0.03125, %v3418_v11  ;;  %v4932_v54 = vld [vmem:[%s6464_s12 + $0x20] sm:$0xff]   ;;  %v4933_v11 = vld [vmem:[%s6464_s12 + $0x18] sm:$0xff]  }
0x11c1   : > { %5085 = vrsqrt.f32 %v3438_v21  ;;  %v4931_v21 = vld [vmem:[%s6464_s12 + $0x28] sm:$0xff]  }
0x11c2   : > { %v3439_v5 = vadd.f32 1e-05, %v3431_v58  ;;  %v3440_v6 = vadd.f32 1e-05, %v3432_v17  ;;  %v4934_v58 = vld [vmem:[%s6464_s12 + $0x10] sm:$0xff]   ;;  %v4935_v17 = vld [vmem:[%s6464_s12 + $0x8] sm:$0xff]  }
0x11c3   : > { %v3421_v14 = vpop.xlane.xlu1 %3420  ;;  %v3424_v37 = vpop.xlane.xlu0 %3423 }
0x11c4   : > { %5087 = vrsqrt.f32 %v3439_v5  ;;  %v3433_v38 = vmul.f32 0.03125, %v3421_v14  ;;  %v3434_v61 = vmul.f32 0.03125, %v3424_v37  ;;  %v4936_v5 = vld [vmem:[%s6464_s12] sm:$0xff]  }
0x11c5   : > { %5089 = vrsqrt.f32 %v3440_v6  ;;  %v4170_v6 = vld [vmem:[#allocation7] ss:$0 sm:$0xff] }
0x11c6   : > { %v3441_v8 = vadd.f32 1e-05, %v3433_v38  ;;  %v3442_v2 = vadd.f32 1e-05, %v3434_v61 }
0x11c7   : > { %v3427_v45 = vpop.xlane.xlu1 %3426 }
0x11c8   : > { %5091 = vrsqrt.f32 %v3441_v8  ;;  %v3435_v36 = vmul.f32 0.03125, %v3427_v45 }
0x11c9   : > { %v5082_v4 = vpop.eup %5081  ;;  %5093 = vrsqrt.f32 %v3442_v2 }
0x11ca   : > { %v3443_v7 = vadd.f32 1e-05, %v3435_v36  ;;  %v3452_v9 = vmul.f32 %v5082_v4, %v6252_v24 }
0x11cc   : > { %5095 = vrsqrt.f32 %v3443_v7  ;;  %v3467_v60 = vmul.f32 %v4168_v63, %v3452_v9 }
0x11cd   : > { %v5084_v53 = vpop.eup %5083 }
0x11ce   : > { %v5086_v30 = vpop.eup %5085  ;;  %v3453_v31 = vmul.f32 %v5084_v53, %v6260_v22  ;;  %v3482_v16 = vadd.f32 %v4169_v48, %v3467_v60 }
0x11cf   : > { %v3454_v51 = vmul.f32 %v5086_v30, %v6257_v15 }
0x11d0   : > { %v3468_v49 = vmul.f32 %v4168_v63, %v3453_v31 }
0x11d1   : > { %v5088_v62 = vpop.eup %5087  ;;  %v3469_v24 = vmul.f32 %v4168_v63, %v3454_v51 }
0x11d2   : > { %v5090_v29 = vpop.eup %5089  ;;  %v3455_v56 = vmul.f32 %v5088_v62, %v6268_v26  ;;  %v3483_v28 = vadd.f32 %v4169_v48, %v3468_v49 }
0x11d3   : > { %v3456_v23 = vmul.f32 %v5090_v29, %v6271_v25  ;;  %v3484_v15 = vadd.f32 %v4169_v48, %v3469_v24 }
0x11d4   : > { %v3470_v10 = vmul.f32 %v4168_v63, %v3455_v56  ;;  %v3490_v13 = vpack.c.bf16 %v3483_v28, %v3482_v16 }
0x11d5   : > { %v5092_v22 = vpop.eup %5091  ;;  %v3471_v44 = vmul.f32 %v4168_v63, %v3456_v23 }
0x11d6   : > { %v5094_v57 = vpop.eup %5093  ;;  %4762 = vmatprep.mubr.msk.bf16.mxu0 %vm530_vm0, %v3490_v13  ;;  %v3485_v42 = vadd.f32 %v4169_v48, %v3470_v10  ;;  %v3457_v27 = vmul.f32 %v5092_v22, %v6280_v59 }
0x11d7   : > { %v3458_v18 = vmul.f32 %v5094_v57, %v6283_v43  ;;  %v3486_v25 = vadd.f32 %v4169_v48, %v3471_v44  ;;  %v4929_v43 = vld [vmem:[%s6464_s12 + $0x38] sm:$0xff]  }
0x11d8   : > { %v3491_v3 = vpack.c.bf16 %v3485_v42, %v3484_v15  ;;  %v3472_v47 = vmul.f32 %v4168_v63, %v3457_v27  ;;  %4770 = vmatprep.subr.bf16.mxu1 %v4929_v43 }
0x11d9   : > { %v5096_v26 = vpop.eup %5095  ;;  %v3473_v41 = vmul.f32 %v4168_v63, %v3458_v18  ;;  %4771 = vmatpush3.bf16.msra.mxu1 %v4929_v43 }
0x11da   : > { %v3459_v40 = vmul.f32 %v5096_v26, %v6292_v0  ;;  %4763 = vmatmul.mubr.msk.bf16.vlgmr.msra.gmra.mxu0 %vm530_vm0, %v3491_v3  ;;  %v3487_v35 = vadd.f32 %v4169_v48, %v3472_v47  ;;  %v4930_v0 = vld [vmem:[%s6464_s12 + $0x30] sm:$0xff]  }
0x11db   : > { %v3488_v39 = vadd.f32 %v4169_v48, %v3473_v41  ;;  %4772 = vmatprep.subr.bf16.mxu1 %v4930_v0 }
0x11dc   : > { %v3492_v55 = vpack.c.bf16 %v3487_v35, %v3486_v25  ;;  %v3474_v19 = vmul.f32 %v4168_v63, %v3459_v40 }
0x11dd   : > { %4773 = vmatpush3.bf16.msra.mxu1 %v4930_v0 }
0x11de   : > { %4766 = vmatprep.mubr.msk.bf16.mxu0 %vm530_vm0, %v3492_v55  ;;  %v3489_v34 = vadd.f32 %v4169_v48, %v3474_v19  ;;  %4774 = vmatprep.subr.bf16.mxu1 %v4931_v21 }
0x11e0   : > { %v3493_v59 = vpack.c.bf16 %v3489_v34, %v3488_v39 }
0x11e1   : > { %4775 = vmatpush3.bf16.msra.mxu1 %v4931_v21 }
0x11e2   : > { %4767 = vmatmul.mubr.msk.bf16.gmra.mxu0 %vm530_vm0, %v3493_v59  ;;  %4776 = vmatprep.subr.bf16.mxu1 %v4932_v54 }
0x11e5   : > { %4777 = vmatpush3.bf16.msra.mxu1 %v4932_v54 }
0x11e6   : > { %4778 = vmatprep.subr.bf16.mxu1 %v4933_v11 }
0x11e9   : > { %4779 = vmatpush3.bf16.msra.mxu1 %v4933_v11 }
0x11ea   : > { %4780 = vmatprep.subr.bf16.mxu1 %v4934_v58 }
0x11ed   : > { %4781 = vmatpush3.bf16.msra.mxu1 %v4934_v58 }
0x11ee   : > { %4782 = vmatprep.subr.bf16.mxu1 %v4935_v17 }
0x11f1   : > { %4783 = vmatpush3.bf16.msra.mxu1 %v4935_v17 }
0x11f2   : > { %4784 = vmatprep.subr.bf16.mxu1 %v4936_v5 }
0x11f5   : > { %4785 = vmatpush3.bf16.msra.mxu1 %v4936_v5 }
0x129a   : > { %v4764_v14 = vpop.f32.mrf.mxu0 }
0x129b   : > { %v6341_v37 = vadd.f32 %v4764_v14, %v4170_v6 }
0x129c   : > { %v3563_v38 = vpop.f32.mrf.mxu0 }
0x129d   : > { %v3596_v61 = vmul.f32 %v6341_v37, %v6341_v37  ;;  %v6345_v8 = vadd.f32 %v4170_v6, %v3563_v38 }
0x129e   : > { %v4765_v2 = vpop.f32.mrf.mxu0 }
0x129f   : > { %v3604_v45 = vmul.f32 %v3596_v61, %v6341_v37  ;;  %v3594_v36 = vmul.f32 %v6345_v8, %v6345_v8  ;;  %v6350_v4 = vadd.f32 %v4765_v2, %v4170_v6 }
0x12a0   : > { %v3566_v7 = vpop.f32.mrf.mxu0 }
0x12a1   : > { %v3612_v9 = vmul.f32 0.044715, %v3604_v45  ;;  %v3602_v63 = vmul.f32 %v3594_v36, %v6345_v8  ;;  %v3597_v53 = vmul.f32 %v6350_v4, %v6350_v4  ;;  %v6355_v30 = vadd.f32 %v4170_v6, %v3566_v7 }
0x12a2   : > { %v4768_v31 = vpop.f32.mrf.mxu0 }
0x12a3   : > { %v3620_v60 = vadd.f32 %v3612_v9, %v6341_v37  ;;  %v3610_v51 = vmul.f32 0.044715, %v3602_v63  ;;  %v3605_v48 = vmul.f32 %v3597_v53, %v6350_v4  ;;  %v3595_v49 = vmul.f32 %v6355_v30, %v6355_v30 }
0x12a4   : > { %v6361_v62 = vadd.f32 %v4768_v31, %v4170_v6  ;;  %v3579_v29 = vpop.f32.mrf.mxu0 }
0x12a5   : > { %v3628_v24 = vmul.f32 0.7978846, %v3620_v60  ;;  %v3618_v56 = vadd.f32 %v3610_v51, %v6345_v8  ;;  %v3613_v16 = vmul.f32 0.044715, %v3605_v48  ;;  %v3603_v28 = vmul.f32 %v3595_v49, %v6355_v30 }
0x12a6   : > { %v3600_v23 = vmul.f32 %v6361_v62, %v6361_v62  ;;  %v6367_v10 = vadd.f32 %v4170_v6, %v3579_v29  ;;  %v4769_v13 = vpop.f32.mrf.mxu0 }
0x12a7   : > { %v3626_v22 = vmul.f32 0.7978846, %v3618_v56  ;;  %v3621_v57 = vadd.f32 %v3613_v16, %v6350_v4  ;;  %v3611_v15 = vmul.f32 0.044715, %v3603_v28  ;;  %5097 = vtanh.f32 %v3628_v24 }
0x12a8   : > { %v3608_v42 = vmul.f32 %v3600_v23, %v6361_v62  ;;  %v3598_v27 = vmul.f32 %v6367_v10, %v6367_v10  ;;  %v3591_v44 = vadd.f32 %v4769_v13, %v4170_v6  ;;  %v3582_v18 = vpop.f32.mrf.mxu0 }
0x12a9   : > { %5099 = vtanh.f32 %v3626_v22  ;;  %v3629_v3 = vmul.f32 0.7978846, %v3621_v57  ;;  %v3619_v47 = vadd.f32 %v3611_v15, %v6355_v30  ;;  %v3583_v26 = vadd.f32 %v4170_v6, %v3582_v18 }
0x12aa   : > { %v3616_v40 = vmul.f32 0.044715, %v3608_v42  ;;  %v3606_v25 = vmul.f32 %v3598_v27, %v6367_v10  ;;  %v3601_v35 = vmul.f32 %v3591_v44, %v3591_v44 }
0x12ab   : > { %5101 = vtanh.f32 %v3629_v3  ;;  %v3627_v41 = vmul.f32 0.7978846, %v3619_v47  ;;  %v3599_v55 = vmul.f32 %v3583_v26, %v3583_v26 }
0x12ac   : > { %v3624_v19 = vadd.f32 %v3616_v40, %v6361_v62  ;;  %v3614_v39 = vmul.f32 0.044715, %v3606_v25  ;;  %v3609_v34 = vmul.f32 %v3601_v35, %v3591_v44 }
0x12ad   : > { %5103 = vtanh.f32 %v3627_v41  ;;  %v3607_v59 = vmul.f32 %v3599_v55, %v3583_v26  ;;  %v4185_v41 = vld [vmem:[#allocation8] ss:$0 sm:$0xff] }
0x12ae   : > { %v3632_v43 = vmul.f32 0.7978846, %v3624_v19  ;;  %v3622_v0 = vadd.f32 %v3614_v39, %v6367_v10  ;;  %v3617_v21 = vmul.f32 0.044715, %v3609_v34 }
0x12af   : > { %v3615_v54 = vmul.f32 0.044715, %v3607_v59 }
0x12b0   : > { %5105 = vtanh.f32 %v3632_v43  ;;  %v3630_v11 = vmul.f32 0.7978846, %v3622_v0  ;;  %v3625_v58 = vadd.f32 %v3617_v21, %v3591_v44 }
0x12b1   : > { %v3623_v17 = vadd.f32 %v3615_v54, %v3583_v26 }
0x12b2   : > { %5107 = vtanh.f32 %v3630_v11  ;;  %v3633_v5 = vmul.f32 0.7978846, %v3625_v58 }
0x12b3   : > { %v3631_v6 = vmul.f32 0.7978846, %v3623_v17 }
0x12b4   : > { %5109 = vtanh.f32 %v3633_v5  ;;  %v5098_v14 = vpop.eup %5097 }
0x12b5   : > { %5111 = vtanh.f32 %v3631_v6  ;;  %v3644_v45 = vadd.f32 1.0, %v5098_v14 }
0x12b6   : > { %v5100_v38 = vpop.eup %5099 }
0x12b7   : > { %v3642_v61 = vadd.f32 1.0, %v5100_v38  ;;  %v3652_v31 = vmul.f32 0.5, %v3644_v45 }
0x12b8   : > { %v5102_v2 = vpop.eup %5101 }
0x12b9   : > { %v3645_v36 = vadd.f32 1.0, %v5102_v2  ;;  %v3650_v53 = vmul.f32 0.5, %v3642_v61  ;;  %v3660_v56 = vmul.f32 %v3652_v31, %v6341_v37 }
0x12ba   : > { %v5104_v7 = vpop.eup %5103 }
0x12bb   : > { %v3653_v9 = vmul.f32 0.5, %v3645_v36  ;;  %v3643_v63 = vadd.f32 1.0, %v5104_v7  ;;  %v3658_v29 = vmul.f32 %v3650_v53, %v6345_v8 }
0x12bd   : > { %v5106_v60 = vpop.eup %5105  ;;  %v3651_v51 = vmul.f32 0.5, %v3643_v63  ;;  %v3661_v48 = vmul.f32 %v3653_v9, %v6350_v4 }
0x12be   : > { %v3648_v28 = vadd.f32 1.0, %v5106_v60 }
0x12bf   : > { %v5108_v49 = vpop.eup %5107  ;;  %v3659_v24 = vmul.f32 %v3651_v51, %v6355_v30  ;;  %v3667_v57 = vpack.c.bf16 %v3661_v48, %v3660_v56 }
0x12c0   : > { %v3646_v16 = vadd.f32 1.0, %v5108_v49  ;;  %v3656_v4 = vmul.f32 0.5, %v3648_v28 }
0x12c1   : > { %v5110_v23 = vpop.eup %5109  ;;  %v3666_v13 = vpack.c.bf16 %v3659_v24, %v3658_v29 }
0x12c2   : > { %v5112_v22 = vpop.eup %5111  ;;  %v3649_v15 = vadd.f32 1.0, %v5110_v23  ;;  %v3654_v27 = vmul.f32 0.5, %v3646_v16  ;;  %v3664_v47 = vmul.f32 %v3656_v4, %v6361_v62 }
0x12c3   : > { %4786 = vmatprep.mubr.bf16.mxu1 %v3666_v13  ;;  %v3647_v42 = vadd.f32 1.0, %v5112_v22 }
0x12c4   : > { %4787 = vmatmul.mubr.bf16.vlgmr.msra.gmra.mxu1 %v3667_v57  ;;  %v3657_v18 = vmul.f32 0.5, %v3649_v15  ;;  %v3662_v30 = vmul.f32 %v3654_v27, %v6367_v10 }
0x12c5   : > { %v3655_v8 = vmul.f32 0.5, %v3647_v42 }
0x12c6   : > { %v3665_v3 = vmul.f32 %v3657_v18, %v3591_v44 }
0x12c7   : > { %v3663_v37 = vmul.f32 %v3655_v8, %v3583_v26 }
0x12c8   : > { %v3669_v25 = vpack.c.bf16 %v3665_v3, %v3664_v47 }
0x12c9   : > { %v3668_v40 = vpack.c.bf16 %v3663_v37, %v3662_v30 }
0x12cb   : > { %4790 = vmatprep.mubr.bf16.mxu1 %v3668_v40 }
0x12cc   : > { %4791 = vmatmul.mubr.bf16.gmra.mxu1 %v3669_v25 }
0x1384   : > { %v4788_v35 = vpop.f32.mrf.mxu1 }
0x1385   : > { %v3801_v55 = vadd.f32 %v4788_v35, %v6211_v52 }
0x1386   : > { %v3768_v19 = vpop.f32.mrf.mxu1 }
0x1387   : > { %v3816_v39 = vadd.f32 %v4185_v41, %v3801_v55  ;;  %v3799_v44 = vadd.f32 %v3768_v19, %v6208_v33 }
0x1388   : > { %v4789_v34 = vpop.f32.mrf.mxu1 }
0x1389   : > { %3824 = vst.msk [vmem:[%s515_s21 + $0x10] sm:$0xff] %vm530_vm0, %v3816_v39  ;;  %v3814_v62 = vadd.f32 %v4185_v41, %v3799_v44  ;;  %v3802_v10 = vadd.f32 %v4789_v34, %v6221_v12 }
0x138a   : > { %v3771_v26 = vpop.f32.mrf.mxu1 }
0x138b   : > { %3822 = vst.msk [vmem:[%s515_s21] sm:$0xff] %vm530_vm0, %v3814_v62  ;;  %v3817_v59 = vadd.f32 %v4185_v41, %v3802_v10  ;;  %v3800_v43 = vadd.f32 %v3771_v26, %v6218_v46 }
0x138c   : > { %v4792_v0 = vpop.f32.mrf.mxu1 }
0x138d   : > { %3825 = vst.msk [vmem:[%s515_s21 + $0x18] sm:$0xff] %vm530_vm0, %v3817_v59  ;;  %v3815_v52 = vadd.f32 %v4185_v41, %v3800_v43  ;;  %v3805_v33 = vadd.f32 %v4792_v0, %v6235_v50 }
0x138e   : > { %v3784_v21 = vpop.f32.mrf.mxu1 }
0x138f   : > { %3823 = vst.msk [vmem:[%s515_s21 + $0x8] sm:$0xff] %vm530_vm0, %v3815_v52  ;;  %v3820_v54 = vadd.f32 %v4185_v41, %v3805_v33  ;;  %v3803_v11 = vadd.f32 %v3784_v21, %v6230_v20 }
0x1390   : > { %v4793_v12 = vpop.f32.mrf.mxu1 }
0x1391   : > { %3828 = vst.msk [vmem:[%s515_s21 + $0x30] sm:$0xff] %vm530_vm0, %v3820_v54  ;;  %v3818_v58 = vadd.f32 %v4185_v41, %v3803_v11  ;;  %v3806_v46 = vadd.f32 %v4793_v12, %v6243_v32 }
0x1392   : > { %v3787_v17 = vpop.f32.mrf.mxu1 }
0x1393   : > { %3826 = vst.msk [vmem:[%s515_s21 + $0x20] sm:$0xff] %vm530_vm0, %v3818_v58  ;;  %v3821_v50 = vadd.f32 %v4185_v41, %v3806_v46  ;;  %v3804_v5 = vadd.f32 %v3787_v17, %v6241_v1 }
0x1395   : > { %3829 = vst.msk [vmem:[%s515_s21 + $0x38] sm:$0xff] %vm530_vm0, %v3821_v50  ;;  %v3819_v20 = vadd.f32 %v4185_v41, %v3804_v5 }
0x1397   : > { %3827 = vst.msk [vmem:[%s515_s21 + $0x28] sm:$0xff] %vm530_vm0, %v3819_v20 }
0x1398   : > { %5238 = shalt.err (!%p5235_p9)
}
0x1399   : > { %s5239_s16 = scalar_lea.hbm %s6404_s22, 1024  ;;  %s5243_s21 = scalar_lea.hbm %s6466_s14, 2048 }
0x139a   : > { %p5240_p13 = scmp.ne.s32.totalorder %s6404_s22, %s5239_s16  ;;  %p5244_p11 = scmp.lt.s32.totalorder %s6404_s22, %s6466_s14 }
0x139b   : > { %p5245_p12 = scmp.lt.s32.totalorder %s5243_s21, %s5239_s16 }
0x139c   : > { %p5241_p8 = pnand %p5240_p13, %p6491_p1 }
0x139d   : > { %p5246_p10 = por %p5245_p12, %p5244_p11 }
0x139e   : > { %p5242_p5 = pneg %p5241_p8 }
0x13a0   : > { %p5247_p0 = pnand %p5246_p10, %p5242_p5 }
0x13a2   : > { %5250 = shalt.err (!%p5247_p0)
}
0x13a3   : > { %s5308_s26 = smov 128   ;;  %s5309_s27 = smov 8  }
0x13a4   : > { %4833 = dma.vmem_to_hbm [thread:$0]  (%p6491_p1), %s6406_s25, 1024, %s6404_s22, %s6412_s17, %s5308_s26, %s5308_s26, %s5309_s27  }
0x13a5 PF: > { %s6492_s18 = sld [smem:[#allocation17_spill]] }
0x13a6   : > { %s6493_s19 = sld [smem:[#allocation15_spill]] }
0x13a7   : > { %s6494_s29 = sld [smem:[#allocation20_spill]] }
0x13ab   : > { %p4860_p3 = scmp.ge.s32.totalorder %s6492_s18, 2 }
0x13ac   : > { %s3859_s24 = sand.u32 1, %s6493_s19  }
0x13ad   : > { %p6495_p2 = scmp.ne.s32.totalorder %s6494_s29, 0  ;;  %s3860_s16 = scalar_lea.sflag [#allocation4], %s3859_s24 }
0x13af   : > { %p4849_p4 = pnand %p4860_p3, %p6495_p2 }
0x13b1   : > { %p4850_p6 = pneg %p4849_p4 }
0x13b3   : > { %5280 = dma.done.wait (%p4850_p6), %s3860_s16, 1024  }
0x13b4   : > { %5282 = vsyncadd (%p4850_p6), %s3860_s16, 4294966272  ;;  %s6496_s16 = sld [smem:[#allocation18_spill]]  ;;  %s6499_s29 = smov %s5289_s30 }
0x13b5   : > { %s6497_s20 = sld [smem:[#allocation16_spill]] }
0x13b6   : > { %s6498_s15 = sld [smem:[#allocation19_spill]] }
0x13ba   : > { %p27_p7 = scmp.ge.s32.totalorder %s6496_s16, 4  }
0x13bb   : > { %s6500_s30 = smov %s6497_s20 }
0x13bc   :  { %29 = sbr.rel (!%p27_p7) target bundleno = 6 (0x6), region = 156 }
0x13c1   :  { %3865 = vsyncpa [#allocation3], 1 }
0x13c2   :  { %3867 = vsyncpa [#allocation3 + $0x1], 1 }
0x13c3   :  { %3868 = vsyncpa [#allocation6], 1 }
0x13c4   :  { %3869 = vsyncpa [#allocation9], 1 }
0x13c5   :  { %3870 = vsyncpa [#allocation4], 1 }
0x13c6   :  { %3872 = vsyncpa [#allocation4 + $0x1], 1 }

</bundles_post_ra>
